<compile_context>
chip_gen: v5e
topology: v5e:2x2
jax: 0.10.0
libtpu: 0.0.40
codegen_flags: <defaults>
</compile_context>

<pallas_src>
import math

import jax
import jax.numpy as jnp
import numpy as np
from jax.experimental import pallas as pl
from jax.experimental.pallas import tpu as pltpu


# ----------------------------- Pallas kernel ------------------------------

def _cnn_kernel(x_ref, bc1_ref, bt1_ref, bc2_ref, bt2_ref,
                w1_ref, b1_ref, w2_ref, b2_ref, w3_ref, b3_ref,
                out_ref, z1_ref, p1_ref, z2_ref, p2_ref):
    """One batch tile of TB images, fully fused LeNet forward.

    x_ref : (TB*32, 32*Cin) f32   -- TB images stacked along rows (h major).
    bc*   : banded conv weights (even|odd width-pool halves, each 128 lanes).
    w1    : (5*128, 128) fc1 weight, one 128-row slab per pooled image row.
    Scratch (all f32):
      z1 (TB*32,128)  conv1 width-pooled rows (pre height-pool)
      p1 (TB*16,128)  conv1 pooled+relu activations (16-row blocks, 14 valid)
      z2 (TB*16,128)  conv2 width-pooled rows
      p2 (TB*8 ,128)  conv2 pooled+relu activations (8-row blocks, 5 valid)
    """
    nrow1, wc1 = x_ref.shape                       # TB*32, 32*Cin
    tb = out_ref.shape[0]
    n1 = nrow1 - 4                                 # rows of the shifted slabs

    # ---------------- conv1 (banded, 5 row-shifted MXU matmuls) -----------
    acc = jnp.dot(x_ref[pl.ds(0, n1), :].astype(jnp.bfloat16),
                  bc1_ref[pl.ds(0, wc1), :],
                  preferred_element_type=jnp.float32)            # (n1, 256)
    for kh in range(1, 5):
        acc = acc + jnp.dot(x_ref[pl.ds(kh, n1), :].astype(jnp.bfloat16),
                            bc1_ref[pl.ds(kh * wc1, wc1), :],
                            preferred_element_type=jnp.float32)
    # Width pool: even/odd output columns live in aligned 128-lane halves.
    m1 = jnp.maximum(acc[:, :128], acc[:, 128:])                 # (n1, 128)

    # Height pool via stride-2 scratch reads; then bias + ReLU.
    z1_ref[pl.ds(n1, 4), :] = jnp.zeros((4, 128), jnp.float32)   # hygiene
    z1_ref[pl.ds(0, n1), :] = m1
    p1 = jnp.maximum(z1_ref[pl.ds(0, tb * 16, stride=2), :],
                     z1_ref[pl.ds(1, tb * 16, stride=2), :])
    p1_ref[...] = jnp.maximum(p1 + bt1_ref[...], 0.0)            # (TB*16,128)

    # ---------------- conv2 (banded) --------------------------------------
    n2 = tb * 16 - 4
    acc2 = jnp.dot(p1_ref[pl.ds(0, n2), :].astype(jnp.bfloat16),
                   bc2_ref[pl.ds(0, 128), :],
                   preferred_element_type=jnp.float32)           # (n2, 256)
    for kh in range(1, 5):
        acc2 = acc2 + jnp.dot(p1_ref[pl.ds(kh, n2), :].astype(jnp.bfloat16),
                              bc2_ref[pl.ds(kh * 128, 128), :],
                              preferred_element_type=jnp.float32)
    m2 = jnp.maximum(acc2[:, :128], acc2[:, 128:])               # width pool

    z2_ref[pl.ds(n2, 4), :] = jnp.zeros((4, 128), jnp.float32)
    z2_ref[pl.ds(0, n2), :] = m2
    p2 = jnp.maximum(z2_ref[pl.ds(0, tb * 8, stride=2), :],
                     z2_ref[pl.ds(1, tb * 8, stride=2), :])
    p2_ref[...] = jnp.maximum(p2 + bt2_ref[...], 0.0)            # (TB*8,128)

    # ---------------- fc1 / fc2 / fc3 (sublane-dense, M = TB) -------------
    # fc1: one stride-8 row gather per pooled image row (5 of them), weights
    # pre-permuted for torch's NCHW flatten order and padded to 128 lanes.
    a0 = p2_ref[pl.ds(0, tb, stride=8), :].astype(jnp.bfloat16)  # (TB, 128)
    h1 = jnp.dot(a0, w1_ref[pl.ds(0, 128), :],
                 preferred_element_type=jnp.float32)
    for h in range(1, 5):
        ah = p2_ref[pl.ds(h, tb, stride=8), :].astype(jnp.bfloat16)
        h1 = h1 + jnp.dot(ah, w1_ref[pl.ds(h * 128, 128), :],
                          preferred_element_type=jnp.float32)
    h1 = jnp.maximum(h1 + b1_ref[...], 0.0)                      # (TB, 128)

    h2 = jnp.maximum(
        jnp.dot(h1.astype(jnp.bfloat16), w2_ref[...],
                preferred_element_type=jnp.float32) + b2_ref[...], 0.0)
    out_ref[...] = jnp.dot(h2.astype(jnp.bfloat16), w3_ref[...],
                           preferred_element_type=jnp.float32) + b3_ref[...]


# ------------------------- parameter preparation --------------------------

def init_params(channels, key):
    """Parameters in PyTorch layout, PyTorch default init U(-1/sqrt(fan_in), .)."""
    c2 = channels * 2

    def uni(k, shape, fan_in):
        bound = 1.0 / math.sqrt(fan_in)
        return jax.random.uniform(k, shape, jnp.float32, -bound, bound)

    ks = jax.random.split(key, 10)
    return {
        "conv1_w": uni(ks[0], (c2, channels, 5, 5), channels * 25),
        "conv1_b": uni(ks[1], (c2,), channels * 25),
        "conv2_w": uni(ks[2], (16, c2, 5, 5), c2 * 25),
        "conv2_b": uni(ks[3], (16,), c2 * 25),
        "fc1_w": uni(ks[4], (120, 16 * 5 * 5), 16 * 5 * 5),
        "fc1_b": uni(ks[5], (120,), 16 * 5 * 5),
        "fc2_w": uni(ks[6], (84, 120), 120),
        "fc2_b": uni(ks[7], (84,), 120),
        "fc3_w": uni(ks[8], (10, 84), 84),
        "fc3_b": uni(ks[9], (10,), 84),
    }


def _conv_banded(w_oihw, bias, w_in, row_pad=None):
    """Lower a 5x5 valid conv + 2x-width-pool into a banded matmul weight.

    Rows are (kh, input_col = w*Cin+ci); columns are [even wo | odd wo], each
    half holding (wo//2)*Cout entries zero-padded to 128 lanes.  Returns
    bcat (KH*row_pad, 256) bf16 and the width-tiled bias (1, 128) f32.
    """
    w = np.asarray(w_oihw, np.float32)           # (Cout, Cin, KH, KW)
    b = np.asarray(bias, np.float32)
    cout, cin, kh_, kw_ = w.shape
    wo = w_in - kw_ + 1
    assert wo % 2 == 0, "width pooling expects an even conv output width"
    wp = wo // 2
    ne = wp * cout
    assert ne <= 128
    wc = w_in * cin
    rp = wc if row_pad is None else row_pad
    assert rp >= wc
    m = np.zeros((kh_, rp, 2, 128), np.float32)
    for kh in range(kh_):
        for kw in range(kw_):
            for o in range(wo):
                par, op = o % 2, o // 2
                r0 = (o + kw) * cin
                m[kh, r0:r0 + cin, par, op * cout:(op + 1) * cout] += \
                    w[:, :, kh, kw].T
    bcat = np.concatenate([m[:, :, 0, :], m[:, :, 1, :]], axis=-1)
    bcat = bcat.reshape(kh_ * rp, 256)
    bt = np.zeros((1, 128), np.float32)
    bt[0, :ne] = np.tile(b, wp)
    return jnp.asarray(bcat, jnp.bfloat16), jnp.asarray(bt, jnp.float32)


def prepare_kernel_params(params, H=32, W=32):
    """One-time packing of the PyTorch-layout params into kernel layout."""
    cin = params["conv1_w"].shape[1]
    assert H == 32 and W == 32, "fc1 expects a 16*5*5 flatten (32x32 input)"
    bc1, bt1 = _conv_banded(params["conv1_w"], params["conv1_b"], W)
    bc2, bt2 = _conv_banded(params["conv2_w"], params["conv2_b"],
                            (W - 4) // 2, row_pad=128)

    # fc1: torch flatten order is (c, h, w); kernel activation columns are
    # (w*16 + c) with one 128-row weight slab per pooled row h.
    f1 = np.asarray(params["fc1_w"], np.float32).reshape(120, 16, 5, 5)
    w1 = np.zeros((5, 128, 128), np.float32)
    for h in range(5):
        w1[h, :80, :120] = np.transpose(f1[:, :, h, :], (2, 1, 0)).reshape(80, 120)
    w1 = w1.reshape(640, 128)
    b1 = np.zeros((1, 128), np.float32)
    b1[0, :120] = np.asarray(params["fc1_b"], np.float32)

    w2 = np.zeros((128, 128), np.float32)
    w2[:120, :84] = np.asarray(params["fc2_w"], np.float32).T
    b2 = np.zeros((1, 128), np.float32)
    b2[0, :84] = np.asarray(params["fc2_b"], np.float32)

    w3 = np.zeros((128, 128), np.float32)
    w3[:84, :10] = np.asarray(params["fc3_w"], np.float32).T
    b3 = np.zeros((1, 128), np.float32)
    b3[0, :10] = np.asarray(params["fc3_b"], np.float32)

    return {
        "bc1": bc1, "bt1": bt1, "bc2": bc2, "bt2": bt2,
        "w1": jnp.asarray(w1, jnp.bfloat16), "b1": jnp.asarray(b1),
        "w2": jnp.asarray(w2, jnp.bfloat16), "b2": jnp.asarray(b2),
        "w3": jnp.asarray(w3, jnp.bfloat16), "b3": jnp.asarray(b3),
        "cin": cin,
    }


# ------------------------------- forward ----------------------------------

def _pick_batch_tile(B):
    """Batch images per grid step; multiple of 8 (or =B) so blocks stay tiled."""
    if B >= 64:
        return 32
    if B >= 16:
        half = (B + 1) // 2
        return min(32, 8 * ((half + 7) // 8))
    return B                                   # single grid step, full-dim block


def _vmem_limit_bytes(tb, wc1):
    """Right-size the scoped VMEM limit (v7x has only 64 MiB)."""
    f32 = 4
    x_blk = tb * 32 * wc1 * f32 * 2            # double-buffered input block
    out_blk = tb * 128 * f32 * 2
    scratch = (tb * 32 + tb * 16 + tb * 16 + tb * 8) * 128 * f32
    weights = (5 * wc1 * 256 + 640 * 256 + 640 * 128 + 2 * 128 * 128) * 2 \
        + 5 * 128 * f32
    temps = (tb * 32 * 256 + tb * 16 * 256 + tb * 32 * 128) * f32 \
        + 2 * tb * 32 * wc1 * f32
    est = x_blk + out_blk + scratch + 2 * weights + temps
    return int(min(96 * 2 ** 20, max(8 * 2 ** 20, 2 * est)))


@jax.jit
def cnn_forward(x_nchw, kp):
    B, Cin, H, W = x_nchw.shape
    assert H == 32 and W == 32, "CNN fc1 expects 32x32 spatial input"
    wc1 = W * Cin

    TB = _pick_batch_tile(B)
    Bpad = ((B + TB - 1) // TB) * TB
    grid = Bpad // TB

    # NCHW -> (Bpad*H, W*Cin) f32: conv matmuls consume (h, w*Cin+ci) rows.
    xt = jnp.transpose(x_nchw, (0, 2, 3, 1)).astype(jnp.float32)
    if Bpad != B:
        xt = jnp.concatenate(
            [xt, jnp.zeros((Bpad - B, H, W, Cin), jnp.float32)], axis=0)
    x2 = xt.reshape(Bpad * H, wc1)

    def full(a):
        return pl.BlockSpec(a.shape, lambda i: (0, 0))

    out = pl.pallas_call(
        _cnn_kernel,
        out_shape=jax.ShapeDtypeStruct((Bpad, 128), jnp.float32),
        grid=(grid,),
        in_specs=[
            pl.BlockSpec((TB * H, wc1), lambda i: (i, 0)),
            full(kp["bc1"]), full(kp["bt1"]),
            full(kp["bc2"]), full(kp["bt2"]),
            full(kp["w1"]), full(kp["b1"]),
            full(kp["w2"]), full(kp["b2"]),
            full(kp["w3"]), full(kp["b3"]),
        ],
        out_specs=pl.BlockSpec((TB, 128), lambda i: (i, 0)),
        scratch_shapes=[
            pltpu.VMEM((TB * 32, 128), jnp.float32),   # z1
            pltpu.VMEM((TB * 16, 128), jnp.float32),   # p1
            pltpu.VMEM((TB * 16, 128), jnp.float32),   # z2
            pltpu.VMEM((TB * 8, 128), jnp.float32),    # p2
        ],
        compiler_params=pltpu.CompilerParams(
            dimension_semantics=("parallel",),
            vmem_limit_bytes=_vmem_limit_bytes(TB, wc1)),
    )(x2, kp["bc1"], kp["bt1"], kp["bc2"], kp["bt2"],
      kp["w1"], kp["b1"], kp["w2"], kp["b2"], kp["w3"], kp["b3"])

    # Lane-dense padded logits -> the 10 real logits, drop batch padding.
    return out[:B, :10]


# --------------------------- pure-JAX reference ----------------------------

def cnn_reference(x, params):
    dn = ("NCHW", "OIHW", "NCHW")
    y = jax.lax.conv_general_dilated(x, params["conv1_w"], (1, 1), "VALID",
                                     dimension_numbers=dn)
    y = jax.nn.relu(y + params["conv1_b"][None, :, None, None])
    y = jax.lax.reduce_window(y, -jnp.inf, jax.lax.max,
                              (1, 1, 2, 2), (1, 1, 2, 2), "VALID")
    y = jax.lax.conv_general_dilated(y, params["conv2_w"], (1, 1), "VALID",
                                     dimension_numbers=dn)
    y = jax.nn.relu(y + params["conv2_b"][None, :, None, None])
    y = jax.lax.reduce_window(y, -jnp.inf, jax.lax.max,
                              (1, 1, 2, 2), (1, 1, 2, 2), "VALID")
    y = y.reshape(y.shape[0], -1)
    y = jax.nn.relu(y @ params["fc1_w"].T + params["fc1_b"])
    y = jax.nn.relu(y @ params["fc2_w"].T + params["fc2_b"])
    return y @ params["fc3_w"].T + params["fc3_b"]


if __name__ == "__main__":
    channels, batch = 3, 16
    # Spatial size must be 32: 32 -conv5-> 28 -pool-> 14 -conv5-> 10 -pool-> 5,
    # matching fc1's expected 16*5*5 input (same constraint as the PyTorch CNN).
    key = jax.random.PRNGKey(0)
    k_x, k_p = jax.random.split(key)
    x = jax.random.normal(k_x, (batch, channels, 32, 32), dtype=jnp.float32)
    params = init_params(channels, k_p)
    kparams = prepare_kernel_params(params)

    out = jax.block_until_ready(cnn_forward(x, kparams))
    assert out.shape == (batch, 10), out.shape

    ref = jax.block_until_ready(cnn_reference(x, params))
    # bf16 weights/activations on the MXU path -> small numeric drift vs f32.
    np.testing.assert_allclose(np.asarray(out), np.asarray(ref),
                               rtol=2e-1, atol=2e-2)
    print("KERNEL_OK")
</pallas_src>

<mosaic_0001>
module attributes {stable_mosaic.version = 11 : i64} {
  func.func @_cnn_kernel(%arg0: i32, %arg1: memref<256x96xf32, #tpu.memory_space<vmem>>, %arg2: memref<480x256xbf16, #tpu.memory_space<vmem>>, %arg3: memref<1x128xf32, #tpu.memory_space<vmem>>, %arg4: memref<640x256xbf16, #tpu.memory_space<vmem>>, %arg5: memref<1x128xf32, #tpu.memory_space<vmem>>, %arg6: memref<640x128xbf16, #tpu.memory_space<vmem>>, %arg7: memref<1x128xf32, #tpu.memory_space<vmem>>, %arg8: memref<128x128xbf16, #tpu.memory_space<vmem>>, %arg9: memref<1x128xf32, #tpu.memory_space<vmem>>, %arg10: memref<128x128xbf16, #tpu.memory_space<vmem>>, %arg11: memref<1x128xf32, #tpu.memory_space<vmem>>, %arg12: memref<8x128xf32, #tpu.memory_space<vmem>>, %arg13: memref<256x128xf32, #tpu.memory_space<vmem>>, %arg14: memref<128x128xf32, #tpu.memory_space<vmem>>, %arg15: memref<128x128xf32, #tpu.memory_space<vmem>>, %arg16: memref<64x128xf32, #tpu.memory_space<vmem>>) attributes {dimension_semantics = [#tpu.dimension_semantics<parallel>], iteration_bounds = array<i64: 2>, scalar_prefetch = 0 : i64, scratch_operands = 4 : i64, tpu.core_type = #tpu.core_type<tc>, window_params = [{transform_indices = @transform_0, window_bounds = array<i64: 256, 96>}, {pipeline_mode = #tpu.pipeline_mode<synchronous>, transform_indices = @transform_1, window_bounds = array<i64: 480, 256>}, {pipeline_mode = #tpu.pipeline_mode<synchronous>, transform_indices = @transform_2, window_bounds = array<i64: 1, 128>}, {pipeline_mode = #tpu.pipeline_mode<synchronous>, transform_indices = @transform_3, window_bounds = array<i64: 640, 256>}, {pipeline_mode = #tpu.pipeline_mode<synchronous>, transform_indices = @transform_4, window_bounds = array<i64: 1, 128>}, {pipeline_mode = #tpu.pipeline_mode<synchronous>, transform_indices = @transform_5, window_bounds = array<i64: 640, 128>}, {pipeline_mode = #tpu.pipeline_mode<synchronous>, transform_indices = @transform_6, window_bounds = array<i64: 1, 128>}, {pipeline_mode = #tpu.pipeline_mode<synchronous>, transform_indices = @transform_7, window_bounds = array<i64: 128, 128>}, {pipeline_mode = #tpu.pipeline_mode<synchronous>, transform_indices = @transform_8, window_bounds = array<i64: 1, 128>}, {pipeline_mode = #tpu.pipeline_mode<synchronous>, transform_indices = @transform_9, window_bounds = array<i64: 128, 128>}, {pipeline_mode = #tpu.pipeline_mode<synchronous>, transform_indices = @transform_10, window_bounds = array<i64: 1, 128>}, {transform_indices = @transform_11, window_bounds = array<i64: 8, 128>}]} {
    %c0 = arith.constant 0 : index
    %c0_0 = arith.constant 0 : index
    %0 = vector.load %arg1[%c0, %c0_0] : memref<256x96xf32, #tpu.memory_space<vmem>>, vector<252x96xf32>
    %1 = arith.truncf %0 : vector<252x96xf32> to vector<252x96xbf16>
    %c0_1 = arith.constant 0 : index
    %c0_2 = arith.constant 0 : index
    %2 = vector.load %arg2[%c0_1, %c0_2] : memref<480x256xbf16, #tpu.memory_space<vmem>>, vector<96x256xbf16>
    %cst = arith.constant dense<0.000000e+00> : vector<252x256xf32>
    %3 = tpu.matmul %1, %2, %cst {dimension_numbers = #tpu.dot_dimension_numbers<[1], [0], [0], [1], [0, 0, 1, 1], [], []>} : vector<252x96xbf16>, vector<96x256xbf16>, vector<252x256xf32> -> vector<252x256xf32>
    %c1 = arith.constant 1 : index
    %c0_3 = arith.constant 0 : index
    %4 = vector.load %arg1[%c1, %c0_3] : memref<256x96xf32, #tpu.memory_space<vmem>>, vector<252x96xf32>
    %5 = arith.truncf %4 : vector<252x96xf32> to vector<252x96xbf16>
    %c96 = arith.constant 96 : index
    %c0_4 = arith.constant 0 : index
    %6 = vector.load %arg2[%c96, %c0_4] : memref<480x256xbf16, #tpu.memory_space<vmem>>, vector<96x256xbf16>
    %cst_5 = arith.constant dense<0.000000e+00> : vector<252x256xf32>
    %7 = tpu.matmul %5, %6, %cst_5 {dimension_numbers = #tpu.dot_dimension_numbers<[1], [0], [0], [1], [0, 0, 1, 1], [], []>} : vector<252x96xbf16>, vector<96x256xbf16>, vector<252x256xf32> -> vector<252x256xf32>
    %8 = arith.addf %3, %7 : vector<252x256xf32>
    %c2 = arith.constant 2 : index
    %c0_6 = arith.constant 0 : index
    %9 = vector.load %arg1[%c2, %c0_6] : memref<256x96xf32, #tpu.memory_space<vmem>>, vector<252x96xf32>
    %10 = arith.truncf %9 : vector<252x96xf32> to vector<252x96xbf16>
    %c192 = arith.constant 192 : index
    %c0_7 = arith.constant 0 : index
    %11 = vector.load %arg2[%c192, %c0_7] : memref<480x256xbf16, #tpu.memory_space<vmem>>, vector<96x256xbf16>
    %cst_8 = arith.constant dense<0.000000e+00> : vector<252x256xf32>
    %12 = tpu.matmul %10, %11, %cst_8 {dimension_numbers = #tpu.dot_dimension_numbers<[1], [0], [0], [1], [0, 0, 1, 1], [], []>} : vector<252x96xbf16>, vector<96x256xbf16>, vector<252x256xf32> -> vector<252x256xf32>
    %13 = arith.addf %8, %12 : vector<252x256xf32>
    %c3 = arith.constant 3 : index
    %c0_9 = arith.constant 0 : index
    %14 = vector.load %arg1[%c3, %c0_9] : memref<256x96xf32, #tpu.memory_space<vmem>>, vector<252x96xf32>
    %15 = arith.truncf %14 : vector<252x96xf32> to vector<252x96xbf16>
    %c288 = arith.constant 288 : index
    %c0_10 = arith.constant 0 : index
    %16 = vector.load %arg2[%c288, %c0_10] : memref<480x256xbf16, #tpu.memory_space<vmem>>, vector<96x256xbf16>
    %cst_11 = arith.constant dense<0.000000e+00> : vector<252x256xf32>
    %17 = tpu.matmul %15, %16, %cst_11 {dimension_numbers = #tpu.dot_dimension_numbers<[1], [0], [0], [1], [0, 0, 1, 1], [], []>} : vector<252x96xbf16>, vector<96x256xbf16>, vector<252x256xf32> -> vector<252x256xf32>
    %18 = arith.addf %13, %17 : vector<252x256xf32>
    %c4 = arith.constant 4 : index
    %c0_12 = arith.constant 0 : index
    %19 = vector.load %arg1[%c4, %c0_12] : memref<256x96xf32, #tpu.memory_space<vmem>>, vector<252x96xf32>
    %20 = arith.truncf %19 : vector<252x96xf32> to vector<252x96xbf16>
    %c384 = arith.constant 384 : index
    %c0_13 = arith.constant 0 : index
    %21 = vector.load %arg2[%c384, %c0_13] : memref<480x256xbf16, #tpu.memory_space<vmem>>, vector<96x256xbf16>
    %cst_14 = arith.constant dense<0.000000e+00> : vector<252x256xf32>
    %22 = tpu.matmul %20, %21, %cst_14 {dimension_numbers = #tpu.dot_dimension_numbers<[1], [0], [0], [1], [0, 0, 1, 1], [], []>} : vector<252x96xbf16>, vector<96x256xbf16>, vector<252x256xf32> -> vector<252x256xf32>
    %23 = arith.addf %18, %22 : vector<252x256xf32>
    %24 = vector.extract_strided_slice %23 {offsets = [0, 0], sizes = [252, 128], strides = [1, 1]} : vector<252x256xf32> to vector<252x128xf32>
    %25 = vector.extract_strided_slice %23 {offsets = [0, 128], sizes = [252, 128], strides = [1, 1]} : vector<252x256xf32> to vector<252x128xf32>
    %26 = arith.maximumf %24, %25 : vector<252x128xf32>
    %cst_15 = arith.constant 0.000000e+00 : f32
    %27 = vector.broadcast %cst_15 : f32 to vector<4x128xf32>
    %c252 = arith.constant 252 : index
    %c0_16 = arith.constant 0 : index
    %28 = vector.load %arg13[%c252, %c0_16] : memref<256x128xf32, #tpu.memory_space<vmem>>, vector<4x128xf32>
    tpu.vector_store %arg13[%c252, %c0_16], %27 {strides = array<i32>} : memref<256x128xf32, #tpu.memory_space<vmem>>, vector<4x128xf32>,
    %c0_17 = arith.constant 0 : index
    %c0_18 = arith.constant 0 : index
    %29 = vector.load %arg13[%c0_17, %c0_18] : memref<256x128xf32, #tpu.memory_space<vmem>>, vector<252x128xf32>
    tpu.vector_store %arg13[%c0_17, %c0_18], %26 {strides = array<i32>} : memref<256x128xf32, #tpu.memory_space<vmem>>, vector<252x128xf32>,
    %c0_19 = arith.constant 0 : index
    %c0_20 = arith.constant 0 : index
    %30 = tpu.strided_load %arg13[%c0_19, %c0_20] {strides = array<i32: 2, 1>} : memref<256x128xf32, #tpu.memory_space<vmem>>, vector<128x128xf32>
    %c1_21 = arith.constant 1 : index
    %c0_22 = arith.constant 0 : index
    %31 = tpu.strided_load %arg13[%c1_21, %c0_22] {strides = array<i32: 2, 1>} : memref<256x128xf32, #tpu.memory_space<vmem>>, vector<128x128xf32>
    %32 = arith.maximumf %30, %31 : vector<128x128xf32>
    %c0_23 = arith.constant 0 : index
    %c0_24 = arith.constant 0 : index
    %33 = vector.load %arg3[%c0_23, %c0_24] : memref<1x128xf32, #tpu.memory_space<vmem>>, vector<1x128xf32>
    %34 = vector.broadcast %33 : vector<1x128xf32> to vector<128x128xf32>
    %35 = arith.addf %32, %34 : vector<128x128xf32>
    %cst_25 = arith.constant 0.000000e+00 : f32
    %36 = vector.broadcast %cst_25 : f32 to vector<128x128xf32>
    %37 = arith.maximumf %35, %36 : vector<128x128xf32>
    %c0_26 = arith.constant 0 : index
    %c0_27 = arith.constant 0 : index
    %38 = vector.load %arg14[%c0_26, %c0_27] : memref<128x128xf32, #tpu.memory_space<vmem>>, vector<128x128xf32>
    tpu.vector_store %arg14[%c0_26, %c0_27], %37 {strides = array<i32>} : memref<128x128xf32, #tpu.memory_space<vmem>>, vector<128x128xf32>,
    %c0_28 = arith.constant 0 : index
    %c0_29 = arith.constant 0 : index
    %39 = vector.load %arg14[%c0_28, %c0_29] : memref<128x128xf32, #tpu.memory_space<vmem>>, vector<124x128xf32>
    %40 = arith.truncf %39 : vector<124x128xf32> to vector<124x128xbf16>
    %c0_30 = arith.constant 0 : index
    %c0_31 = arith.constant 0 : index
    %41 = vector.load %arg4[%c0_30, %c0_31] : memref<640x256xbf16, #tpu.memory_space<vmem>>, vector<128x256xbf16>
    %cst_32 = arith.constant dense<0.000000e+00> : vector<124x256xf32>
    %42 = tpu.matmul %40, %41, %cst_32 {dimension_numbers = #tpu.dot_dimension_numbers<[1], [0], [0], [1], [0, 0, 1, 1], [], []>} : vector<124x128xbf16>, vector<128x256xbf16>, vector<124x256xf32> -> vector<124x256xf32>
    %c1_33 = arith.constant 1 : index
    %c0_34 = arith.constant 0 : index
    %43 = vector.load %arg14[%c1_33, %c0_34] : memref<128x128xf32, #tpu.memory_space<vmem>>, vector<124x128xf32>
    %44 = arith.truncf %43 : vector<124x128xf32> to vector<124x128xbf16>
    %c128 = arith.constant 128 : index
    %c0_35 = arith.constant 0 : index
    %45 = vector.load %arg4[%c128, %c0_35] : memref<640x256xbf16, #tpu.memory_space<vmem>>, vector<128x256xbf16>
    %cst_36 = arith.constant dense<0.000000e+00> : vector<124x256xf32>
    %46 = tpu.matmul %44, %45, %cst_36 {dimension_numbers = #tpu.dot_dimension_numbers<[1], [0], [0], [1], [0, 0, 1, 1], [], []>} : vector<124x128xbf16>, vector<128x256xbf16>, vector<124x256xf32> -> vector<124x256xf32>
    %47 = arith.addf %42, %46 : vector<124x256xf32>
    %c2_37 = arith.constant 2 : index
    %c0_38 = arith.constant 0 : index
    %48 = vector.load %arg14[%c2_37, %c0_38] : memref<128x128xf32, #tpu.memory_space<vmem>>, vector<124x128xf32>
    %49 = arith.truncf %48 : vector<124x128xf32> to vector<124x128xbf16>
    %c256 = arith.constant 256 : index
    %c0_39 = arith.constant 0 : index
    %50 = vector.load %arg4[%c256, %c0_39] : memref<640x256xbf16, #tpu.memory_space<vmem>>, vector<128x256xbf16>
    %cst_40 = arith.constant dense<0.000000e+00> : vector<124x256xf32>
    %51 = tpu.matmul %49, %50, %cst_40 {dimension_numbers = #tpu.dot_dimension_numbers<[1], [0], [0], [1], [0, 0, 1, 1], [], []>} : vector<124x128xbf16>, vector<128x256xbf16>, vector<124x256xf32> -> vector<124x256xf32>
    %52 = arith.addf %47, %51 : vector<124x256xf32>
    %c3_41 = arith.constant 3 : index
    %c0_42 = arith.constant 0 : index
    %53 = vector.load %arg14[%c3_41, %c0_42] : memref<128x128xf32, #tpu.memory_space<vmem>>, vector<124x128xf32>
    %54 = arith.truncf %53 : vector<124x128xf32> to vector<124x128xbf16>
    %c384_43 = arith.constant 384 : index
    %c0_44 = arith.constant 0 : index
    %55 = vector.load %arg4[%c384_43, %c0_44] : memref<640x256xbf16, #tpu.memory_space<vmem>>, vector<128x256xbf16>
    %cst_45 = arith.constant dense<0.000000e+00> : vector<124x256xf32>
    %56 = tpu.matmul %54, %55, %cst_45 {dimension_numbers = #tpu.dot_dimension_numbers<[1], [0], [0], [1], [0, 0, 1, 1], [], []>} : vector<124x128xbf16>, vector<128x256xbf16>, vector<124x256xf32> -> vector<124x256xf32>
    %57 = arith.addf %52, %56 : vector<124x256xf32>
    %c4_46 = arith.constant 4 : index
    %c0_47 = arith.constant 0 : index
    %58 = vector.load %arg14[%c4_46, %c0_47] : memref<128x128xf32, #tpu.memory_space<vmem>>, vector<124x128xf32>
    %59 = arith.truncf %58 : vector<124x128xf32> to vector<124x128xbf16>
    %c512 = arith.constant 512 : index
    %c0_48 = arith.constant 0 : index
    %60 = vector.load %arg4[%c512, %c0_48] : memref<640x256xbf16, #tpu.memory_space<vmem>>, vector<128x256xbf16>
    %cst_49 = arith.constant dense<0.000000e+00> : vector<124x256xf32>
    %61 = tpu.matmul %59, %60, %cst_49 {dimension_numbers = #tpu.dot_dimension_numbers<[1], [0], [0], [1], [0, 0, 1, 1], [], []>} : vector<124x128xbf16>, vector<128x256xbf16>, vector<124x256xf32> -> vector<124x256xf32>
    %62 = arith.addf %57, %61 : vector<124x256xf32>
    %63 = vector.extract_strided_slice %62 {offsets = [0, 0], sizes = [124, 128], strides = [1, 1]} : vector<124x256xf32> to vector<124x128xf32>
    %64 = vector.extract_strided_slice %62 {offsets = [0, 128], sizes = [124, 128], strides = [1, 1]} : vector<124x256xf32> to vector<124x128xf32>
    %65 = arith.maximumf %63, %64 : vector<124x128xf32>
    %cst_50 = arith.constant 0.000000e+00 : f32
    %66 = vector.broadcast %cst_50 : f32 to vector<4x128xf32>
    %c124 = arith.constant 124 : index
    %c0_51 = arith.constant 0 : index
    %67 = vector.load %arg15[%c124, %c0_51] : memref<128x128xf32, #tpu.memory_space<vmem>>, vector<4x128xf32>
    tpu.vector_store %arg15[%c124, %c0_51], %66 {strides = array<i32>} : memref<128x128xf32, #tpu.memory_space<vmem>>, vector<4x128xf32>,
    %c0_52 = arith.constant 0 : index
    %c0_53 = arith.constant 0 : index
    %68 = vector.load %arg15[%c0_52, %c0_53] : memref<128x128xf32, #tpu.memory_space<vmem>>, vector<124x128xf32>
    tpu.vector_store %arg15[%c0_52, %c0_53], %65 {strides = array<i32>} : memref<128x128xf32, #tpu.memory_space<vmem>>, vector<124x128xf32>,
    %c0_54 = arith.constant 0 : index
    %c0_55 = arith.constant 0 : index
    %69 = tpu.strided_load %arg15[%c0_54, %c0_55] {strides = array<i32: 2, 1>} : memref<128x128xf32, #tpu.memory_space<vmem>>, vector<64x128xf32>
    %c1_56 = arith.constant 1 : index
    %c0_57 = arith.constant 0 : index
    %70 = tpu.strided_load %arg15[%c1_56, %c0_57] {strides = array<i32: 2, 1>} : memref<128x128xf32, #tpu.memory_space<vmem>>, vector<64x128xf32>
    %71 = arith.maximumf %69, %70 : vector<64x128xf32>
    %c0_58 = arith.constant 0 : index
    %c0_59 = arith.constant 0 : index
    %72 = vector.load %arg5[%c0_58, %c0_59] : memref<1x128xf32, #tpu.memory_space<vmem>>, vector<1x128xf32>
    %73 = vector.broadcast %72 : vector<1x128xf32> to vector<64x128xf32>
    %74 = arith.addf %71, %73 : vector<64x128xf32>
    %cst_60 = arith.constant 0.000000e+00 : f32
    %75 = vector.broadcast %cst_60 : f32 to vector<64x128xf32>
    %76 = arith.maximumf %74, %75 : vector<64x128xf32>
    %c0_61 = arith.constant 0 : index
    %c0_62 = arith.constant 0 : index
    %77 = vector.load %arg16[%c0_61, %c0_62] : memref<64x128xf32, #tpu.memory_space<vmem>>, vector<64x128xf32>
    tpu.vector_store %arg16[%c0_61, %c0_62], %76 {strides = array<i32>} : memref<64x128xf32, #tpu.memory_space<vmem>>, vector<64x128xf32>,
    %c0_63 = arith.constant 0 : index
    %c0_64 = arith.constant 0 : index
    %78 = tpu.strided_load %arg16[%c0_63, %c0_64] {strides = array<i32: 8, 1>} : memref<64x128xf32, #tpu.memory_space<vmem>>, vector<8x128xf32>
    %79 = arith.truncf %78 : vector<8x128xf32> to vector<8x128xbf16>
    %c0_65 = arith.constant 0 : index
    %c0_66 = arith.constant 0 : index
    %80 = vector.load %arg6[%c0_65, %c0_66] : memref<640x128xbf16, #tpu.memory_space<vmem>>, vector<128x128xbf16>
    %cst_67 = arith.constant dense<0.000000e+00> : vector<8x128xf32>
    %81 = tpu.matmul %79, %80, %cst_67 {dimension_numbers = #tpu.dot_dimension_numbers<[1], [0], [0], [1], [0, 0, 1, 1], [], []>} : vector<8x128xbf16>, vector<128x128xbf16>, vector<8x128xf32> -> vector<8x128xf32>
    %c1_68 = arith.constant 1 : index
    %c0_69 = arith.constant 0 : index
    %82 = tpu.strided_load %arg16[%c1_68, %c0_69] {strides = array<i32: 8, 1>} : memref<64x128xf32, #tpu.memory_space<vmem>>, vector<8x128xf32>
    %83 = arith.truncf %82 : vector<8x128xf32> to vector<8x128xbf16>
    %c128_70 = arith.constant 128 : index
    %c0_71 = arith.constant 0 : index
    %84 = vector.load %arg6[%c128_70, %c0_71] : memref<640x128xbf16, #tpu.memory_space<vmem>>, vector<128x128xbf16>
    %cst_72 = arith.constant dense<0.000000e+00> : vector<8x128xf32>
    %85 = tpu.matmul %83, %84, %cst_72 {dimension_numbers = #tpu.dot_dimension_numbers<[1], [0], [0], [1], [0, 0, 1, 1], [], []>} : vector<8x128xbf16>, vector<128x128xbf16>, vector<8x128xf32> -> vector<8x128xf32>
    %86 = arith.addf %81, %85 : vector<8x128xf32>
    %c2_73 = arith.constant 2 : index
    %c0_74 = arith.constant 0 : index
    %87 = tpu.strided_load %arg16[%c2_73, %c0_74] {strides = array<i32: 8, 1>} : memref<64x128xf32, #tpu.memory_space<vmem>>, vector<8x128xf32>
    %88 = arith.truncf %87 : vector<8x128xf32> to vector<8x128xbf16>
    %c256_75 = arith.constant 256 : index
    %c0_76 = arith.constant 0 : index
    %89 = vector.load %arg6[%c256_75, %c0_76] : memref<640x128xbf16, #tpu.memory_space<vmem>>, vector<128x128xbf16>
    %cst_77 = arith.constant dense<0.000000e+00> : vector<8x128xf32>
    %90 = tpu.matmul %88, %89, %cst_77 {dimension_numbers = #tpu.dot_dimension_numbers<[1], [0], [0], [1], [0, 0, 1, 1], [], []>} : vector<8x128xbf16>, vector<128x128xbf16>, vector<8x128xf32> -> vector<8x128xf32>
    %91 = arith.addf %86, %90 : vector<8x128xf32>
    %c3_78 = arith.constant 3 : index
    %c0_79 = arith.constant 0 : index
    %92 = tpu.strided_load %arg16[%c3_78, %c0_79] {strides = array<i32: 8, 1>} : memref<64x128xf32, #tpu.memory_space<vmem>>, vector<8x128xf32>
    %93 = arith.truncf %92 : vector<8x128xf32> to vector<8x128xbf16>
    %c384_80 = arith.constant 384 : index
    %c0_81 = arith.constant 0 : index
    %94 = vector.load %arg6[%c384_80, %c0_81] : memref<640x128xbf16, #tpu.memory_space<vmem>>, vector<128x128xbf16>
    %cst_82 = arith.constant dense<0.000000e+00> : vector<8x128xf32>
    %95 = tpu.matmul %93, %94, %cst_82 {dimension_numbers = #tpu.dot_dimension_numbers<[1], [0], [0], [1], [0, 0, 1, 1], [], []>} : vector<8x128xbf16>, vector<128x128xbf16>, vector<8x128xf32> -> vector<8x128xf32>
    %96 = arith.addf %91, %95 : vector<8x128xf32>
    %c4_83 = arith.constant 4 : index
    %c0_84 = arith.constant 0 : index
    %97 = tpu.strided_load %arg16[%c4_83, %c0_84] {strides = array<i32: 8, 1>} : memref<64x128xf32, #tpu.memory_space<vmem>>, vector<8x128xf32>
    %98 = arith.truncf %97 : vector<8x128xf32> to vector<8x128xbf16>
    %c512_85 = arith.constant 512 : index
    %c0_86 = arith.constant 0 : index
    %99 = vector.load %arg6[%c512_85, %c0_86] : memref<640x128xbf16, #tpu.memory_space<vmem>>, vector<128x128xbf16>
    %cst_87 = arith.constant dense<0.000000e+00> : vector<8x128xf32>
    %100 = tpu.matmul %98, %99, %cst_87 {dimension_numbers = #tpu.dot_dimension_numbers<[1], [0], [0], [1], [0, 0, 1, 1], [], []>} : vector<8x128xbf16>, vector<128x128xbf16>, vector<8x128xf32> -> vector<8x128xf32>
    %101 = arith.addf %96, %100 : vector<8x128xf32>
    %c0_88 = arith.constant 0 : index
    %c0_89 = arith.constant 0 : index
    %102 = vector.load %arg7[%c0_88, %c0_89] : memref<1x128xf32, #tpu.memory_space<vmem>>, vector<1x128xf32>
    %103 = vector.broadcast %102 : vector<1x128xf32> to vector<8x128xf32>
    %104 = arith.addf %101, %103 : vector<8x128xf32>
    %cst_90 = arith.constant 0.000000e+00 : f32
    %105 = vector.broadcast %cst_90 : f32 to vector<8x128xf32>
    %106 = arith.maximumf %104, %105 : vector<8x128xf32>
    %107 = arith.truncf %106 : vector<8x128xf32> to vector<8x128xbf16>
    %c0_91 = arith.constant 0 : index
    %c0_92 = arith.constant 0 : index
    %108 = vector.load %arg8[%c0_91, %c0_92] : memref<128x128xbf16, #tpu.memory_space<vmem>>, vector<128x128xbf16>
    %cst_93 = arith.constant dense<0.000000e+00> : vector<8x128xf32>
    %109 = tpu.matmul %107, %108, %cst_93 {dimension_numbers = #tpu.dot_dimension_numbers<[1], [0], [0], [1], [0, 0, 1, 1], [], []>} : vector<8x128xbf16>, vector<128x128xbf16>, vector<8x128xf32> -> vector<8x128xf32>
    %c0_94 = arith.constant 0 : index
    %c0_95 = arith.constant 0 : index
    %110 = vector.load %arg9[%c0_94, %c0_95] : memref<1x128xf32, #tpu.memory_space<vmem>>, vector<1x128xf32>
    %111 = vector.broadcast %110 : vector<1x128xf32> to vector<8x128xf32>
    %112 = arith.addf %109, %111 : vector<8x128xf32>
    %cst_96 = arith.constant 0.000000e+00 : f32
    %113 = vector.broadcast %cst_96 : f32 to vector<8x128xf32>
    %114 = arith.maximumf %112, %113 : vector<8x128xf32>
    %115 = arith.truncf %114 : vector<8x128xf32> to vector<8x128xbf16>
    %c0_97 = arith.constant 0 : index
    %c0_98 = arith.constant 0 : index
    %116 = vector.load %arg10[%c0_97, %c0_98] : memref<128x128xbf16, #tpu.memory_space<vmem>>, vector<128x128xbf16>
    %cst_99 = arith.constant dense<0.000000e+00> : vector<8x128xf32>
    %117 = tpu.matmul %115, %116, %cst_99 {dimension_numbers = #tpu.dot_dimension_numbers<[1], [0], [0], [1], [0, 0, 1, 1], [], []>} : vector<8x128xbf16>, vector<128x128xbf16>, vector<8x128xf32> -> vector<8x128xf32>
    %c0_100 = arith.constant 0 : index
    %c0_101 = arith.constant 0 : index
    %118 = vector.load %arg11[%c0_100, %c0_101] : memref<1x128xf32, #tpu.memory_space<vmem>>, vector<1x128xf32>
    %119 = vector.broadcast %118 : vector<1x128xf32> to vector<8x128xf32>
    %120 = arith.addf %117, %119 : vector<8x128xf32>
    %c0_102 = arith.constant 0 : index
    %c0_103 = arith.constant 0 : index
    %121 = vector.load %arg12[%c0_102, %c0_103] : memref<8x128xf32, #tpu.memory_space<vmem>>, vector<8x128xf32>
    tpu.vector_store %arg12[%c0_102, %c0_103], %120 {strides = array<i32>} : memref<8x128xf32, #tpu.memory_space<vmem>>, vector<8x128xf32>,
    return
  }
  func.func @transform_0(%arg0: i32) -> (i32, i32) {
    %c0_i32 = arith.constant 0 : i32
    %c0_i32_0 = arith.constant 0 : i32
    return %arg0, %c0_i32 : i32, i32
  }
  func.func @transform_1(%arg0: i32) -> (i32, i32) {
    %c0_i32 = arith.constant 0 : i32
    %c0_i32_0 = arith.constant 0 : i32
    %c0_i32_1 = arith.constant 0 : i32
    return %c0_i32, %c0_i32_0 : i32, i32
  }
  func.func @transform_2(%arg0: i32) -> (i32, i32) {
    %c0_i32 = arith.constant 0 : i32
    %c0_i32_0 = arith.constant 0 : i32
    %c0_i32_1 = arith.constant 0 : i32
    return %c0_i32, %c0_i32_0 : i32, i32
  }
  func.func @transform_3(%arg0: i32) -> (i32, i32) {
    %c0_i32 = arith.constant 0 : i32
    %c0_i32_0 = arith.constant 0 : i32
    %c0_i32_1 = arith.constant 0 : i32
    return %c0_i32, %c0_i32_0 : i32, i32
  }
  func.func @transform_4(%arg0: i32) -> (i32, i32) {
    %c0_i32 = arith.constant 0 : i32
    %c0_i32_0 = arith.constant 0 : i32
    %c0_i32_1 = arith.constant 0 : i32
    return %c0_i32, %c0_i32_0 : i32, i32
  }
  func.func @transform_5(%arg0: i32) -> (i32, i32) {
    %c0_i32 = arith.constant 0 : i32
    %c0_i32_0 = arith.constant 0 : i32
    %c0_i32_1 = arith.constant 0 : i32
    return %c0_i32, %c0_i32_0 : i32, i32
  }
  func.func @transform_6(%arg0: i32) -> (i32, i32) {
    %c0_i32 = arith.constant 0 : i32
    %c0_i32_0 = arith.constant 0 : i32
    %c0_i32_1 = arith.constant 0 : i32
    return %c0_i32, %c0_i32_0 : i32, i32
  }
  func.func @transform_7(%arg0: i32) -> (i32, i32) {
    %c0_i32 = arith.constant 0 : i32
    %c0_i32_0 = arith.constant 0 : i32
    %c0_i32_1 = arith.constant 0 : i32
    return %c0_i32, %c0_i32_0 : i32, i32
  }
  func.func @transform_8(%arg0: i32) -> (i32, i32) {
    %c0_i32 = arith.constant 0 : i32
    %c0_i32_0 = arith.constant 0 : i32
    %c0_i32_1 = arith.constant 0 : i32
    return %c0_i32, %c0_i32_0 : i32, i32
  }
  func.func @transform_9(%arg0: i32) -> (i32, i32) {
    %c0_i32 = arith.constant 0 : i32
    %c0_i32_0 = arith.constant 0 : i32
    %c0_i32_1 = arith.constant 0 : i32
    return %c0_i32, %c0_i32_0 : i32, i32
  }
  func.func @transform_10(%arg0: i32) -> (i32, i32) {
    %c0_i32 = arith.constant 0 : i32
    %c0_i32_0 = arith.constant 0 : i32
    %c0_i32_1 = arith.constant 0 : i32
    return %c0_i32, %c0_i32_0 : i32, i32
  }
  func.func @transform_11(%arg0: i32) -> (i32, i32) {
    %c0_i32 = arith.constant 0 : i32
    %c0_i32_0 = arith.constant 0 : i32
    return %arg0, %c0_i32 : i32, i32
  }
}

</mosaic_0001>

<bundles_post_ra>
// kernel: cnn_forward.1
= control target key start
LH: loop header
LB: loop body
LE: loop exit
PB: predicated region body
PF: predicated region fallthrough
CT: control target
= control target key end

     0   :  { %s8021_s0 = inlined_call_operand.vmem [shape: f32[512,96], index: 0, kind: input, shape index: {}]   ;;  %s8022_s1 = inlined_call_operand.vmem [shape: bf16[480,256], index: 1, kind: input, shape index: {}]   ;;  %s8023_s2 = inlined_call_operand.vmem [shape: f32[1,128], index: 2, kind: input, shape index: {}]   ;;  %s8024_s3 = inlined_call_operand.vmem [shape: bf16[640,256], index: 3, kind: input, shape index: {}]   ;;  %s8025_s4 = inlined_call_operand.vmem [shape: f32[1,128], index: 4, kind: input, shape index: {}]   ;;  %s8026_s5 = inlined_call_operand.vmem [shape: bf16[640,128], index: 5, kind: input, shape index: {}]   ;;  %s8027_s6 = inlined_call_operand.vmem [shape: f32[1,128], index: 6, kind: input, shape index: {}]   ;;  %s8028_s7 = inlined_call_operand.vmem [shape: bf16[128,128], index: 7, kind: input, shape index: {}]   ;;  %s8029_s8 = inlined_call_operand.vmem [shape: f32[1,128], index: 8, kind: input, shape index: {}]   ;;  %s8030_s9 = inlined_call_operand.vmem [shape: bf16[128,128], index: 9, kind: input, shape index: {}]   ;;  %s8031_s10 = inlined_call_operand.vmem [shape: f32[1,128], index: 10, kind: input, shape index: {}]   ;;  %s8032_s11 = inlined_call_operand.hbm [shape: f32[16,128], index: 11, kind: output, shape index: {}]  }
   0x1   :  { %8033 = sst [smem:[#allocation61_spill]] %s8021_s0 }
   0x2   :  { %8034 = sst [smem:[#allocation62_spill]] %s8022_s1 }
   0x3   :  { %16 = vsyncpa [#allocation7], 0 }
   0x4   :  { %18 = vsyncpa [#allocation7 + $0x1], 0  ;;  %s5775_s17 = smov 0   ;;  %s5777_s18 = smov 0  }
   0x5   :  { %s5779_s19 = smov 0   ;;  %s5781_s20 = smov 0  }
   0x6 LB: > { %s5796_s21 = sadd.s32 4294967295, %s5712_s20   ;;  %s4452_s22 = sadd.s32 4294967294, %s5712_s20   ;;  %s5712_s20 = sphi %s5781_s20, %s8208_s20   ;;  %s5708_s19 = sphi %s5779_s19, %s8207_s19   ;;  %s5704_s18 = sphi %s5777_s18, %s8206_s18   ;;  %s5700_s17 = sphi %s5775_s17, %s8205_s17  }
   0x7   : > { %s5800_s23 = sadd.s32 1, %s5712_s20   ;;  %s267_s24 = sadd.s32 1, %s5708_s19 }
   0x8   : > { %s264_s25 = ssub.s32 %s5712_s20, %s5800_s23  ;;  %p277_p0 = scmp.ne.s32.totalorder %s5708_s19, %s5704_s18 }
   0x9   : > { %p265_p1 = scmp.eq.s32.totalorder %s264_s25, 0  ;;  %p278_p2 = scmp.eq.s32.totalorder %s5796_s21, 1 }
   0xa   : > { %p283_p3 = scmp.ne.s32.totalorder %s5704_s18, %s5700_s17  ;;  %p284_p4 = scmp.eq.s32.totalorder %s4452_s22, 1 }
   0xb   : > { %s5811_s26 = scalar_select %p265_p1, %s5708_s19, %s267_s24  }
   0xc   : > { %p5813_p5 = por %p278_p2, %p277_p0  ;;  %p5817_p6 = por %p284_p4, %p283_p3 }
   0xd   : > { %8035 = sst [smem:[#allocation9_spill]] %s5811_s26  ;;  %p4455_p7 = scmp.ge.s32.totalorder %s5712_s20, 1 }
   0xe   : > { %p341_p8 = scmp.lt.s32.totalorder %s5712_s20, 3 }
  0x10   : > { %p342_p9 = pnand %p4455_p7, %p341_p8 }
  0x12   : > { %345 = sbr.rel (%p342_p9) target bundleno = 1848 (0x738), region = 64 }
  0x17   : > { %s8038_s1 = sld [smem:[#allocation62_spill]]  ;;  %s4457_s24 = sshll.u32 %s5796_s21, 5  ;;  %vm568_vm0 = vcmask 785408  }
  0x18   : > { %p382_p10 = scmp.lt.s32.totalorder %s4457_s24, 63  ;;  %s8039_s0 = sld [smem:[#allocation61_spill]] }
  0x19   : > { %s378_s26 = sand.u32 1, %s5704_s18   ;;  %s5670_s12 = scalar_lea.hbm %s8032_s11, 16 }
  0x1a   : > { %s8210_s24 = smov (!%p382_p10, %s4457_s24), 63  ;;  %s4456_s29 = sshll.u32 %s378_s26, 3 }
  0x1b   : > { %s4458_s16 = sshll.u32 %s8210_s24, 3  ;;  %s5404_s24 = sshll.u32 %s5796_s21, 3 }
  0x1c   : > { %s4388_s13 = scalar_lea.hbm %s8032_s11, %s5404_s24  ;;  %s380_s15 = scalar_lea.vmem [#allocation6], %s4456_s29 }
  0x1d   : > { %v4501_v0 = vld [vmem:[%s8038_s1 + $0xb0] sm:$0xf]  ;;  %v5430_v1 = vld [vmem:[%s8038_s1 + $0xb4] sm:$0xf0]  ;;  %v5429_v2 = vld [vmem:[%s8038_s1 + $0xb4] sm:$0xf] }
  0x1e   : > { %v4502_v3 = vor.u32 %v5430_v1, %v4501_v0  ;;  %v4503_v4 = vld [vmem:[%s8038_s1 + $0xb8] sm:$0xf0]  ;;  %v4581_v5 = vld [vmem:[%s8038_s1 + $0x50] sm:$0xf]  ;;  %v5418_v6 = vld [vmem:[%s8038_s1 + $0x54] sm:$0xf0]  ;;  %s5983_s25 = scalar_lea.vmem %s8039_s0, %s4458_s16 }
  0x1f   : > { %v4506_v7 = vor.u32 %v5429_v2, %v4503_v4  ;;  %v4582_v8 = vor.u32 %v5418_v6, %v4581_v5  ;;  %v5417_v9 = vld [vmem:[%s8038_s1 + $0x54] sm:$0xf]  ;;  %v4583_v10 = vld [vmem:[%s8038_s1 + $0x58] sm:$0xf0]  ;;  %v4493_v11 = vld [vmem:[%s8038_s1 + $0xa0] sm:$0xf] }
  0x20   : > { %619 = vmatpush.bf16.msra.mxu0 %v4502_v3  ;;  %v4586_v12 = vor.u32 %v5417_v9, %v4583_v10  ;;  %v5428_v13 = vld [vmem:[%s8038_s1 + $0xa4] sm:$0xf0]  ;;  %v5427_v14 = vld [vmem:[%s8038_s1 + $0xa4] sm:$0xf]  ;;  %v4495_v15 = vld [vmem:[%s8038_s1 + $0xa8] sm:$0xf0] }
  0x21   : > { %708 = vmatpush.bf16.msra.mxu1 %v4506_v7  ;;  %905 = vmatpush.bf16.msra.mxu2 %v4582_v8  ;;  %v4494_v16 = vor.u32 %v5428_v13, %v4493_v11  ;;  %v4498_v17 = vor.u32 %v5427_v14, %v4495_v15  ;;  %v4573_v18 = vld [vmem:[%s8038_s1 + $0x40] sm:$0xf]  ;;  %v5416_v19 = vld [vmem:[%s8038_s1 + $0x44] sm:$0xf0]  ;;  %v5415_v20 = vld [vmem:[%s8038_s1 + $0x44] sm:$0xf] }
  0x22   : > { %994 = vmatpush.bf16.msra.mxu3 %v4586_v12  ;;  %v4574_v21 = vor.u32 %v5416_v19, %v4573_v18  ;;  %v4575_v22 = vld [vmem:[%s8038_s1 + $0x48] sm:$0xf0]  ;;  %v4485_v23 = vld [vmem:[%s8038_s1 + $0x90] sm:$0xf]  ;;  %v5426_v24 = vld [vmem:[%s8038_s1 + $0x94] sm:$0xf0] }
  0x23   : > { %v4578_v25 = vor.u32 %v5415_v20, %v4575_v22  ;;  %v5425_v26 = vld [vmem:[%s8038_s1 + $0x94] sm:$0xf]  ;;  %v4487_v27 = vld [vmem:[%s8038_s1 + $0x98] sm:$0xf0]  ;;  %v4565_v28 = vld [vmem:[%s8038_s1 + $0x30] sm:$0xf]  ;;  %v4486_v29 = vor.u32 %v5426_v24, %v4485_v23 }
  0x24   : > { %620 = vmatpush.bf16.msra.mxu0 %v4494_v16  ;;  %v5414_v30 = vld [vmem:[%s8038_s1 + $0x34] sm:$0xf0]  ;;  %v5413_v31 = vld [vmem:[%s8038_s1 + $0x34] sm:$0xf]  ;;  %v4567_v32 = vld [vmem:[%s8038_s1 + $0x38] sm:$0xf0]  ;;  %v4490_v33 = vor.u32 %v5425_v26, %v4487_v27 }
  0x25   : > { %709 = vmatpush.bf16.msra.mxu1 %v4498_v17  ;;  %906 = vmatpush.bf16.msra.mxu2 %v4574_v21  ;;  %v4566_v34 = vor.u32 %v5414_v30, %v4565_v28  ;;  %v4477_v35 = vld [vmem:[%s8038_s1 + $0x80] sm:$0xf]  ;;  %v5424_v36 = vld [vmem:[%s8038_s1 + $0x84] sm:$0xf0]  ;;  %v5423_v37 = vld [vmem:[%s8038_s1 + $0x84] sm:$0xf]  ;;  %v4570_v38 = vor.u32 %v5413_v31, %v4567_v32 }
  0x26   : > { %995 = vmatpush.bf16.msra.mxu3 %v4578_v25  ;;  %v4479_v39 = vld [vmem:[%s8038_s1 + $0x88] sm:$0xf0]  ;;  %v4557_v40 = vld [vmem:[%s8038_s1 + $0x20] sm:$0xf]  ;;  %v5412_v41 = vld [vmem:[%s8038_s1 + $0x24] sm:$0xf0]  ;;  %v4478_v44 = vor.u32 %v5424_v36, %v4477_v35 }
  0x27   : > { %v5411_v42 = vld [vmem:[%s8038_s1 + $0x24] sm:$0xf]  ;;  %v4559_v43 = vld [vmem:[%s8038_s1 + $0x28] sm:$0xf0]  ;;  %v4469_v45 = vld [vmem:[%s8038_s1 + $0x70] sm:$0xf]  ;;  %v4482_v46 = vor.u32 %v5423_v37, %v4479_v39  ;;  %v4558_v47 = vor.u32 %v5412_v41, %v4557_v40 }
  0x28   : > { %621 = vmatpush.bf16.msra.mxu0 %v4486_v29  ;;  %v5422_v48 = vld [vmem:[%s8038_s1 + $0x74] sm:$0xf0]  ;;  %v5421_v49 = vld [vmem:[%s8038_s1 + $0x74] sm:$0xf]  ;;  %v4471_v50 = vld [vmem:[%s8038_s1 + $0x78] sm:$0xf0]  ;;  %v4562_v51 = vor.u32 %v5411_v42, %v4559_v43 }
  0x29   : > { %710 = vmatpush.bf16.msra.mxu1 %v4490_v33  ;;  %907 = vmatpush.bf16.msra.mxu2 %v4566_v34  ;;  %v4549_v52 = vld [vmem:[%s8038_s1 + $0x10] sm:$0xf]  ;;  %v5410_v53 = vld [vmem:[%s8038_s1 + $0x14] sm:$0xf0]  ;;  %v5409_v54 = vld [vmem:[%s8038_s1 + $0x14] sm:$0xf]  ;;  %v4470_v58 = vor.u32 %v5422_v48, %v4469_v45  ;;  %v4474_v63 = vor.u32 %v5421_v49, %v4471_v50 }
  0x2a   : > { %996 = vmatpush.bf16.msra.mxu3 %v4570_v38  ;;  %v4551_v55 = vld [vmem:[%s8038_s1 + $0x18] sm:$0xf0]  ;;  %v4461_v56 = vld [vmem:[%s8038_s1 + $0x60] sm:$0xf]  ;;  %v5420_v57 = vld [vmem:[%s8038_s1 + $0x64] sm:$0xf0]  ;;  %v4550_v0 = vor.u32 %v5410_v53, %v4549_v52 }
  0x2b   : > { %v5419_v59 = vld [vmem:[%s8038_s1 + $0x64] sm:$0xf]  ;;  %v4463_v60 = vld [vmem:[%s8038_s1 + $0x68] sm:$0xf0]  ;;  %v4541_v61 = vld [vmem:[%s8038_s1] sm:$0xf]  ;;  %v4554_v5 = vor.u32 %v5409_v54, %v4551_v55  ;;  %v4462_v8 = vor.u32 %v5420_v57, %v4461_v56 }
  0x2c   : > { %622 = vmatpush.bf16.msra.mxu0 %v4478_v44  ;;  %v5408_v62 = vld [vmem:[%s8038_s1 + $0x4] sm:$0xf0]  ;;  %v5407_v1 = vld [vmem:[%s8038_s1 + $0x4] sm:$0xf]  ;;  %v4543_v2 = vld [vmem:[%s8038_s1 + $0x8] sm:$0xf0]  ;;  %v4466_v9 = vor.u32 %v5419_v59, %v4463_v60 }
  0x2d   : > { %711 = vmatpush.bf16.msra.mxu1 %v4482_v46  ;;  %908 = vmatpush.bf16.msra.mxu2 %v4558_v47  ;;  %v4661_v3 = vld [vmem:[%s8038_s1 + $0x110] sm:$0xf]  ;;  %v5442_v4 = vld [vmem:[%s8038_s1 + $0x114] sm:$0xf0]  ;;  %v5441_v6 = vld [vmem:[%s8038_s1 + $0x114] sm:$0xf]  ;;  %v4542_v10 = vor.u32 %v5408_v62, %v4541_v61  ;;  %v4546_v11 = vor.u32 %v5407_v1, %v4543_v2 }
  0x2e   : > { %997 = vmatpush.bf16.msra.mxu3 %v4562_v51  ;;  %v4663_v7 = vld [vmem:[%s8038_s1 + $0x118] sm:$0xf0]  ;;  %v4662_v12 = vor.u32 %v5442_v4, %v4661_v3  ;;  %v448_v14 = vld [vmem:[%s5983_s25 + $0x1] sm:$0xff]  ;;  %v449_v15 = vld [vmem:[%s5983_s25 + $0x9] sm:$0xff]  ;;  %s4390_s16 = sshll.u32 %s380_s15, 4  ;;  %s4392_s22 = sshll.u32 %s4388_s13, 4  ;;  %s4391_s16 = int_to_ptr.vmem [resolvable:$true] %s4390_s16  ;;  %s4393_s22 = int_to_ptr.hbm [resolvable:$true] %s4392_s22 }
  0x2f   : > { %v4666_v13 = vor.u32 %v5441_v6, %v4663_v7  ;;  %v388_v16 = vld [vmem:[%s5983_s25] sm:$0xff]  ;;  %v480_v17 = vpack.c.bf16 %v449_v15, %v448_v14  ;;  %v389_v18 = vld [vmem:[%s5983_s25 + $0x8] sm:$0xff]  ;;  %v450_v26 = vld [vmem:[%s5983_s25 + $0x11] sm:$0xff]  ;;  %s4378_s0 = scalar_lea.sflag [#allocation7], %s378_s26  ;;  %s5664_s21 = sshra.s32 %s4393_s22, 4  ;;  %s5665_s21 = int_to_ptr.hbm [resolvable:$true] %s5664_s21 }
  0x30   : > { %623 = vmatpush.bf16.msra.mxu0 %v4470_v58  ;;  %v420_v19 = vpack.c.bf16 %v389_v18, %v388_v16  ;;  %v4653_v20 = vld [vmem:[%s8038_s1 + $0x100] sm:$0xf]  ;;  %v5440_v21 = vld [vmem:[%s8038_s1 + $0x104] sm:$0xf0]  ;;  %v5439_v22 = vld [vmem:[%s8038_s1 + $0x104] sm:$0xf]  ;;  %p5671_p0 = scmp.lt.s32.totalorder %s5665_s21, %s8032_s11 }
  0x31   : > { %712 = vmatpush.bf16.msra.mxu1 %v4474_v63  ;;  %909 = vmatpush.bf16.msra.mxu2 %v4550_v0  ;;  %v4654_v23 = vor.u32 %v5440_v21, %v4653_v20  ;;  %v4655_v24 = vld [vmem:[%s8038_s1 + $0x108] sm:$0xf0]  ;;  %v451_v27 = vld [vmem:[%s5983_s25 + $0x19] sm:$0xff]  ;;  %v390_v28 = vld [vmem:[%s5983_s25 + $0x10] sm:$0xff] }
  0x32   : > { %998 = vmatpush.bf16.msra.mxu3 %v4554_v5  ;;  %v4658_v25 = vor.u32 %v5439_v22, %v4655_v24  ;;  %v391_v29 = vld [vmem:[%s5983_s25 + $0x18] sm:$0xff]  ;;  %v481_v30 = vpack.c.bf16 %v451_v27, %v450_v26  ;;  %v452_v32 = vld [vmem:[%s5983_s25 + $0x21] sm:$0xff]  ;;  %v453_v33 = vld [vmem:[%s5983_s25 + $0x29] sm:$0xff] }
  0x33   : > { %v421_v31 = vpack.c.bf16 %v391_v29, %v390_v28  ;;  %v392_v34 = vld [vmem:[%s5983_s25 + $0x20] sm:$0xff]  ;;  %v393_v35 = vld [vmem:[%s5983_s25 + $0x28] sm:$0xff]  ;;  %v482_v36 = vpack.c.bf16 %v453_v33, %v452_v32  ;;  %v454_v38 = vld [vmem:[%s5983_s25 + $0x31] sm:$0xff] }
  0x34   : > { %624 = vmatpush.bf16.msra.mxu0 %v4462_v8  ;;  %v422_v37 = vpack.c.bf16 %v393_v35, %v392_v34  ;;  %v455_v39 = vld [vmem:[%s5983_s25 + $0x39] sm:$0xff]  ;;  %v394_v40 = vld [vmem:[%s5983_s25 + $0x30] sm:$0xff]  ;;  %v456_v50 = vld [vmem:[%s5983_s25 + $0x41] sm:$0xff] }
  0x35   : > { %713 = vmatpush.bf16.msra.mxu1 %v4466_v9  ;;  %910 = vmatpush.bf16.msra.mxu2 %v4542_v10  ;;  %v395_v41 = vld [vmem:[%s5983_s25 + $0x38] sm:$0xff]  ;;  %v483_v42 = vpack.c.bf16 %v455_v39, %v454_v38  ;;  %v4645_v44 = vld [vmem:[%s8038_s1 + $0xf0] sm:$0xf]  ;;  %v5437_v46 = vld [vmem:[%s8038_s1 + $0xf4] sm:$0xf] }
  0x36   : > { %999 = vmatpush.bf16.msra.mxu3 %v4546_v11  ;;  %v423_v43 = vpack.c.bf16 %v395_v41, %v394_v40  ;;  %v5438_v45 = vld [vmem:[%s8038_s1 + $0xf4] sm:$0xf0]  ;;  %v4647_v48 = vld [vmem:[%s8038_s1 + $0xf8] sm:$0xf0]  ;;  %v457_v51 = vld [vmem:[%s5983_s25 + $0x49] sm:$0xff] }
  0x37   : > { %4507 = vmatmul.msk.bf16.vlgmr.msra.gmra.mxu0 %vm568_vm0, %v480_v17  ;;  %v4646_v47 = vor.u32 %v5438_v45, %v4645_v44  ;;  %v4650_v49 = vor.u32 %v5437_v46, %v4647_v48  ;;  %v396_v52 = vld [vmem:[%s5983_s25 + $0x40] sm:$0xff]  ;;  %v397_v53 = vld [vmem:[%s5983_s25 + $0x48] sm:$0xff]  ;;  %v484_v54 = vpack.c.bf16 %v457_v51, %v456_v50  ;;  %v458_v56 = vld [vmem:[%s5983_s25 + $0x51] sm:$0xff] }
  0x38   : > { %1251 = vmatpush.bf16.msrb.mxu0 %v4662_v12  ;;  %4523 = vmatmul.msk.bf16.vlgmr.msra.gmra.mxu1 %vm568_vm0, %v480_v17  ;;  %v424_v55 = vpack.c.bf16 %v397_v53, %v396_v52  ;;  %v459_v57 = vld [vmem:[%s5983_s25 + $0x59] sm:$0xff]  ;;  %v398_v58 = vld [vmem:[%s5983_s25 + $0x50] sm:$0xff]  ;;  %v460_v62 = vld [vmem:[%s5983_s25 + $0x61] sm:$0xff] }
  0x39   : > { %1340 = vmatpush.bf16.msrb.mxu1 %v4666_v13  ;;  %4587 = vmatmul.msk.bf16.vlgmr.msra.gmra.mxu2 %vm568_vm0, %v420_v19  ;;  %v399_v59 = vld [vmem:[%s5983_s25 + $0x58] sm:$0xff]  ;;  %v485_v60 = vpack.c.bf16 %v459_v57, %v458_v56  ;;  %v461_v63 = vld [vmem:[%s5983_s25 + $0x69] sm:$0xff]  ;;  %v400_v0 = vld [vmem:[%s5983_s25 + $0x60] sm:$0xff] }
  0x3a   : > { %4603 = vmatmul.msk.bf16.vlgmr.msra.gmra.mxu3 %vm568_vm0, %v420_v19  ;;  %v425_v61 = vpack.c.bf16 %v399_v59, %v398_v58  ;;  %v401_v1 = vld [vmem:[%s5983_s25 + $0x68] sm:$0xff]  ;;  %v486_v2 = vpack.c.bf16 %v461_v63, %v460_v62  ;;  %v4637_v4 = vld [vmem:[%s8038_s1 + $0xe0] sm:$0xf]  ;;  %v5435_v6 = vld [vmem:[%s8038_s1 + $0xe4] sm:$0xf] }
  0x3b   : > { %v426_v3 = vpack.c.bf16 %v401_v1, %v400_v0  ;;  %v5436_v5 = vld [vmem:[%s8038_s1 + $0xe4] sm:$0xf0]  ;;  %v4639_v8 = vld [vmem:[%s8038_s1 + $0xe8] sm:$0xf0]  ;;  %v462_v10 = vld [vmem:[%s5983_s25 + $0x71] sm:$0xff] }
  0x3c   : > { %1252 = vmatpush.bf16.msrb.mxu0 %v4654_v23  ;;  %v4638_v7 = vor.u32 %v5436_v5, %v4637_v4  ;;  %v4642_v9 = vor.u32 %v5435_v6, %v4639_v8  ;;  %v463_v11 = vld [vmem:[%s5983_s25 + $0x79] sm:$0xff]  ;;  %v402_v12 = vld [vmem:[%s5983_s25 + $0x70] sm:$0xff]  ;;  %v464_v16 = vld [vmem:[%s5983_s25 + $0x81] sm:$0xff] }
  0x3d   : > { %1341 = vmatpush.bf16.msrb.mxu1 %v4658_v25  ;;  %v403_v13 = vld [vmem:[%s5983_s25 + $0x78] sm:$0xff]  ;;  %v487_v14 = vpack.c.bf16 %v463_v11, %v462_v10  ;;  %v465_v17 = vld [vmem:[%s5983_s25 + $0x89] sm:$0xff]  ;;  %v404_v18 = vld [vmem:[%s5983_s25 + $0x80] sm:$0xff] }
  0x3e   : > { %v427_v15 = vpack.c.bf16 %v403_v13, %v402_v12  ;;  %v405_v19 = vld [vmem:[%s5983_s25 + $0x88] sm:$0xff]  ;;  %v488_v20 = vpack.c.bf16 %v465_v17, %v464_v16  ;;  %v406_v32 = vld [vmem:[%s5983_s25 + $0x90] sm:$0xff]  ;;  %v407_v33 = vld [vmem:[%s5983_s25 + $0x98] sm:$0xff] }
  0x3f   : > { %v428_v22 = vpack.c.bf16 %v405_v19, %v404_v18  ;;  %v429_v39 = vpack.c.bf16 %v407_v33, %v406_v32  ;;  %v5433_v44 = vld [vmem:[%s8038_s1 + $0xd4] sm:$0xf]  ;;  %v4631_v46 = vld [vmem:[%s8038_s1 + $0xd8] sm:$0xf0]  ;;  %v408_v56 = vld [vmem:[%s5983_s25 + $0xa0] sm:$0xff] }
  0x40   : > { %1253 = vmatpush.bf16.msrb.mxu0 %v4646_v47  ;;  %v4634_v47 = vor.u32 %v5433_v44, %v4631_v46  ;;  %v409_v57 = vld [vmem:[%s5983_s25 + $0xa8] sm:$0xff]  ;;  %v470_v8 = vld [vmem:[%s5983_s25 + $0xb1] sm:$0xff] }
  0x41   : > { %1342 = vmatpush.bf16.msrb.mxu1 %v4650_v49  ;;  %v430_v63 = vpack.c.bf16 %v409_v57, %v408_v56  ;;  %v410_v10 = vld [vmem:[%s5983_s25 + $0xb0] sm:$0xff]  ;;  %v411_v11 = vld [vmem:[%s5983_s25 + $0xb8] sm:$0xff]  ;;  %v4623_v32 = vld [vmem:[%s8038_s1 + $0xc8] sm:$0xf0] }
  0x42   : > { %v431_v17 = vpack.c.bf16 %v411_v11, %v410_v10  ;;  %v4741_v56 = vld [vmem:[%s8038_s1 + $0x170] sm:$0xf]  ;;  %v5454_v57 = vld [vmem:[%s8038_s1 + $0x174] sm:$0xf0]  ;;  %v5451_v10 = vld [vmem:[%s8038_s1 + $0x164] sm:$0xf] }
  0x44   : > { %1254 = vmatpush.bf16.msrb.mxu0 %v4638_v7 }
  0x45   : > { %1343 = vmatpush.bf16.msrb.mxu1 %v4642_v9  ;;  %v471_v9 = vld [vmem:[%s5983_s25 + $0xb9] sm:$0xff] }
  0x46   : > { %v491_v13 = vpack.c.bf16 %v471_v9, %v470_v8  ;;  %v4733_v8 = vld [vmem:[%s8038_s1 + $0x160] sm:$0xf]  ;;  %v5452_v9 = vld [vmem:[%s8038_s1 + $0x164] sm:$0xf0] }
  0x47   : > { %4508 = vmatmul.msk.bf16.gmra.mxu0 %vm568_vm0, %v481_v30 }
  0x48   : > { %4524 = vmatmul.msk.bf16.gmra.mxu1 %vm568_vm0, %v481_v30  ;;  %v466_v30 = vld [vmem:[%s5983_s25 + $0x91] sm:$0xff] }
  0x49   : > { %4588 = vmatmul.msk.bf16.gmra.mxu2 %vm568_vm0, %v421_v31  ;;  %1344 = vmatpush.bf16.msrb.mxu1 %v4634_v47 }
  0x4a   : > { %4604 = vmatmul.msk.bf16.gmra.mxu3 %vm568_vm0, %v421_v31  ;;  %v467_v31 = vld [vmem:[%s5983_s25 + $0x99] sm:$0xff] }
  0x4b   : > { %v489_v35 = vpack.c.bf16 %v467_v31, %v466_v30  ;;  %v5431_v30 = vld [vmem:[%s8038_s1 + $0xc4] sm:$0xf] }
  0x4c   : > { %v4626_v33 = vor.u32 %v5431_v30, %v4623_v32  ;;  %v4727_v30 = vld [vmem:[%s8038_s1 + $0x158] sm:$0xf0] }
  0x4e   : > { %1345 = vmatpush.bf16.msrb.mxu1 %v4626_v33  ;;  %v4717_v33 = vld [vmem:[%s8038_s1 + $0x140] sm:$0xf] }
  0x57   : > { %4509 = vmatmul.msk.bf16.gmra.mxu0 %vm568_vm0, %v482_v36 }
  0x58   : > { %4525 = vmatmul.msk.bf16.gmra.mxu1 %vm568_vm0, %v482_v36 }
  0x59   : > { %4589 = vmatmul.msk.bf16.gmra.mxu2 %vm568_vm0, %v422_v37 }
  0x5a   : > { %4605 = vmatmul.msk.bf16.gmra.mxu3 %vm568_vm0, %v422_v37 }
  0x67   : > { %4510 = vmatmul.msk.bf16.gmra.mxu0 %vm568_vm0, %v483_v42 }
  0x68   : > { %4526 = vmatmul.msk.bf16.gmra.mxu1 %vm568_vm0, %v483_v42  ;;  %v4629_v42 = vld [vmem:[%s8038_s1 + $0xd0] sm:$0xf] }
  0x69   : > { %4590 = vmatmul.msk.bf16.gmra.mxu2 %vm568_vm0, %v423_v43 }
  0x6a   : > { %4606 = vmatmul.msk.bf16.gmra.mxu3 %vm568_vm0, %v423_v43  ;;  %v5434_v43 = vld [vmem:[%s8038_s1 + $0xd4] sm:$0xf0] }
  0x6b   : > { %v4630_v45 = vor.u32 %v5434_v43, %v4629_v42 }
  0x6d   : > { %1255 = vmatpush.bf16.msrb.mxu0 %v4630_v45 }
  0x77   : > { %4511 = vmatmul.msk.bf16.gmra.mxu0 %vm568_vm0, %v484_v54 }
  0x78   : > { %4527 = vmatmul.msk.bf16.gmra.mxu1 %vm568_vm0, %v484_v54  ;;  %v468_v54 = vld [vmem:[%s5983_s25 + $0xa1] sm:$0xff] }
  0x79   : > { %4591 = vmatmul.msk.bf16.gmra.mxu2 %vm568_vm0, %v424_v55 }
  0x7a   : > { %4607 = vmatmul.msk.bf16.gmra.mxu3 %vm568_vm0, %v424_v55  ;;  %v469_v55 = vld [vmem:[%s5983_s25 + $0xa9] sm:$0xff] }
  0x7b   : > { %v490_v59 = vpack.c.bf16 %v469_v55, %v468_v54 }
  0x87   : > { %4512 = vmatmul.msk.bf16.gmra.mxu0 %vm568_vm0, %v485_v60 }
  0x88   : > { %4528 = vmatmul.msk.bf16.gmra.mxu1 %vm568_vm0, %v485_v60 }
  0x89   : > { %4592 = vmatmul.msk.bf16.gmra.mxu2 %vm568_vm0, %v425_v61 }
  0x8a   : > { %4608 = vmatmul.msk.bf16.gmra.mxu3 %vm568_vm0, %v425_v61 }
  0x97   : > { %4513 = vmatmul.msk.bf16.gmra.mxu0 %vm568_vm0, %v486_v2 }
  0x98   : > { %4529 = vmatmul.msk.bf16.gmra.mxu1 %vm568_vm0, %v486_v2 }
  0x99   : > { %4593 = vmatmul.msk.bf16.gmra.mxu2 %vm568_vm0, %v426_v3 }
  0x9a   : > { %4609 = vmatmul.msk.bf16.gmra.mxu3 %vm568_vm0, %v426_v3 }
  0xa7   : > { %4514 = vmatmul.msk.bf16.gmra.mxu0 %vm568_vm0, %v487_v14 }
  0xa8   : > { %4530 = vmatmul.msk.bf16.gmra.mxu1 %vm568_vm0, %v487_v14 }
  0xa9   : > { %4594 = vmatmul.msk.bf16.gmra.mxu2 %vm568_vm0, %v427_v15 }
  0xaa   : > { %4610 = vmatmul.msk.bf16.gmra.mxu3 %vm568_vm0, %v427_v15 }
  0xb4   : > { %v626_v21 = vpop.f32.mrf.mxu0 }
  0xb5   : > { %v715_v23 = vpop.f32.mrf.mxu1 }
  0xb7   : > { %4515 = vmatmul.msk.bf16.gmra.mxu0 %vm568_vm0, %v488_v20 }
  0xb8   : > { %4531 = vmatmul.msk.bf16.gmra.mxu1 %vm568_vm0, %v488_v20 }
  0xb9   : > { %4595 = vmatmul.msk.bf16.gmra.mxu2 %vm568_vm0, %v428_v22 }
  0xba   : > { %4611 = vmatmul.msk.bf16.gmra.mxu3 %vm568_vm0, %v428_v22 }
  0xbc   : > { %v912_v24 = vpop.f32.mrf.mxu2  ;;  %v628_v27 = vpop.f32.mrf.mxu0 }
  0xbd   : > { %v6093_v25 = vadd.f32 %v912_v24, %v626_v21  ;;  %v1001_v26 = vpop.f32.mrf.mxu3  ;;  %v717_v29 = vpop.f32.mrf.mxu1 }
  0xbe   : > { %v6095_v28 = vadd.f32 %v1001_v26, %v715_v23 }
  0xc4   : > { %v914_v34 = vpop.f32.mrf.mxu2  ;;  %v631_v38 = vpop.f32.mrf.mxu0 }
  0xc5   : > { %v6101_v36 = vadd.f32 %v914_v34, %v628_v27  ;;  %v1003_v37 = vpop.f32.mrf.mxu3  ;;  %v720_v41 = vpop.f32.mrf.mxu1  ;;  %v4621_v27 = vld [vmem:[%s8038_s1 + $0xc0] sm:$0xf] }
  0xc6   : > { %v6103_v40 = vadd.f32 %v1003_v37, %v717_v29  ;;  %v5432_v29 = vld [vmem:[%s8038_s1 + $0xc4] sm:$0xf0]  ;;  %v412_v37 = vld [vmem:[%s5983_s25 + $0xc0] sm:$0xff] }
  0xc7   : > { %4516 = vmatmul.msk.bf16.gmra.mxu0 %vm568_vm0, %v489_v35  ;;  %v4622_v31 = vor.u32 %v5432_v29, %v4621_v27  ;;  %v472_v34 = vld [vmem:[%s5983_s25 + $0xc1] sm:$0xff]  ;;  %v5449_v27 = vld [vmem:[%s8038_s1 + $0x154] sm:$0xf] }
  0xc8   : > { %4532 = vmatmul.msk.bf16.gmra.mxu1 %vm568_vm0, %v489_v35  ;;  %v473_v35 = vld [vmem:[%s5983_s25 + $0xc9] sm:$0xff] }
  0xc9   : > { %4596 = vmatmul.msk.bf16.gmra.mxu2 %vm568_vm0, %v429_v39  ;;  %1256 = vmatpush.bf16.msrb.mxu0 %v4622_v31  ;;  %v4730_v31 = vor.u32 %v5449_v27, %v4727_v30  ;;  %v4823_v27 = vld [vmem:[%s8038_s1 + $0x1d8] sm:$0xf0] }
  0xca   : > { %4612 = vmatmul.msk.bf16.gmra.mxu3 %vm568_vm0, %v429_v39 }
  0xcc   : > { %v917_v48 = vpop.f32.mrf.mxu2  ;;  %v633_v51 = vpop.f32.mrf.mxu0 }
  0xcd   : > { %v6121_v49 = vadd.f32 %v917_v48, %v631_v38  ;;  %v1006_v50 = vpop.f32.mrf.mxu3  ;;  %v722_v53 = vpop.f32.mrf.mxu1  ;;  %v413_v38 = vld [vmem:[%s5983_s25 + $0xc8] sm:$0xff] }
  0xce   : > { %v6123_v52 = vadd.f32 %v1006_v50, %v720_v41  ;;  %v492_v41 = vpack.c.bf16 %v473_v35, %v472_v34  ;;  %v432_v45 = vpack.c.bf16 %v413_v38, %v412_v37  ;;  %v5448_v34 = vld [vmem:[%s8038_s1 + $0x144] sm:$0xf0]  ;;  %v5447_v35 = vld [vmem:[%s8038_s1 + $0x144] sm:$0xf] }
  0xd4   : > { %v919_v58 = vpop.f32.mrf.mxu2  ;;  %v636_v62 = vpop.f32.mrf.mxu0 }
  0xd5   : > { %v6129_v60 = vadd.f32 %v919_v58, %v633_v51  ;;  %v1008_v61 = vpop.f32.mrf.mxu3  ;;  %v725_v1 = vpop.f32.mrf.mxu1  ;;  %v5453_v58 = vld [vmem:[%s8038_s1 + $0x174] sm:$0xf] }
  0xd6   : > { %v6131_v0 = vadd.f32 %v1008_v61, %v722_v53  ;;  %v4743_v61 = vld [vmem:[%s8038_s1 + $0x178] sm:$0xf0] }
  0xd7   : > { %4517 = vmatmul.msk.bf16.gmra.mxu0 %vm568_vm0, %v490_v59 }
  0xd8   : > { %4533 = vmatmul.msk.bf16.gmra.mxu1 %vm568_vm0, %v490_v59  ;;  %v4742_v59 = vor.u32 %v5454_v57, %v4741_v56  ;;  %v4711_v56 = vld [vmem:[%s8038_s1 + $0x138] sm:$0xf0] }
  0xd9   : > { %4597 = vmatmul.msk.bf16.gmra.mxu2 %vm568_vm0, %v430_v63 }
  0xda   : > { %4613 = vmatmul.msk.bf16.gmra.mxu3 %vm568_vm0, %v430_v63  ;;  %v474_v63 = vld [vmem:[%s5983_s25 + $0xd1] sm:$0xff]  ;;  %1661 = vmatpush.bf16.msrb.mxu2 %v4742_v59  ;;  %v477_v59 = vld [vmem:[%s5983_s25 + $0xe9] sm:$0xff] }
  0xdc   : > { %v922_v2 = vpop.f32.mrf.mxu2  ;;  %v638_v5 = vpop.f32.mrf.mxu0 }
  0xdd   : > { %v6137_v3 = vadd.f32 %v922_v2, %v636_v62  ;;  %v1011_v4 = vpop.f32.mrf.mxu3  ;;  %v727_v7 = vpop.f32.mrf.mxu1  ;;  %v4746_v62 = vor.u32 %v5453_v58, %v4743_v61  ;;  %v414_v2 = vld [vmem:[%s5983_s25 + $0xd0] sm:$0xff]  ;;  %v476_v58 = vld [vmem:[%s5983_s25 + $0xe1] sm:$0xff] }
  0xde   : > { %v6139_v6 = vadd.f32 %v1011_v4, %v725_v1  ;;  %v475_v1 = vld [vmem:[%s5983_s25 + $0xd9] sm:$0xff] }
  0xdf   : > { %v415_v4 = vld [vmem:[%s5983_s25 + $0xd8] sm:$0xff]  ;;  %1750 = vmatpush.bf16.msrb.mxu3 %v4746_v62  ;;  %v416_v61 = vld [vmem:[%s5983_s25 + $0xe0] sm:$0xff]  ;;  %v417_v62 = vld [vmem:[%s5983_s25 + $0xe8] sm:$0xff] }
  0xe4   : > { %v924_v12 = vpop.f32.mrf.mxu2  ;;  %v641_v16 = vpop.f32.mrf.mxu0 }
  0xe5   : > { %v6145_v14 = vadd.f32 %v924_v12, %v638_v5  ;;  %v1013_v15 = vpop.f32.mrf.mxu3  ;;  %v730_v19 = vpop.f32.mrf.mxu1 }
  0xe6   : > { %v6147_v18 = vadd.f32 %v1013_v15, %v727_v7  ;;  %v493_v7 = vpack.c.bf16 %v475_v1, %v474_v63  ;;  %v433_v15 = vpack.c.bf16 %v415_v4, %v414_v2  ;;  %v494_v1 = vpack.c.bf16 %v477_v59, %v476_v58  ;;  %v4701_v2 = vld [vmem:[%s8038_s1 + $0x120] sm:$0xf]  ;;  %v5444_v4 = vld [vmem:[%s8038_s1 + $0x124] sm:$0xf0] }
  0xe7   : > { %4518 = vmatmul.msk.bf16.gmra.mxu0 %vm568_vm0, %v491_v13 }
  0xe8   : > { %4534 = vmatmul.msk.bf16.gmra.mxu1 %vm568_vm0, %v491_v13 }
  0xe9   : > { %4598 = vmatmul.msk.bf16.gmra.mxu2 %vm568_vm0, %v431_v17 }
  0xea   : > { %4614 = vmatmul.msk.bf16.gmra.mxu3 %vm568_vm0, %v431_v17  ;;  %v4735_v17 = vld [vmem:[%s8038_s1 + $0x168] sm:$0xf0] }
  0xec   : > { %v927_v20 = vpop.f32.mrf.mxu2  ;;  %v643_v23 = vpop.f32.mrf.mxu0 }
  0xed   : > { %v6153_v21 = vadd.f32 %v927_v20, %v641_v16  ;;  %v1016_v22 = vpop.f32.mrf.mxu3  ;;  %v732_v26 = vpop.f32.mrf.mxu1  ;;  %v4734_v16 = vor.u32 %v5452_v9, %v4733_v8 }
  0xee   : > { %v6155_v24 = vadd.f32 %v1016_v22, %v730_v19  ;;  %v4738_v22 = vor.u32 %v5451_v10, %v4735_v17  ;;  %v434_v10 = vpack.c.bf16 %v417_v62, %v416_v61 }
  0xef   : > { %1662 = vmatpush.bf16.msrb.mxu2 %v4734_v16 }
  0xf0   : > { %1751 = vmatpush.bf16.msrb.mxu3 %v4738_v22  ;;  %v5466_v22 = vld [vmem:[%s8038_s1 + $0x1d4] sm:$0xf0] }
  0xf4   : > { %v929_v39 = vpop.f32.mrf.mxu2  ;;  %v646_v44 = vpop.f32.mrf.mxu0  ;;  %1752 = vmatpush.bf16.msrb.mxu3 %v4730_v31 }
  0xf5   : > { %v6173_v42 = vadd.f32 %v929_v39, %v643_v23  ;;  %v1018_v43 = vpop.f32.mrf.mxu3  ;;  %v735_v47 = vpop.f32.mrf.mxu1  ;;  %v4725_v23 = vld [vmem:[%s8038_s1 + $0x150] sm:$0xf] }
  0xf6   : > { %v6175_v46 = vadd.f32 %v1018_v43, %v732_v26  ;;  %v5450_v26 = vld [vmem:[%s8038_s1 + $0x154] sm:$0xf0]  ;;  %v4719_v43 = vld [vmem:[%s8038_s1 + $0x148] sm:$0xf0] }
  0xf7   : > { %4519 = vmatmul.msk.bf16.gmra.mxu0 %vm568_vm0, %v492_v41  ;;  %v4726_v29 = vor.u32 %v5450_v26, %v4725_v23  ;;  %v5465_v23 = vld [vmem:[%s8038_s1 + $0x1d4] sm:$0xf] }
  0xf8   : > { %4535 = vmatmul.msk.bf16.gmra.mxu1 %vm568_vm0, %v492_v41  ;;  %v4718_v41 = vor.u32 %v5448_v34, %v4717_v33  ;;  %v4826_v30 = vor.u32 %v5465_v23, %v4823_v27 }
  0xf9   : > { %4599 = vmatmul.msk.bf16.gmra.mxu2 %vm568_vm0, %v432_v45 }
  0xfa   : > { %4615 = vmatmul.msk.bf16.gmra.mxu3 %vm568_vm0, %v432_v45  ;;  %1663 = vmatpush.bf16.msrb.mxu2 %v4726_v29 }
  0xfb   : > { %2160 = vmatpush.bf16.msra.mxu1 %v4826_v30 }
  0xfc   : > { %v932_v48 = vpop.f32.mrf.mxu2  ;;  %v648_v53 = vpop.f32.mrf.mxu0 }
  0xfd   : > { %v6181_v50 = vadd.f32 %v932_v48, %v646_v44  ;;  %v1021_v51 = vpop.f32.mrf.mxu3  ;;  %v737_v55 = vpop.f32.mrf.mxu1  ;;  %v4709_v48 = vld [vmem:[%s8038_s1 + $0x130] sm:$0xf] }
  0xfe   : > { %v6183_v54 = vadd.f32 %v1021_v51, %v735_v47  ;;  %v4722_v47 = vor.u32 %v5447_v35, %v4719_v43  ;;  %v5446_v51 = vld [vmem:[%s8038_s1 + $0x134] sm:$0xf0]  ;;  %1664 = vmatpush.bf16.msrb.mxu2 %v4718_v41  ;;  %v418_v41 = vld [vmem:[%s5983_s25 + $0xf0] sm:$0xff] }
  0xff   : > { %v419_v43 = vld [vmem:[%s5983_s25 + $0xf8] sm:$0xf] }
 0x100   : > { %1753 = vmatpush.bf16.msrb.mxu3 %v4722_v47 }
 0x104   : > { %v934_v5 = vpop.f32.mrf.mxu2  ;;  %v651_v13 = vpop.f32.mrf.mxu0 }
 0x105   : > { %v6210_v11 = vadd.f32 %v934_v5, %v648_v53  ;;  %v1023_v12 = vpop.f32.mrf.mxu3  ;;  %v740_v20 = vpop.f32.mrf.mxu1  ;;  %v5445_v53 = vld [vmem:[%s8038_s1 + $0x134] sm:$0xf]  ;;  %v5443_v5 = vld [vmem:[%s8038_s1 + $0x124] sm:$0xf] }
 0x106   : > { %v6215_v19 = vadd.f32 %v1023_v12, %v737_v55  ;;  %v4710_v55 = vor.u32 %v5446_v51, %v4709_v48  ;;  %v4714_v57 = vor.u32 %v5445_v53, %v4711_v56  ;;  %v4702_v12 = vor.u32 %v5444_v4, %v4701_v2  ;;  %v1081_v2 = vld [vmem:[%s5983_s25 + $0x2] sm:$0xff]  ;;  %v1082_v4 = vld [vmem:[%s5983_s25 + $0xa] sm:$0xff] }
 0x107   : > { %4520 = vmatmul.msk.bf16.gmra.mxu0 %vm568_vm0, %v493_v7 }
 0x108   : > { %4536 = vmatmul.msk.bf16.gmra.mxu1 %vm568_vm0, %v493_v7  ;;  %1665 = vmatpush.bf16.msrb.mxu2 %v4710_v55  ;;  %v435_v55 = vpack.c.bf16 %v419_v43, %v418_v41 }
 0x109   : > { %4600 = vmatmul.msk.bf16.gmra.mxu2 %vm568_vm0, %v433_v15  ;;  %1754 = vmatpush.bf16.msrb.mxu3 %v4714_v57 }
 0x10a   : > { %4616 = vmatmul.msk.bf16.gmra.mxu3 %vm568_vm0, %v433_v15 }
 0x10c   : > { %v937_v32 = vpop.f32.mrf.mxu2  ;;  %v653_v39 = vpop.f32.mrf.mxu0  ;;  %1666 = vmatpush.bf16.msrb.mxu2 %v4702_v12 }
 0x10d   : > { %v6242_v37 = vadd.f32 %v937_v32, %v651_v13  ;;  %v1026_v38 = vpop.f32.mrf.mxu3  ;;  %v742_v45 = vpop.f32.mrf.mxu1  ;;  %v4703_v13 = vld [vmem:[%s8038_s1 + $0x128] sm:$0xf0] }
 0x10e   : > { %v6247_v44 = vadd.f32 %v1026_v38, %v740_v20  ;;  %v4706_v17 = vor.u32 %v5443_v5, %v4703_v13  ;;  %v4821_v20 = vld [vmem:[%s8038_s1 + $0x1d0] sm:$0xf]  ;;  %v1491_v5 = vld [vmem:[%s5983_s25 + $0x3] sm:$0xff] }
 0x10f   : > { %v4822_v26 = vor.u32 %v5466_v22, %v4821_v20  ;;  %v478_v38 = vld [vmem:[%s5983_s25 + $0xf1] sm:$0xff] }
 0x110   : > { %1755 = vmatpush.bf16.msrb.mxu3 %v4706_v17 }
 0x111   : > { %2071 = vmatpush.bf16.msra.mxu0 %v4822_v26 }
 0x114   : > { %v939_v63 = vpop.f32.mrf.mxu2  ;;  %v656_v9 = vpop.f32.mrf.mxu0 }
 0x115   : > { %v6274_v7 = vadd.f32 %v939_v63, %v653_v39  ;;  %v1028_v8 = vpop.f32.mrf.mxu3  ;;  %v745_v16 = vpop.f32.mrf.mxu1  ;;  %v479_v39 = vld [vmem:[%s5983_s25 + $0xf9] sm:$0xf] }
 0x116   : > { %v6279_v15 = vadd.f32 %v1028_v8, %v742_v45  ;;  %v495_v47 = vpack.c.bf16 %v479_v39, %v478_v38  ;;  %v1492_v8 = vld [vmem:[%s5983_s25 + $0xb] sm:$0xff]  ;;  %v1493_v38 = vld [vmem:[%s5983_s25 + $0x13] sm:$0xff]  ;;  %v1494_v39 = vld [vmem:[%s5983_s25 + $0x1b] sm:$0xff] }
 0x117   : > { %4521 = vmatmul.msk.bf16.gmra.mxu0 %vm568_vm0, %v494_v1  ;;  %v1523_v17 = vpack.c.bf16 %v1492_v8, %v1491_v5 }
 0x118   : > { %4537 = vmatmul.msk.bf16.gmra.mxu1 %vm568_vm0, %v494_v1 }
 0x119   : > { %4601 = vmatmul.msk.bf16.gmra.mxu2 %vm568_vm0, %v434_v10 }
 0x11a   : > { %4617 = vmatmul.msk.bf16.gmra.mxu3 %vm568_vm0, %v434_v10  ;;  %v1113_v10 = vpack.c.bf16 %v1082_v4, %v1081_v2  ;;  %v4815_v2 = vld [vmem:[%s8038_s1 + $0x1c8] sm:$0xf0] }
 0x11c   : > { %v942_v29 = vpop.f32.mrf.mxu2  ;;  %v658_v33 = vpop.f32.mrf.mxu0 }
 0x11d   : > { %v6297_v31 = vadd.f32 %v942_v29, %v656_v9  ;;  %v1031_v32 = vpop.f32.mrf.mxu3  ;;  %v747_v35 = vpop.f32.mrf.mxu1 }
 0x11e   : > { %v6299_v34 = vadd.f32 %v1031_v32, %v745_v16 }
 0x124   : > { %v944_v45 = vpop.f32.mrf.mxu2  ;;  %v661_v53 = vpop.f32.mrf.mxu0 }
 0x125   : > { %v6305_v48 = vadd.f32 %v944_v45, %v658_v33  ;;  %v1033_v51 = vpop.f32.mrf.mxu3  ;;  %v750_v57 = vpop.f32.mrf.mxu1  ;;  %v1083_v33 = vld [vmem:[%s5983_s25 + $0x12] sm:$0xff] }
 0x126   : > { %v6307_v56 = vadd.f32 %v1033_v51, %v747_v35  ;;  %v1084_v35 = vld [vmem:[%s5983_s25 + $0x1a] sm:$0xff] }
 0x127   : > { %4522 = vmatmul.msk.bf16.gmra.mxu0 %vm568_vm0, %v495_v47  ;;  %v1114_v43 = vpack.c.bf16 %v1084_v35, %v1083_v33 }
 0x128   : > { %4538 = vmatmul.msk.bf16.gmra.mxu1 %vm568_vm0, %v495_v47 }
 0x129   : > { %4602 = vmatmul.msk.bf16.gmra.mxu2 %vm568_vm0, %v435_v55 }
 0x12a   : > { %4618 = vmatmul.msk.bf16.gmra.mxu3 %vm568_vm0, %v435_v55 }
 0x12c   : > { %v947_v58 = vpop.f32.mrf.mxu2  ;;  %v663_v62 = vpop.f32.mrf.mxu0 }
 0x12d   : > { %v6313_v59 = vadd.f32 %v947_v58, %v661_v53  ;;  %v1036_v61 = vpop.f32.mrf.mxu3  ;;  %v752_v1 = vpop.f32.mrf.mxu1  ;;  %v1524_v53 = vpack.c.bf16 %v1494_v39, %v1493_v38  ;;  %v4813_v58 = vld [vmem:[%s8038_s1 + $0x1c0] sm:$0xf] }
 0x12e   : > { %v6315_v63 = vadd.f32 %v1036_v61, %v750_v57  ;;  %v5464_v61 = vld [vmem:[%s8038_s1 + $0x1c4] sm:$0xf0] }
 0x134   : > { %v949_v9 = vpop.f32.mrf.mxu2  ;;  %v666_v16 = vpop.f32.mrf.mxu0 }
 0x135   : > { %v6321_v12 = vadd.f32 %v949_v9, %v663_v62  ;;  %v1038_v13 = vpop.f32.mrf.mxu3  ;;  %v755_v22 = vpop.f32.mrf.mxu1  ;;  %v5463_v62 = vld [vmem:[%s8038_s1 + $0x1c4] sm:$0xf] }
 0x136   : > { %v6323_v20 = vadd.f32 %v1038_v13, %v752_v1  ;;  %v4814_v1 = vor.u32 %v5464_v61, %v4813_v58  ;;  %v4818_v4 = vor.u32 %v5463_v62, %v4815_v2  ;;  %v1087_v62 = vld [vmem:[%s5983_s25 + $0x32] sm:$0xff] }
 0x137   : > { %4667 = vmatmul.msk.bf16.vlgmr.msrb.gmra.mxu0 %vm568_vm0, %v1113_v10  ;;  %v1497_v2 = vld [vmem:[%s5983_s25 + $0x33] sm:$0xff] }
 0x138   : > { %4683 = vmatmul.msk.bf16.vlgmr.msrb.gmra.mxu1 %vm568_vm0, %v1113_v10  ;;  %2072 = vmatpush.bf16.msra.mxu0 %v4814_v1  ;;  %v1088_v1 = vld [vmem:[%s5983_s25 + $0x3a] sm:$0xff] }
 0x139   : > { %4747 = vmatmul.msk.bf16.vlgmr.msrb.gmra.mxu2 %vm568_vm0, %v1523_v17  ;;  %2161 = vmatpush.bf16.msra.mxu1 %v4818_v4  ;;  %v1498_v4 = vld [vmem:[%s5983_s25 + $0x3b] sm:$0xff] }
 0x13a   : > { %4763 = vmatmul.msk.bf16.vlgmr.msrb.gmra.mxu3 %vm568_vm0, %v1523_v17  ;;  %v1085_v17 = vld [vmem:[%s5983_s25 + $0x22] sm:$0xff] }
 0x13c   : > { %v952_v23 = vpop.f32.mrf.mxu2  ;;  %v668_v29 = vpop.f32.mrf.mxu0 }
 0x13d   : > { %v6329_v26 = vadd.f32 %v952_v23, %v666_v16  ;;  %v1041_v27 = vpop.f32.mrf.mxu3  ;;  %v757_v32 = vpop.f32.mrf.mxu1  ;;  %v1495_v23 = vld [vmem:[%s5983_s25 + $0x23] sm:$0xff] }
 0x13e   : > { %v6331_v30 = vadd.f32 %v1041_v27, %v755_v22  ;;  %v1086_v22 = vld [vmem:[%s5983_s25 + $0x2a] sm:$0xff] }
 0x13f   : > { %v1496_v27 = vld [vmem:[%s5983_s25 + $0x2b] sm:$0xff] }
 0x140   : > { %v1525_v39 = vpack.c.bf16 %v1496_v27, %v1495_v23 }
 0x144   : > { %v954_v41 = vpop.f32.mrf.mxu2  ;;  %v671_v51 = vpop.f32.mrf.mxu0 }
 0x145   : > { %v6337_v45 = vadd.f32 %v954_v41, %v668_v29  ;;  %v1043_v47 = vpop.f32.mrf.mxu3  ;;  %v760_v57 = vpop.f32.mrf.mxu1 }
 0x146   : > { %v6339_v55 = vadd.f32 %v1043_v47, %v757_v32  ;;  %v1115_v32 = vpack.c.bf16 %v1086_v22, %v1085_v17  ;;  %v1526_v22 = vpack.c.bf16 %v1498_v4, %v1497_v2  ;;  %v1089_v2 = vld [vmem:[%s5983_s25 + $0x42] sm:$0xff]  ;;  %v1090_v4 = vld [vmem:[%s5983_s25 + $0x4a] sm:$0xff] }
 0x147   : > { %4668 = vmatmul.msk.bf16.gmra.mxu0 %vm568_vm0, %v1114_v43 }
 0x148   : > { %4684 = vmatmul.msk.bf16.gmra.mxu1 %vm568_vm0, %v1114_v43 }
 0x149   : > { %4748 = vmatmul.msk.bf16.gmra.mxu2 %vm568_vm0, %v1524_v53 }
 0x14a   : > { %4764 = vmatmul.msk.bf16.gmra.mxu3 %vm568_vm0, %v1524_v53 }
 0x14c   : > { %v957_v5 = vpop.f32.mrf.mxu2  ;;  %v673_v10 = vpop.f32.mrf.mxu0 }
 0x14d   : > { %v6357_v8 = vadd.f32 %v957_v5, %v671_v51  ;;  %v1046_v9 = vpop.f32.mrf.mxu3  ;;  %v762_v16 = vpop.f32.mrf.mxu1 }
 0x14e   : > { %v6359_v13 = vadd.f32 %v1046_v9, %v760_v57  ;;  %v1116_v9 = vpack.c.bf16 %v1088_v1, %v1087_v62  ;;  %v4807_v62 = vld [vmem:[%s8038_s1 + $0x1b8] sm:$0xf0] }
 0x154   : > { %v959_v29 = vpop.f32.mrf.mxu2  ;;  %v676_v38 = vpop.f32.mrf.mxu0 }
 0x155   : > { %v6365_v33 = vadd.f32 %v959_v29, %v673_v10  ;;  %v1048_v35 = vpop.f32.mrf.mxu3  ;;  %v765_v43 = vpop.f32.mrf.mxu1 }
 0x156   : > { %v6367_v41 = vadd.f32 %v1048_v35, %v762_v16 }
 0x157   : > { %4669 = vmatmul.msk.bf16.gmra.mxu0 %vm568_vm0, %v1115_v32 }
 0x158   : > { %4685 = vmatmul.msk.bf16.gmra.mxu1 %vm568_vm0, %v1115_v32 }
 0x159   : > { %4749 = vmatmul.msk.bf16.gmra.mxu2 %vm568_vm0, %v1525_v39 }
 0x15a   : > { %4765 = vmatmul.msk.bf16.gmra.mxu3 %vm568_vm0, %v1525_v39 }
 0x15c   : > { %v962_v47 = vpop.f32.mrf.mxu2  ;;  %v678_v57 = vpop.f32.mrf.mxu0 }
 0x15d   : > { %v6373_v51 = vadd.f32 %v962_v47, %v676_v38  ;;  %v1051_v53 = vpop.f32.mrf.mxu3  ;;  %v767_v61 = vpop.f32.mrf.mxu1  ;;  %v4805_v47 = vld [vmem:[%s8038_s1 + $0x1b0] sm:$0xf] }
 0x15e   : > { %v6375_v58 = vadd.f32 %v1051_v53, %v765_v43  ;;  %v5462_v53 = vld [vmem:[%s8038_s1 + $0x1b4] sm:$0xf0] }
 0x164   : > { %v964_v5 = vpop.f32.mrf.mxu2  ;;  %v681_v17 = vpop.f32.mrf.mxu0 }
 0x165   : > { %v6381_v10 = vadd.f32 %v964_v5, %v678_v57  ;;  %v1053_v16 = vpop.f32.mrf.mxu3  ;;  %v770_v27 = vpop.f32.mrf.mxu1  ;;  %v5461_v57 = vld [vmem:[%s8038_s1 + $0x1b4] sm:$0xf]  ;;  %v1499_v5 = vld [vmem:[%s5983_s25 + $0x43] sm:$0xff] }
 0x166   : > { %v6383_v23 = vadd.f32 %v1053_v16, %v767_v61  ;;  %v4806_v61 = vor.u32 %v5462_v53, %v4805_v47  ;;  %v4810_v1 = vor.u32 %v5461_v57, %v4807_v62 }
 0x167   : > { %4670 = vmatmul.msk.bf16.gmra.mxu0 %vm568_vm0, %v1116_v9 }
 0x168   : > { %4686 = vmatmul.msk.bf16.gmra.mxu1 %vm568_vm0, %v1116_v9  ;;  %2073 = vmatpush.bf16.msra.mxu0 %v4806_v61  ;;  %v1500_v9 = vld [vmem:[%s5983_s25 + $0x4b] sm:$0xff] }
 0x169   : > { %4750 = vmatmul.msk.bf16.gmra.mxu2 %vm568_vm0, %v1526_v22  ;;  %2162 = vmatpush.bf16.msra.mxu1 %v4810_v1 }
 0x16a   : > { %4766 = vmatmul.msk.bf16.gmra.mxu3 %vm568_vm0, %v1526_v22 }
 0x16c   : > { %v967_v29 = vpop.f32.mrf.mxu2  ;;  %v683_v38 = vpop.f32.mrf.mxu0 }
 0x16d   : > { %v6389_v32 = vadd.f32 %v967_v29, %v681_v17  ;;  %v1056_v35 = vpop.f32.mrf.mxu3  ;;  %v772_v43 = vpop.f32.mrf.mxu1  ;;  %v1117_v17 = vpack.c.bf16 %v1090_v4, %v1089_v2  ;;  %v1091_v4 = vld [vmem:[%s5983_s25 + $0x52] sm:$0xff] }
 0x16e   : > { %v6391_v39 = vadd.f32 %v1056_v35, %v770_v27  ;;  %v1527_v35 = vpack.c.bf16 %v1500_v9, %v1499_v5  ;;  %v1501_v5 = vld [vmem:[%s5983_s25 + $0x53] sm:$0xff]  ;;  %v1502_v9 = vld [vmem:[%s5983_s25 + $0x5b] sm:$0xff] }
 0x16f   : > { %8040 = vst [vmem:[#allocation10_spill] sm:$0xff] %v6389_v32 }
 0x170   : > { %8041 = vst [vmem:[#allocation11_spill] sm:$0xff] %v6391_v39 }
 0x174   : > { %v969_v16 = vpop.f32.mrf.mxu2  ;;  %v686_v29 = vpop.f32.mrf.mxu0 }
 0x175   : > { %v6409_v22 = vadd.f32 %v969_v16, %v683_v38  ;;  %v1058_v27 = vpop.f32.mrf.mxu3  ;;  %v775_v53 = vpop.f32.mrf.mxu1 }
 0x176   : > { %v6411_v47 = vadd.f32 %v1058_v27, %v772_v43  ;;  %v1092_v43 = vld [vmem:[%s5983_s25 + $0x5a] sm:$0xff] }
 0x177   : > { %8042 = vst [vmem:[#allocation12_spill] sm:$0xff] %v6409_v22  ;;  %4671 = vmatmul.msk.bf16.gmra.mxu0 %vm568_vm0, %v1117_v17  ;;  %v1118_v27 = vpack.c.bf16 %v1092_v43, %v1091_v4 }
 0x178   : > { %8043 = vst [vmem:[#allocation13_spill] sm:$0xff] %v6411_v47  ;;  %4687 = vmatmul.msk.bf16.gmra.mxu1 %vm568_vm0, %v1117_v17 }
 0x179   : > { %4751 = vmatmul.msk.bf16.gmra.mxu2 %vm568_vm0, %v1527_v35 }
 0x17a   : > { %4767 = vmatmul.msk.bf16.gmra.mxu3 %vm568_vm0, %v1527_v35 }
 0x17c   : > { %v972_v38 = vpop.f32.mrf.mxu2  ;;  %v688_v62 = vpop.f32.mrf.mxu0 }
 0x17d   : > { %v6417_v57 = vadd.f32 %v972_v38, %v686_v29  ;;  %v1061_v61 = vpop.f32.mrf.mxu3  ;;  %v777_v2 = vpop.f32.mrf.mxu1  ;;  %v1528_v29 = vpack.c.bf16 %v1502_v9, %v1501_v5  ;;  %v1093_v9 = vld [vmem:[%s5983_s25 + $0x62] sm:$0xff] }
 0x17e   : > { %v6419_v1 = vadd.f32 %v1061_v61, %v775_v53 }
 0x17f   : > { %8044 = vst [vmem:[#allocation14_spill] sm:$0xff] %v6417_v57 }
 0x180   : > { %8045 = vst [vmem:[#allocation15_spill] sm:$0xff] %v6419_v1 }
 0x184   : > { %v974_v16 = vpop.f32.mrf.mxu2  ;;  %v691_v35 = vpop.f32.mrf.mxu0 }
 0x185   : > { %v6425_v47 = vadd.f32 %v974_v16, %v688_v62  ;;  %v1063_v17 = vpop.f32.mrf.mxu3  ;;  %v780_v53 = vpop.f32.mrf.mxu1 }
 0x186   : > { %v6427_v38 = vadd.f32 %v1063_v17, %v777_v2  ;;  %v1094_v2 = vld [vmem:[%s5983_s25 + $0x6a] sm:$0xff] }
 0x187   : > { %8046 = vst [vmem:[#allocation16_spill] sm:$0xff] %v6425_v47  ;;  %4672 = vmatmul.msk.bf16.gmra.mxu0 %vm568_vm0, %v1118_v27  ;;  %v1503_v17 = vld [vmem:[%s5983_s25 + $0x63] sm:$0xff]  ;;  %v1119_v1 = vpack.c.bf16 %v1094_v2, %v1093_v9 }
 0x188   : > { %8047 = vst [vmem:[#allocation17_spill] sm:$0xff] %v6427_v38  ;;  %4688 = vmatmul.msk.bf16.gmra.mxu1 %vm568_vm0, %v1118_v27  ;;  %v1504_v38 = vld [vmem:[%s5983_s25 + $0x6b] sm:$0xff] }
 0x189   : > { %4752 = vmatmul.msk.bf16.gmra.mxu2 %vm568_vm0, %v1528_v29  ;;  %v1529_v39 = vpack.c.bf16 %v1504_v38, %v1503_v17  ;;  %v5460_v38 = vld [vmem:[%s8038_s1 + $0x1a4] sm:$0xf0] }
 0x18a   : > { %4768 = vmatmul.msk.bf16.gmra.mxu3 %vm568_vm0, %v1528_v29 }
 0x18c   : > { %v977_v61 = vpop.f32.mrf.mxu2  ;;  %v693_v43 = vpop.f32.mrf.mxu0 }
 0x18d   : > { %v6433_v62 = vadd.f32 %v977_v61, %v691_v35  ;;  %v1066_v4 = vpop.f32.mrf.mxu3  ;;  %v782_v5 = vpop.f32.mrf.mxu1 }
 0x18e   : > { %v6435_v16 = vadd.f32 %v1066_v4, %v780_v53 }
 0x18f   : > { %8048 = vst [vmem:[#allocation18_spill] sm:$0xff] %v6433_v62 }
 0x190   : > { %8049 = vst [vmem:[#allocation19_spill] sm:$0xff] %v6435_v16  ;;  %v1506_v16 = vld [vmem:[%s5983_s25 + $0x7b] sm:$0xff] }
 0x194   : > { %v979_v47 = vpop.f32.mrf.mxu2  ;;  %v696_v22 = vpop.f32.mrf.mxu0 }
 0x195   : > { %v6441_v57 = vadd.f32 %v979_v47, %v693_v43  ;;  %v1068_v27 = vpop.f32.mrf.mxu3  ;;  %v785_v35 = vpop.f32.mrf.mxu1  ;;  %v4797_v47 = vld [vmem:[%s8038_s1 + $0x1a0] sm:$0xf] }
 0x196   : > { %v6443_v29 = vadd.f32 %v1068_v27, %v782_v5  ;;  %v4798_v53 = vor.u32 %v5460_v38, %v4797_v47  ;;  %v1095_v27 = vld [vmem:[%s5983_s25 + $0x72] sm:$0xff] }
 0x197   : > { %8050 = vst [vmem:[#allocation20_spill] sm:$0xff] %v6441_v57  ;;  %4673 = vmatmul.msk.bf16.gmra.mxu0 %vm568_vm0, %v1119_v1  ;;  %v1505_v57 = vld [vmem:[%s5983_s25 + $0x73] sm:$0xff] }
 0x198   : > { %8051 = vst [vmem:[#allocation21_spill] sm:$0xff] %v6443_v29  ;;  %4689 = vmatmul.msk.bf16.gmra.mxu1 %vm568_vm0, %v1119_v1  ;;  %v5459_v1 = vld [vmem:[%s8038_s1 + $0x1a4] sm:$0xf]  ;;  %2074 = vmatpush.bf16.msra.mxu0 %v4798_v53  ;;  %v1096_v29 = vld [vmem:[%s5983_s25 + $0x7a] sm:$0xff] }
 0x199   : > { %4753 = vmatmul.msk.bf16.gmra.mxu2 %vm568_vm0, %v1529_v39  ;;  %v1120_v38 = vpack.c.bf16 %v1096_v29, %v1095_v27 }
 0x19a   : > { %4769 = vmatmul.msk.bf16.gmra.mxu3 %vm568_vm0, %v1529_v39  ;;  %v4799_v39 = vld [vmem:[%s8038_s1 + $0x1a8] sm:$0xf0] }
 0x19b   : > { %v4802_v4 = vor.u32 %v5459_v1, %v4799_v39  ;;  %v1530_v1 = vpack.c.bf16 %v1506_v16, %v1505_v57  ;;  %v1097_v16 = vld [vmem:[%s5983_s25 + $0x82] sm:$0xff] }
 0x19c   : > { %v982_v61 = vpop.f32.mrf.mxu2  ;;  %v698_v9 = vpop.f32.mrf.mxu0 }
 0x19d   : > { %v6461_v43 = vadd.f32 %v982_v61, %v696_v22  ;;  %v1071_v5 = vpop.f32.mrf.mxu3  ;;  %v787_v17 = vpop.f32.mrf.mxu1  ;;  %2163 = vmatpush.bf16.msra.mxu1 %v4802_v4 }
 0x19e   : > { %v6463_v2 = vadd.f32 %v1071_v5, %v785_v35 }
 0x1a0   : > { %8052 = vst [vmem:[#allocation22_spill] sm:$0xff] %v6463_v2 }
 0x1a4   : > { %v984_v47 = vpop.f32.mrf.mxu2  ;;  %v701_v22 = vpop.f32.mrf.mxu0 }
 0x1a5   : > { %v6469_v62 = vadd.f32 %v984_v47, %v698_v9  ;;  %v1073_v32 = vpop.f32.mrf.mxu3  ;;  %v790_v35 = vpop.f32.mrf.mxu1  ;;  %v1507_v9 = vld [vmem:[%s5983_s25 + $0x83] sm:$0xff] }
 0x1a6   : > { %v6471_v53 = vadd.f32 %v1073_v32, %v787_v17  ;;  %v1098_v32 = vld [vmem:[%s5983_s25 + $0x8a] sm:$0xff] }
 0x1a7   : > { %8053 = vst [vmem:[#allocation23_spill] sm:$0xff] %v6469_v62  ;;  %4674 = vmatmul.msk.bf16.gmra.mxu0 %vm568_vm0, %v1120_v38  ;;  %v1508_v17 = vld [vmem:[%s5983_s25 + $0x8b] sm:$0xff]  ;;  %v1121_v47 = vpack.c.bf16 %v1098_v32, %v1097_v16 }
 0x1a8   : > { %8054 = vst [vmem:[#allocation24_spill] sm:$0xff] %v6471_v53  ;;  %4690 = vmatmul.msk.bf16.gmra.mxu1 %vm568_vm0, %v1120_v38  ;;  %v1531_v2 = vpack.c.bf16 %v1508_v17, %v1507_v9  ;;  %v1099_v9 = vld [vmem:[%s5983_s25 + $0x92] sm:$0xff]  ;;  %v1100_v17 = vld [vmem:[%s5983_s25 + $0x9a] sm:$0xff] }
 0x1a9   : > { %4754 = vmatmul.msk.bf16.gmra.mxu2 %vm568_vm0, %v1530_v1 }
 0x1aa   : > { %4770 = vmatmul.msk.bf16.gmra.mxu3 %vm568_vm0, %v1530_v1 }
 0x1ac   : > { %v987_v29 = vpop.f32.mrf.mxu2  ;;  %v703_v4 = vpop.f32.mrf.mxu0 }
 0x1ad   : > { %v6477_v39 = vadd.f32 %v987_v29, %v701_v22  ;;  %v1076_v61 = vpop.f32.mrf.mxu3  ;;  %v792_v57 = vpop.f32.mrf.mxu1 }
 0x1ae   : > { %v6479_v5 = vadd.f32 %v1076_v61, %v790_v35 }
 0x1b4   : > { %v989_v27 = vpop.f32.mrf.mxu2  ;;  %v1258_v62 = vpop.f32.mrf.mxu0 }
 0x1b5   : > { %v6485_v53 = vadd.f32 %v989_v27, %v703_v4  ;;  %v1078_v38 = vpop.f32.mrf.mxu3  ;;  %v1427_v22 = vadd.f32 %v1258_v62, %v6093_v25  ;;  %v1347_v35 = vpop.f32.mrf.mxu1  ;;  %v1509_v27 = vld [vmem:[%s5983_s25 + $0x93] sm:$0xff] }
 0x1b6   : > { %v6487_v1 = vadd.f32 %v1078_v38, %v792_v57  ;;  %v1428_v29 = vadd.f32 %v1347_v35, %v6095_v28  ;;  %v1122_v35 = vpack.c.bf16 %v1100_v17, %v1099_v9 }
 0x1b7   : > { %4675 = vmatmul.msk.bf16.gmra.mxu0 %vm568_vm0, %v1121_v47 }
 0x1b8   : > { %8055 = vst [vmem:[#allocation25_spill] sm:$0xff] %v6487_v1  ;;  %4691 = vmatmul.msk.bf16.gmra.mxu1 %vm568_vm0, %v1121_v47  ;;  %v1510_v47 = vld [vmem:[%s5983_s25 + $0x9b] sm:$0xff] }
 0x1b9   : > { %4755 = vmatmul.msk.bf16.gmra.mxu2 %vm568_vm0, %v1531_v2 }
 0x1ba   : > { %4771 = vmatmul.msk.bf16.gmra.mxu3 %vm568_vm0, %v1531_v2 }
 0x1bc   : > { %v1668_v61 = vpop.f32.mrf.mxu2  ;;  %v1260_v16 = vpop.f32.mrf.mxu0 }
 0x1bd   : > { %v6495_v4 = vadd.f32 %v1668_v61, %v1427_v22  ;;  %v1757_v57 = vpop.f32.mrf.mxu3  ;;  %v1429_v62 = vadd.f32 %v1260_v16, %v6101_v36  ;;  %v1349_v32 = vpop.f32.mrf.mxu1  ;;  %v1532_v61 = vpack.c.bf16 %v1510_v47, %v1509_v27  ;;  %v4789_v36 = vld [vmem:[%s8038_s1 + $0x190] sm:$0xf]  ;;  %v5457_v16 = vld [vmem:[%s8038_s1 + $0x194] sm:$0xf] }
 0x1be   : > { %v6497_v25 = vadd.f32 %v1757_v57, %v1428_v29  ;;  %v1430_v28 = vadd.f32 %v1349_v32, %v6103_v40  ;;  %v5458_v40 = vld [vmem:[%s8038_s1 + $0x194] sm:$0xf0] }
 0x1bf   : > { %8056 = vst [vmem:[#allocation26_spill] sm:$0xff] %v6495_v4  ;;  %v4790_v32 = vor.u32 %v5458_v40, %v4789_v36  ;;  %v1511_v36 = vld [vmem:[%s5983_s25 + $0xa3] sm:$0xff]  ;;  %v1512_v40 = vld [vmem:[%s5983_s25 + $0xab] sm:$0xff] }
 0x1c1   : > { %2075 = vmatpush.bf16.msra.mxu0 %v4790_v32 }
 0x1c4   : > { %v1670_v38 = vpop.f32.mrf.mxu2  ;;  %v1263_v22 = vpop.f32.mrf.mxu0 }
 0x1c5   : > { %v6505_v1 = vadd.f32 %v1670_v38, %v1429_v62  ;;  %v1759_v2 = vpop.f32.mrf.mxu3  ;;  %v1431_v29 = vadd.f32 %v1263_v22, %v6121_v49  ;;  %v1352_v57 = vpop.f32.mrf.mxu1  ;;  %v4791_v49 = vld [vmem:[%s8038_s1 + $0x198] sm:$0xf0] }
 0x1c6   : > { %v6507_v4 = vadd.f32 %v1759_v2, %v1430_v28  ;;  %v1432_v62 = vadd.f32 %v1352_v57, %v6123_v52  ;;  %v4794_v28 = vor.u32 %v5457_v16, %v4791_v49  ;;  %v1102_v57 = vld [vmem:[%s5983_s25 + $0xaa] sm:$0xff] }
 0x1c7   : > { %4676 = vmatmul.msk.bf16.gmra.mxu0 %vm568_vm0, %v1122_v35 }
 0x1c8   : > { %4692 = vmatmul.msk.bf16.gmra.mxu1 %vm568_vm0, %v1122_v35  ;;  %v1101_v35 = vld [vmem:[%s5983_s25 + $0xa2] sm:$0xff] }
 0x1c9   : > { %4756 = vmatmul.msk.bf16.gmra.mxu2 %vm568_vm0, %v1532_v61  ;;  %2164 = vmatpush.bf16.msra.mxu1 %v4794_v28  ;;  %v1533_v28 = vpack.c.bf16 %v1512_v40, %v1511_v36  ;;  %v1104_v36 = vld [vmem:[%s5983_s25 + $0xba] sm:$0xff] }
 0x1ca   : > { %4772 = vmatmul.msk.bf16.gmra.mxu3 %vm568_vm0, %v1532_v61  ;;  %v1123_v61 = vpack.c.bf16 %v1102_v57, %v1101_v35  ;;  %v1103_v57 = vld [vmem:[%s5983_s25 + $0xb2] sm:$0xff] }
 0x1cb   : > { %v1513_v40 = vld [vmem:[%s5983_s25 + $0xb3] sm:$0xff] }
 0x1cc   : > { %v1673_v52 = vpop.f32.mrf.mxu2  ;;  %v1265_v27 = vpop.f32.mrf.mxu0 }
 0x1cd   : > { %v6527_v9 = vadd.f32 %v1673_v52, %v1431_v29  ;;  %v1762_v17 = vpop.f32.mrf.mxu3  ;;  %v1433_v38 = vadd.f32 %v1265_v27, %v6129_v60  ;;  %v1354_v2 = vpop.f32.mrf.mxu1 }
 0x1ce   : > { %v6529_v47 = vadd.f32 %v1762_v17, %v1432_v62  ;;  %v1434_v22 = vadd.f32 %v1354_v2, %v6131_v0 }
 0x1d4   : > { %v1675_v16 = vpop.f32.mrf.mxu2  ;;  %v1268_v29 = vpop.f32.mrf.mxu0 }
 0x1d5   : > { %v6537_v32 = vadd.f32 %v1675_v16, %v1433_v38  ;;  %v1764_v49 = vpop.f32.mrf.mxu3  ;;  %v1435_v62 = vadd.f32 %v1268_v29, %v6137_v3  ;;  %v1357_v60 = vpop.f32.mrf.mxu1  ;;  %v1514_v16 = vld [vmem:[%s5983_s25 + $0xbb] sm:$0xff] }
 0x1d6   : > { %v6539_v52 = vadd.f32 %v1764_v49, %v1434_v22  ;;  %v1436_v0 = vadd.f32 %v1357_v60, %v6139_v6  ;;  %v1124_v49 = vpack.c.bf16 %v1104_v36, %v1103_v57  ;;  %v1534_v60 = vpack.c.bf16 %v1514_v16, %v1513_v40  ;;  %v4781_v36 = vld [vmem:[%s8038_s1 + $0x180] sm:$0xf]  ;;  %v5456_v40 = vld [vmem:[%s8038_s1 + $0x184] sm:$0xf0]  ;;  %v5455_v16 = vld [vmem:[%s8038_s1 + $0x184] sm:$0xf] }
 0x1d7   : > { %4677 = vmatmul.msk.bf16.gmra.mxu0 %vm568_vm0, %v1123_v61 }
 0x1d8   : > { %4693 = vmatmul.msk.bf16.gmra.mxu1 %vm568_vm0, %v1123_v61 }
 0x1d9   : > { %4757 = vmatmul.msk.bf16.gmra.mxu2 %vm568_vm0, %v1533_v28 }
 0x1da   : > { %4773 = vmatmul.msk.bf16.gmra.mxu3 %vm568_vm0, %v1533_v28 }
 0x1dc   : > { %v1678_v17 = vpop.f32.mrf.mxu2  ;;  %v1270_v2 = vpop.f32.mrf.mxu0 }
 0x1dd   : > { %v6547_v27 = vadd.f32 %v1678_v17, %v1435_v62  ;;  %v1767_v38 = vpop.f32.mrf.mxu3  ;;  %v1437_v22 = vadd.f32 %v1270_v2, %v6145_v14  ;;  %v1359_v35 = vpop.f32.mrf.mxu1 }
 0x1de   : > { %v6549_v3 = vadd.f32 %v1767_v38, %v1436_v0  ;;  %v1438_v6 = vadd.f32 %v1359_v35, %v6147_v18 }
 0x1e4   : > { %v1680_v61 = vpop.f32.mrf.mxu2  ;;  %v1273_v62 = vpop.f32.mrf.mxu0 }
 0x1e5   : > { %v6557_v29 = vadd.f32 %v1680_v61, %v1437_v22  ;;  %v1769_v28 = vpop.f32.mrf.mxu3  ;;  %v1439_v0 = vadd.f32 %v1273_v62, %v6153_v21  ;;  %v1362_v38 = vpop.f32.mrf.mxu1  ;;  %v4782_v61 = vor.u32 %v5456_v40, %v4781_v36  ;;  %v1515_v62 = vld [vmem:[%s5983_s25 + $0xc3] sm:$0xff] }
 0x1e6   : > { %v6559_v17 = vadd.f32 %v1769_v28, %v1438_v6  ;;  %v1440_v14 = vadd.f32 %v1362_v38, %v6155_v24  ;;  %v1106_v28 = vld [vmem:[%s5983_s25 + $0xca] sm:$0xff] }
 0x1e7   : > { %4678 = vmatmul.msk.bf16.gmra.mxu0 %vm568_vm0, %v1124_v49 }
 0x1e8   : > { %4694 = vmatmul.msk.bf16.gmra.mxu1 %vm568_vm0, %v1124_v49  ;;  %v1105_v49 = vld [vmem:[%s5983_s25 + $0xc2] sm:$0xff]  ;;  %2076 = vmatpush.bf16.msra.mxu0 %v4782_v61 }
 0x1e9   : > { %4758 = vmatmul.msk.bf16.gmra.mxu2 %vm568_vm0, %v1534_v60  ;;  %v1125_v38 = vpack.c.bf16 %v1106_v28, %v1105_v49  ;;  %v1108_v49 = vld [vmem:[%s5983_s25 + $0xda] sm:$0xff] }
 0x1ea   : > { %4774 = vmatmul.msk.bf16.gmra.mxu3 %vm568_vm0, %v1534_v60  ;;  %v1516_v60 = vld [vmem:[%s5983_s25 + $0xcb] sm:$0xff]  ;;  %v1518_v28 = vld [vmem:[%s5983_s25 + $0xdb] sm:$0xff] }
 0x1ec   : > { %v1683_v18 = vpop.f32.mrf.mxu2  ;;  %v1275_v21 = vpop.f32.mrf.mxu0 }
 0x1ed   : > { %v6567_v2 = vadd.f32 %v1683_v18, %v1439_v0  ;;  %v1772_v22 = vpop.f32.mrf.mxu3  ;;  %v1441_v24 = vadd.f32 %v1275_v21, %v6173_v42  ;;  %v1364_v6 = vpop.f32.mrf.mxu1  ;;  %v4783_v42 = vld [vmem:[%s8038_s1 + $0x188] sm:$0xf0]  ;;  %v1535_v21 = vpack.c.bf16 %v1516_v60, %v1515_v62  ;;  %s5666_s1 = scalar_lea.hbm %s5665_s21, 8 }
 0x1ee   : > { %v6569_v35 = vadd.f32 %v1772_v22, %v1440_v14  ;;  %v1442_v57 = vadd.f32 %v1364_v6, %v6175_v46  ;;  %v4786_v46 = vor.u32 %v5455_v16, %v4783_v42  ;;  %v1107_v42 = vld [vmem:[%s5983_s25 + $0xd2] sm:$0xff]  ;;  %p5667_p11 = scmp.ne.s32.totalorder %s5665_s21, %s5666_s1  ;;  %p5672_p1 = scmp.lt.s32.totalorder %s5670_s12, %s5666_s1 }
 0x1f0   : > { %2165 = vmatpush.bf16.msra.mxu1 %v4786_v46  ;;  %v1126_v46 = vpack.c.bf16 %v1108_v49, %v1107_v42  ;;  %p5668_p12 = pnand %p5667_p11, %p5813_p5  ;;  %p5673_p2 = por %p5672_p1, %p5671_p0 }
 0x1f2   : > { %p5669_p13 = pneg %p5668_p12 }
 0x1f4   : > { %v1685_v0 = vpop.f32.mrf.mxu2  ;;  %v1278_v22 = vpop.f32.mrf.mxu0  ;;  %p5674_p3 = pnand %p5673_p2, %p5669_p13 }
 0x1f5   : > { %v6589_v14 = vadd.f32 %v1685_v0, %v1441_v24  ;;  %v1774_v18 = vpop.f32.mrf.mxu3  ;;  %v6594_v36 = vadd.f32 %v1278_v22, %v6181_v50  ;;  %v1367_v40 = vpop.f32.mrf.mxu1 }
 0x1f6   : > { %v6591_v6 = vadd.f32 %v1774_v18, %v1442_v57  ;;  %v6597_v16 = vadd.f32 %v1367_v40, %v6183_v54  ;;  %v1517_v54 = vld [vmem:[%s5983_s25 + $0xd3] sm:$0xff]  ;;  %v1110_v40 = vld [vmem:[%s5983_s25 + $0xea] sm:$0xff] }
 0x1f7   : > { %4679 = vmatmul.msk.bf16.gmra.mxu0 %vm568_vm0, %v1125_v38  ;;  %v1536_v60 = vpack.c.bf16 %v1518_v28, %v1517_v54 }
 0x1f8   : > { %4695 = vmatmul.msk.bf16.gmra.mxu1 %vm568_vm0, %v1125_v38 }
 0x1f9   : > { %4759 = vmatmul.msk.bf16.gmra.mxu2 %vm568_vm0, %v1535_v21 }
 0x1fa   : > { %4775 = vmatmul.msk.bf16.gmra.mxu3 %vm568_vm0, %v1535_v21  ;;  %v1109_v21 = vld [vmem:[%s5983_s25 + $0xe2] sm:$0xff] }
 0x1fc   : > { %v1280_v24 = vpop.f32.mrf.mxu0 }
 0x1fd   : > { %v6604_v61 = vadd.f32 %v1280_v24, %v6210_v11  ;;  %v1369_v57 = vpop.f32.mrf.mxu1  ;;  %v1520_v24 = vld [vmem:[%s5983_s25 + $0xeb] sm:$0xff] }
 0x1fe   : > { %v6607_v50 = vadd.f32 %v1369_v57, %v6215_v19  ;;  %v1127_v57 = vpack.c.bf16 %v1110_v40, %v1109_v21 }
 0x204   : > { %v1283_v62 = vpop.f32.mrf.mxu0 }
 0x205   : > { %v6614_v0 = vadd.f32 %v1283_v62, %v6242_v37  ;;  %v1372_v11 = vpop.f32.mrf.mxu1 }
 0x206   : > { %v6617_v38 = vadd.f32 %v1372_v11, %v6247_v44  ;;  %v1519_v44 = vld [vmem:[%s5983_s25 + $0xe3] sm:$0xff]  ;;  %v1112_v11 = vld [vmem:[%s5983_s25 + $0xfa] sm:$0xf] }
 0x207   : > { %4680 = vmatmul.msk.bf16.gmra.mxu0 %vm568_vm0, %v1126_v46  ;;  %v1537_v49 = vpack.c.bf16 %v1520_v24, %v1519_v44 }
 0x208   : > { %4696 = vmatmul.msk.bf16.gmra.mxu1 %vm568_vm0, %v1126_v46 }
 0x209   : > { %4760 = vmatmul.msk.bf16.gmra.mxu2 %vm568_vm0, %v1536_v60 }
 0x20a   : > { %4776 = vmatmul.msk.bf16.gmra.mxu3 %vm568_vm0, %v1536_v60  ;;  %v1111_v60 = vld [vmem:[%s5983_s25 + $0xf2] sm:$0xff] }
 0x20c   : > { %v1285_v19 = vpop.f32.mrf.mxu0 }
 0x20d   : > { %v6624_v18 = vadd.f32 %v1285_v19, %v6274_v7  ;;  %v1374_v22 = vpop.f32.mrf.mxu1  ;;  %v1522_v19 = vld [vmem:[%s5983_s25 + $0xfb] sm:$0xf] }
 0x20e   : > { %v6627_v37 = vadd.f32 %v1374_v22, %v6279_v15  ;;  %v1128_v22 = vpack.c.bf16 %v1112_v11, %v1111_v60 }
 0x214   : > { %v1288_v42 = vpop.f32.mrf.mxu0 }
 0x215   : > { %v6634_v54 = vadd.f32 %v1288_v42, %v6297_v31  ;;  %v1377_v7 = vpop.f32.mrf.mxu1 }
 0x216   : > { %v6637_v28 = vadd.f32 %v1377_v7, %v6299_v34  ;;  %v1521_v34 = vld [vmem:[%s5983_s25 + $0xf3] sm:$0xff] }
 0x217   : > { %4681 = vmatmul.msk.bf16.gmra.mxu0 %vm568_vm0, %v1127_v57  ;;  %v1538_v40 = vpack.c.bf16 %v1522_v19, %v1521_v34  ;;  %v1902_v7 = vld [vmem:[%s5983_s25 + $0xc] sm:$0xff] }
 0x218   : > { %4697 = vmatmul.msk.bf16.gmra.mxu1 %vm568_vm0, %v1127_v57 }
 0x219   : > { %4761 = vmatmul.msk.bf16.gmra.mxu2 %vm568_vm0, %v1537_v49 }
 0x21a   : > { %4777 = vmatmul.msk.bf16.gmra.mxu3 %vm568_vm0, %v1537_v49  ;;  %v1901_v49 = vld [vmem:[%s5983_s25 + $0x4] sm:$0xff] }
 0x21c   : > { %v1290_v15 = vpop.f32.mrf.mxu0 }
 0x21d   : > { %v6644_v46 = vadd.f32 %v1290_v15, %v6305_v48  ;;  %v1379_v62 = vpop.f32.mrf.mxu1 }
 0x21e   : > { %v6647_v31 = vadd.f32 %v1379_v62, %v6307_v56 }
 0x224   : > { %v1293_v21 = vpop.f32.mrf.mxu0 }
 0x225   : > { %v6654_v44 = vadd.f32 %v1293_v21, %v6313_v59  ;;  %v1382_v24 = vpop.f32.mrf.mxu1 }
 0x226   : > { %v6657_v48 = vadd.f32 %v1382_v24, %v6315_v63  ;;  %v1933_v63 = vpack.c.bf16 %v1902_v7, %v1901_v49 }
 0x227   : > { %4682 = vmatmul.msk.bf16.gmra.mxu0 %vm568_vm0, %v1128_v22 }
 0x228   : > { %4698 = vmatmul.msk.bf16.gmra.mxu1 %vm568_vm0, %v1128_v22 }
 0x229   : > { %4762 = vmatmul.msk.bf16.gmra.mxu2 %vm568_vm0, %v1538_v40 }
 0x22a   : > { %4778 = vmatmul.msk.bf16.gmra.mxu3 %vm568_vm0, %v1538_v40 }
 0x22c   : > { %v1295_v56 = vpop.f32.mrf.mxu0 }
 0x22d   : > { %v6664_v57 = vadd.f32 %v1295_v56, %v6321_v12  ;;  %v1384_v42 = vpop.f32.mrf.mxu1  ;;  %v4917_v12 = vld [vmem:[%s8024_s3 + $0xf0] sm:$0xf]  ;;  %v1903_v56 = vld [vmem:[%s5983_s25 + $0x14] sm:$0xff] }
 0x22e   : > { %v6667_v59 = vadd.f32 %v1384_v42, %v6323_v20  ;;  %v5498_v20 = vld [vmem:[%s8024_s3 + $0xf4] sm:$0xf0]  ;;  %v1904_v42 = vld [vmem:[%s5983_s25 + $0x1c] sm:$0xff] }
 0x22f   : > { %v4918_v34 = vor.u32 %v5498_v20, %v4917_v12  ;;  %v1934_v49 = vpack.c.bf16 %v1904_v42, %v1903_v56 }
 0x231   : > { %2667 = vmatpush.bf16.msra.mxu2 %v4918_v34  ;;  %v1906_v34 = vld [vmem:[%s5983_s25 + $0x2c] sm:$0xff] }
 0x234   : > { %v1298_v15 = vpop.f32.mrf.mxu0 }
 0x235   : > { %v6672_v62 = vadd.f32 %v1298_v15, %v6329_v26  ;;  %v1387_v60 = vpop.f32.mrf.mxu1  ;;  %v5497_v26 = vld [vmem:[%s8024_s3 + $0xf4] sm:$0xf] }
 0x236   : > { %v6675_v11 = vadd.f32 %v1387_v60, %v6331_v30  ;;  %v4919_v30 = vld [vmem:[%s8024_s3 + $0xf8] sm:$0xf0] }
 0x237   : > { %4827 = vmatmul.msk.bf16.vlgmr.msra.gmra.mxu0 %vm568_vm0, %v1933_v63  ;;  %v4922_v19 = vor.u32 %v5497_v26, %v4919_v30  ;;  %v1905_v26 = vld [vmem:[%s5983_s25 + $0x24] sm:$0xff] }
 0x238   : > { %4843 = vmatmul.msk.bf16.vlgmr.msra.gmra.mxu1 %vm568_vm0, %v1933_v63 }
 0x239   : > { %2716 = vmatpush.bf16.msra.mxu3 %v4922_v19 }
 0x23c   : > { %v1300_v22 = vpop.f32.mrf.mxu0 }
 0x23d   : > { %v6692_v21 = vadd.f32 %v1300_v22, %v6337_v45  ;;  %v1389_v40 = vpop.f32.mrf.mxu1 }
 0x23e   : > { %v6695_v24 = vadd.f32 %v1389_v40, %v6339_v55 }
 0x244   : > { %v1303_v7 = vpop.f32.mrf.mxu0 }
 0x245   : > { %v6700_v63 = vadd.f32 %v1303_v7, %v6357_v8  ;;  %v1392_v15 = vpop.f32.mrf.mxu1  ;;  %v1935_v8 = vpack.c.bf16 %v1906_v34, %v1905_v26 }
 0x246   : > { %v6703_v60 = vadd.f32 %v1392_v15, %v6359_v13 }
 0x247   : > { %4828 = vmatmul.msk.bf16.gmra.mxu0 %vm568_vm0, %v1934_v49 }
 0x248   : > { %4844 = vmatmul.msk.bf16.gmra.mxu1 %vm568_vm0, %v1934_v49 }
 0x24c   : > { %v1305_v45 = vpop.f32.mrf.mxu0 }
 0x24d   : > { %v6708_v12 = vadd.f32 %v1305_v45, %v6365_v33  ;;  %v1394_v55 = vpop.f32.mrf.mxu1  ;;  %v4909_v33 = vld [vmem:[%s8024_s3 + $0xe0] sm:$0xf]  ;;  %v1907_v45 = vld [vmem:[%s5983_s25 + $0x34] sm:$0xff] }
 0x24e   : > { %v6711_v20 = vadd.f32 %v1394_v55, %v6367_v41  ;;  %v5496_v41 = vld [vmem:[%s8024_s3 + $0xe4] sm:$0xf0]  ;;  %v1908_v55 = vld [vmem:[%s5983_s25 + $0x3c] sm:$0xff] }
 0x24f   : > { %v4910_v40 = vor.u32 %v5496_v41, %v4909_v33  ;;  %v1936_v26 = vpack.c.bf16 %v1908_v55, %v1907_v45  ;;  %v8058_v33 = vld [vmem:[#allocation11_spill] sm:$0xff] }
 0x251   : > { %2668 = vmatpush.bf16.msra.mxu2 %v4910_v40 }
 0x254   : > { %v1308_v30 = vpop.f32.mrf.mxu0 }
 0x255   : > { %v6716_v19 = vadd.f32 %v1308_v30, %v6373_v51  ;;  %v1397_v13 = vpop.f32.mrf.mxu1  ;;  %v5495_v51 = vld [vmem:[%s8024_s3 + $0xe4] sm:$0xf] }
 0x256   : > { %v6719_v22 = vadd.f32 %v1397_v13, %v6375_v58  ;;  %v4911_v58 = vld [vmem:[%s8024_s3 + $0xe8] sm:$0xf0] }
 0x257   : > { %4829 = vmatmul.msk.bf16.gmra.mxu0 %vm568_vm0, %v1935_v8  ;;  %v4914_v56 = vor.u32 %v5495_v51, %v4911_v58  ;;  %v8060_v51 = vld [vmem:[#allocation12_spill] sm:$0xff]  ;;  %v8062_v58 = vld [vmem:[#allocation13_spill] sm:$0xff] }
 0x258   : > { %4845 = vmatmul.msk.bf16.gmra.mxu1 %vm568_vm0, %v1935_v8  ;;  %v8057_v8 = vld [vmem:[#allocation10_spill] sm:$0xff] }
 0x259   : > { %2717 = vmatpush.bf16.msra.mxu3 %v4914_v56 }
 0x25c   : > { %v1310_v42 = vpop.f32.mrf.mxu0 }
 0x25d   : > { %v6736_v49 = vadd.f32 %v1310_v42, %v6381_v10  ;;  %v1399_v7 = vpop.f32.mrf.mxu1  ;;  %v1909_v42 = vld [vmem:[%s5983_s25 + $0x44] sm:$0xff] }
 0x25e   : > { %v6739_v15 = vadd.f32 %v1399_v7, %v6383_v23  ;;  %v1910_v7 = vld [vmem:[%s5983_s25 + $0x4c] sm:$0xff] }
 0x25f   : > { %v1937_v45 = vpack.c.bf16 %v1910_v7, %v1909_v42 }
 0x264   : > { %v1313_v34 = vpop.f32.mrf.mxu0 }
 0x265   : > { %v6744_v30 = vadd.f32 %v1313_v34, %v8057_v8  ;;  %v1402_v13 = vpop.f32.mrf.mxu1  ;;  %v8064_v34 = vld [vmem:[#allocation14_spill] sm:$0xff] }
 0x266   : > { %v6747_v41 = vadd.f32 %v1402_v13, %v8058_v33  ;;  %v8066_v33 = vld [vmem:[#allocation15_spill] sm:$0xff] }
 0x267   : > { %4830 = vmatmul.msk.bf16.gmra.mxu0 %vm568_vm0, %v1936_v26 }
 0x268   : > { %8059 = vst [vmem:[#allocation10_spill] sm:$0xff] %v6747_v41  ;;  %4846 = vmatmul.msk.bf16.gmra.mxu1 %vm568_vm0, %v1936_v26  ;;  %v4901_v26 = vld [vmem:[%s8024_s3 + $0xd0] sm:$0xf] }
 0x26c   : > { %v1315_v10 = vpop.f32.mrf.mxu0 }
 0x26d   : > { %v6752_v40 = vadd.f32 %v1315_v10, %v8060_v51  ;;  %v1404_v23 = vpop.f32.mrf.mxu1  ;;  %v5494_v10 = vld [vmem:[%s8024_s3 + $0xd4] sm:$0xf0]  ;;  %v5493_v51 = vld [vmem:[%s8024_s3 + $0xd4] sm:$0xf] }
 0x26e   : > { %v6755_v56 = vadd.f32 %v1404_v23, %v8062_v58  ;;  %v4902_v23 = vor.u32 %v5494_v10, %v4901_v26  ;;  %v4903_v58 = vld [vmem:[%s8024_s3 + $0xd8] sm:$0xf0] }
 0x26f   : > { %8061 = vst [vmem:[#allocation11_spill] sm:$0xff] %v6752_v40  ;;  %v4906_v42 = vor.u32 %v5493_v51, %v4903_v58 }
 0x270   : > { %8063 = vst [vmem:[#allocation12_spill] sm:$0xff] %v6755_v56  ;;  %2669 = vmatpush.bf16.msra.mxu2 %v4902_v23  ;;  %v8071_v56 = vld [vmem:[#allocation18_spill] sm:$0xff]  ;;  %v8073_v23 = vld [vmem:[#allocation19_spill] sm:$0xff] }
 0x271   : > { %2718 = vmatpush.bf16.msra.mxu3 %v4906_v42 }
 0x274   : > { %v1318_v55 = vpop.f32.mrf.mxu0 }
 0x275   : > { %v6760_v8 = vadd.f32 %v1318_v55, %v8064_v34  ;;  %v1407_v13 = vpop.f32.mrf.mxu1 }
 0x276   : > { %v6763_v41 = vadd.f32 %v1407_v13, %v8066_v33  ;;  %v8069_v13 = vld [vmem:[#allocation17_spill] sm:$0xff] }
 0x277   : > { %8065 = vst [vmem:[#allocation13_spill] sm:$0xff] %v6760_v8  ;;  %4831 = vmatmul.msk.bf16.gmra.mxu0 %vm568_vm0, %v1937_v45  ;;  %v1912_v8 = vld [vmem:[%s5983_s25 + $0x5c] sm:$0xff] }
 0x278   : > { %8067 = vst [vmem:[#allocation14_spill] sm:$0xff] %v6763_v41  ;;  %4847 = vmatmul.msk.bf16.gmra.mxu1 %vm568_vm0, %v1937_v45  ;;  %v8068_v45 = vld [vmem:[#allocation16_spill] sm:$0xff]  ;;  %v1911_v41 = vld [vmem:[%s5983_s25 + $0x54] sm:$0xff] }
 0x279   : > { %v1938_v26 = vpack.c.bf16 %v1912_v8, %v1911_v41  ;;  %v1913_v41 = vld [vmem:[%s5983_s25 + $0x64] sm:$0xff]  ;;  %v1914_v8 = vld [vmem:[%s5983_s25 + $0x6c] sm:$0xff] }
 0x27c   : > { %v1320_v7 = vpop.f32.mrf.mxu0 }
 0x27d   : > { %v6780_v55 = vadd.f32 %v1320_v7, %v8068_v45  ;;  %v1409_v34 = vpop.f32.mrf.mxu1  ;;  %v8075_v7 = vld [vmem:[#allocation20_spill] sm:$0xff] }
 0x27e   : > { %v6783_v33 = vadd.f32 %v1409_v34, %v8069_v13  ;;  %v8077_v13 = vld [vmem:[#allocation21_spill] sm:$0xff] }
 0x280   : > { %8070 = vst [vmem:[#allocation15_spill] sm:$0xff] %v6783_v33 }
 0x284   : > { %v1323_v10 = vpop.f32.mrf.mxu0 }
 0x285   : > { %v6788_v40 = vadd.f32 %v1323_v10, %v8071_v56  ;;  %v1412_v51 = vpop.f32.mrf.mxu1  ;;  %v1939_v56 = vpack.c.bf16 %v1914_v8, %v1913_v41  ;;  %v8082_v8 = vld [vmem:[#allocation23_spill] sm:$0xff] }
 0x286   : > { %v6791_v58 = vadd.f32 %v1412_v51, %v8073_v23  ;;  %v8080_v23 = vld [vmem:[#allocation22_spill] sm:$0xff] }
 0x287   : > { %8072 = vst [vmem:[#allocation16_spill] sm:$0xff] %v6788_v40  ;;  %4832 = vmatmul.msk.bf16.gmra.mxu0 %vm568_vm0, %v1938_v26 }
 0x288   : > { %8074 = vst [vmem:[#allocation17_spill] sm:$0xff] %v6791_v58  ;;  %4848 = vmatmul.msk.bf16.gmra.mxu1 %vm568_vm0, %v1938_v26  ;;  %v4893_v26 = vld [vmem:[%s8024_s3 + $0xc0] sm:$0xf] }
 0x28c   : > { %v1325_v42 = vpop.f32.mrf.mxu0 }
 0x28d   : > { %v6796_v45 = vadd.f32 %v1325_v42, %v8075_v7  ;;  %v1414_v34 = vpop.f32.mrf.mxu1  ;;  %v5492_v42 = vld [vmem:[%s8024_s3 + $0xc4] sm:$0xf0] }
 0x28e   : > { %v6799_v33 = vadd.f32 %v1414_v34, %v8077_v13  ;;  %v4894_v7 = vor.u32 %v5492_v42, %v4893_v26  ;;  %v4895_v34 = vld [vmem:[%s8024_s3 + $0xc8] sm:$0xf0] }
 0x28f   : > { %8076 = vst [vmem:[#allocation18_spill] sm:$0xff] %v6796_v45 }
 0x290   : > { %8078 = vst [vmem:[#allocation19_spill] sm:$0xff] %v6799_v33  ;;  %2670 = vmatpush.bf16.msra.mxu2 %v4894_v7 }
 0x294   : > { %v1328_v10 = vpop.f32.mrf.mxu0 }
 0x295   : > { %v6804_v40 = vadd.f32 %v1328_v10, %v6461_v43  ;;  %v1417_v51 = vpop.f32.mrf.mxu1  ;;  %v5491_v43 = vld [vmem:[%s8024_s3 + $0xc4] sm:$0xf] }
 0x296   : > { %v6807_v58 = vadd.f32 %v1417_v51, %v8080_v23  ;;  %v4898_v41 = vor.u32 %v5491_v43, %v4895_v34  ;;  %v8083_v51 = vld [vmem:[#allocation24_spill] sm:$0xff] }
 0x297   : > { %8079 = vst [vmem:[#allocation20_spill] sm:$0xff] %v6804_v40  ;;  %4833 = vmatmul.msk.bf16.gmra.mxu0 %vm568_vm0, %v1939_v56  ;;  %v1916_v40 = vld [vmem:[%s5983_s25 + $0x7c] sm:$0xff] }
 0x298   : > { %8081 = vst [vmem:[#allocation21_spill] sm:$0xff] %v6807_v58  ;;  %4849 = vmatmul.msk.bf16.gmra.mxu1 %vm568_vm0, %v1939_v56  ;;  %2719 = vmatpush.bf16.msra.mxu3 %v4898_v41  ;;  %v1915_v58 = vld [vmem:[%s5983_s25 + $0x74] sm:$0xff]  ;;  %v8085_v41 = vld [vmem:[#allocation25_spill] sm:$0xff] }
 0x299   : > { %v1940_v26 = vpack.c.bf16 %v1916_v40, %v1915_v58  ;;  %v1917_v40 = vld [vmem:[%s5983_s25 + $0x84] sm:$0xff] }
 0x29c   : > { %v1330_v13 = vpop.f32.mrf.mxu0 }
 0x29d   : > { %v6824_v56 = vadd.f32 %v1330_v13, %v8082_v8  ;;  %v1419_v10 = vpop.f32.mrf.mxu1 }
 0x29e   : > { %v6827_v23 = vadd.f32 %v1419_v10, %v8083_v51 }
 0x2a4   : > { %v1333_v42 = vpop.f32.mrf.mxu0 }
 0x2a5   : > { %v6832_v33 = vadd.f32 %v1333_v42, %v6477_v39  ;;  %v1422_v45 = vpop.f32.mrf.mxu1  ;;  %v1918_v39 = vld [vmem:[%s5983_s25 + $0x8c] sm:$0xff] }
 0x2a6   : > { %v6835_v43 = vadd.f32 %v1422_v45, %v6479_v5  ;;  %v1941_v58 = vpack.c.bf16 %v1918_v39, %v1917_v40  ;;  %v8087_v5 = vld [vmem:[#allocation26_spill] sm:$0xff]  ;;  %v1920_v40 = vld [vmem:[%s5983_s25 + $0x9c] sm:$0xff] }
 0x2a7   : > { %4834 = vmatmul.msk.bf16.gmra.mxu0 %vm568_vm0, %v1940_v26 }
 0x2a8   : > { %4850 = vmatmul.msk.bf16.gmra.mxu1 %vm568_vm0, %v1940_v26 }
 0x2ac   : > { %v1335_v7 = vpop.f32.mrf.mxu0 }
 0x2ad   : > { %v6840_v34 = vadd.f32 %v1335_v7, %v6485_v53  ;;  %v1424_v13 = vpop.f32.mrf.mxu1 }
 0x2ae   : > { %v6843_v8 = vadd.f32 %v1424_v13, %v8085_v41 }
 0x2af   : > { %8084 = vst [vmem:[#allocation22_spill] sm:$0xff] %v6840_v34 }
 0x2b0   : > { %8086 = vst [vmem:[#allocation23_spill] sm:$0xff] %v6843_v8  ;;  %v1919_v8 = vld [vmem:[%s5983_s25 + $0x94] sm:$0xff] }
 0x2b4   : > { %v2078_v10 = vpop.f32.mrf.mxu0 }
 0x2b5   : > { %v2247_v45 = vadd.f32 %v2078_v10, %v8087_v5  ;;  %v2167_v51 = vpop.f32.mrf.mxu1  ;;  %v4885_v10 = vld [vmem:[%s8024_s3 + $0xb0] sm:$0xf] }
 0x2b6   : > { %v2248_v42 = vadd.f32 %v2167_v51, %v6497_v25  ;;  %v5490_v25 = vld [vmem:[%s8024_s3 + $0xb4] sm:$0xf0]  ;;  %v6869_v51 = vpop.f32.mrf.mxu3 }
 0x2b7   : > { %4835 = vmatmul.msk.bf16.gmra.mxu0 %vm568_vm0, %v1941_v58  ;;  %v4886_v5 = vor.u32 %v5490_v25, %v4885_v10 }
 0x2b8   : > { %v2311_v26 = vmax.f32 %v2247_v45, %v2248_v42  ;;  %4851 = vmatmul.msk.bf16.gmra.mxu1 %vm568_vm0, %v1941_v58  ;;  %v5489_v58 = vld [vmem:[%s8024_s3 + $0xb4] sm:$0xf]  ;;  %v1942_v42 = vpack.c.bf16 %v1920_v40, %v1919_v8 }
 0x2b9   : > { %2671 = vmatpush.bf16.msra.mxu2 %v4886_v5 }
 0x2ba   : > { %2344 = vst [vmem:[#allocation2] sm:$0xff] %v2311_v26 }
 0x2bc   : > { %v2080_v53 = vpop.f32.mrf.mxu0 }
 0x2bd   : > { %v2249_v7 = vadd.f32 %v2080_v53, %v6505_v1  ;;  %v2169_v13 = vpop.f32.mrf.mxu1  ;;  %v4887_v1 = vld [vmem:[%s8024_s3 + $0xb8] sm:$0xf0] }
 0x2be   : > { %v2250_v41 = vadd.f32 %v2169_v13, %v6507_v4  ;;  %v6867_v4 = vpop.f32.mrf.mxu2  ;;  %v4890_v45 = vor.u32 %v5489_v58, %v4887_v1  ;;  %v6883_v58 = vpop.f32.mrf.mxu3 }
 0x2c0   : > { %v2312_v39 = vmax.f32 %v2249_v7, %v2250_v41  ;;  %2720 = vmatpush.bf16.msra.mxu3 %v4890_v45  ;;  %v6877_v41 = vld [vmem:[%s8023_s2] ss:$0 sm:$0xff] }
 0x2c1   : > { %v4877_v45 = vld [vmem:[%s8024_s3 + $0xa0] sm:$0xf] }
 0x2c2   : > { %2345 = vst [vmem:[#allocation2 + $0x8] sm:$0xff] %v2312_v39 }
 0x2c4   : > { %v2083_v26 = vpop.f32.mrf.mxu0 }
 0x2c5   : > { %v2251_v53 = vadd.f32 %v2083_v26, %v6527_v9  ;;  %v2172_v7 = vpop.f32.mrf.mxu1  ;;  %v5487_v26 = vld [vmem:[%s8024_s3 + $0xa4] sm:$0xf] }
 0x2c6   : > { %v2252_v13 = vadd.f32 %v2172_v7, %v6529_v47  ;;  %v6880_v25 = vpop.f32.mrf.mxu2 }
 0x2c7   : > { %4836 = vmatmul.msk.bf16.gmra.mxu0 %vm568_vm0, %v1942_v42 }
 0x2c8   : > { %v2313_v39 = vmax.f32 %v2251_v53, %v2252_v13  ;;  %4852 = vmatmul.msk.bf16.gmra.mxu1 %vm568_vm0, %v1942_v42  ;;  %v5488_v42 = vld [vmem:[%s8024_s3 + $0xa4] sm:$0xf0] }
 0x2c9   : > { %v2376_v10 = vld [vmem:[#allocation2] ss:$2 sm:$0xff]  ;;  %v2408_v8 = vld [vmem:[#allocation2 + $0x1] ss:$2 sm:$0xff]  ;;  %v4878_v13 = vor.u32 %v5488_v42, %v4877_v45  ;;  %v5047_v45 = vld [vmem:[%s8024_s3 + $0x178] sm:$0xf0] }
 0x2ca   : > { %v2439_v40 = vmax.f32 %v2376_v10, %v2408_v8  ;;  %2346 = vst [vmem:[#allocation2 + $0x10] sm:$0xff] %v2313_v39  ;;  %v1921_v39 = vld [vmem:[%s5983_s25 + $0xa4] sm:$0xff] }
 0x2cb   : > { %2672 = vmatpush.bf16.msra.mxu2 %v4878_v13 }
 0x2cc   : > { %v2459_v9 = vadd.f32 %v6877_v41, %v2439_v40  ;;  %v2085_v47 = vpop.f32.mrf.mxu0  ;;  %v1922_v40 = vld [vmem:[%s5983_s25 + $0xac] sm:$0xff] }
 0x2cd   : > { %v2253_v5 = vadd.f32 %v2085_v47, %v6537_v32  ;;  %v2174_v1 = vpop.f32.mrf.mxu1  ;;  %v4879_v32 = vld [vmem:[%s8024_s3 + $0xa8] sm:$0xf0]  ;;  %v5045_v47 = vld [vmem:[%s8024_s3 + $0x170] sm:$0xf] }
 0x2ce   : > { %v2475_v53 = vmax.f32 %v2459_v9, 0.0  ;;  %v2254_v7 = vadd.f32 %v2174_v1, %v6539_v52  ;;  %v4882_v10 = vor.u32 %v5487_v26, %v4879_v32  ;;  %v5514_v9 = vld [vmem:[%s8024_s3 + $0x174] sm:$0xf0]  ;;  %v5513_v1 = vld [vmem:[%s8024_s3 + $0x174] sm:$0xf] }
 0x2cf   : > { %v5046_v52 = vor.u32 %v5514_v9, %v5045_v47  ;;  %v5050_v42 = vor.u32 %v5513_v1, %v5047_v45  ;;  %v5486_v26 = vld [vmem:[%s8024_s3 + $0x94] sm:$0xf0]  ;;  %v4871_v32 = vld [vmem:[%s8024_s3 + $0x98] sm:$0xf0]  ;;  %v4861_v1 = vld [vmem:[%s8024_s3 + $0x80] sm:$0xf] }
 0x2d0   : > { %2491 = vst [vmem:[#allocation3] sm:$0xff] %v2475_v53  ;;  %v2314_v8 = vmax.f32 %v2253_v5, %v2254_v7  ;;  %2721 = vmatpush.bf16.msra.mxu3 %v4882_v10  ;;  %v4869_v5 = vld [vmem:[%s8024_s3 + $0x90] sm:$0xf]  ;;  %v5485_v53 = vld [vmem:[%s8024_s3 + $0x94] sm:$0xf]  ;;  %v1943_v7 = vpack.c.bf16 %v1922_v40, %v1921_v39 }
 0x2d1   : > { %3063 = vmatpush.bf16.msrb.mxu0 %v5046_v52  ;;  %v4870_v13 = vor.u32 %v5486_v26, %v4869_v5  ;;  %3112 = vmatpush.bf16.msrb.mxu1 %v5050_v42  ;;  %v4874_v47 = vor.u32 %v5485_v53, %v4871_v32  ;;  %v5484_v39 = vld [vmem:[%s8024_s3 + $0x84] sm:$0xf0]  ;;  %v5483_v40 = vld [vmem:[%s8024_s3 + $0x84] sm:$0xf]  ;;  %v6935_v52 = vpop.f32.mrf.mxu2  ;;  %v4863_v5 = vld [vmem:[%s8024_s3 + $0x88] sm:$0xf0]  ;;  %v6941_v42 = vpop.f32.mrf.mxu3 }
 0x2d2   : > { %2347 = vst [vmem:[#allocation2 + $0x18] sm:$0xff] %v2314_v8  ;;  %v4866_v26 = vor.u32 %v5483_v40, %v4863_v5  ;;  %v1924_v5 = vld [vmem:[%s5983_s25 + $0xbc] sm:$0xff] }
 0x2d3   : > { %2673 = vmatpush.bf16.msra.mxu2 %v4870_v13 }
 0x2d4   : > { %v2088_v10 = vpop.f32.mrf.mxu0  ;;  %2722 = vmatpush.bf16.msra.mxu3 %v4874_v47 }
 0x2d5   : > { %v2255_v8 = vadd.f32 %v2088_v10, %v6547_v27  ;;  %v2177_v9 = vpop.f32.mrf.mxu1  ;;  %v4862_v27 = vor.u32 %v5484_v39, %v4861_v1 }
 0x2d6   : > { %v2256_v45 = vadd.f32 %v2177_v9, %v6549_v3 }
 0x2d7   : > { %4837 = vmatmul.msk.bf16.gmra.mxu0 %vm568_vm0, %v1943_v7  ;;  %2674 = vmatpush.bf16.msra.mxu2 %v4862_v27 }
 0x2d8   : > { %v2315_v53 = vmax.f32 %v2255_v8, %v2256_v45  ;;  %4853 = vmatmul.msk.bf16.gmra.mxu1 %vm568_vm0, %v1943_v7  ;;  %2723 = vmatpush.bf16.msra.mxu3 %v4866_v26  ;;  %v1923_v45 = vld [vmem:[%s5983_s25 + $0xb4] sm:$0xff] }
 0x2d9   : > { %v2378_v13 = vld [vmem:[#allocation2 + $0x10] ss:$2 sm:$0xff]  ;;  %v2410_v32 = vld [vmem:[#allocation2 + $0x11] ss:$2 sm:$0xff]  ;;  %v6948_v8 = vpop.f32.mrf.mxu2  ;;  %v6952_v34 = vpop.f32.mrf.mxu3  ;;  %v1944_v27 = vpack.c.bf16 %v1924_v5, %v1923_v45 }
 0x2da   : > { %v2440_v3 = vmax.f32 %v2378_v13, %v2410_v32  ;;  %2348 = vst [vmem:[#allocation2 + $0x20] sm:$0xff] %v2315_v53 }
 0x2dc   : > { %v2460_v10 = vadd.f32 %v6877_v41, %v2440_v3  ;;  %v2090_v47 = vpop.f32.mrf.mxu0 }
 0x2dd   : > { %v2257_v9 = vadd.f32 %v2090_v47, %v6557_v29  ;;  %v2179_v1 = vpop.f32.mrf.mxu1 }
 0x2de   : > { %v2476_v39 = vmax.f32 %v2460_v10, 0.0  ;;  %v2258_v40 = vadd.f32 %v2179_v1, %v6559_v17 }
 0x2e0   : > { %2492 = vst [vmem:[#allocation3 + $0x8] sm:$0xff] %v2476_v39  ;;  %v2316_v7 = vmax.f32 %v2257_v9, %v2258_v40  ;;  %v5037_v9 = vld [vmem:[%s8024_s3 + $0x160] sm:$0xf]  ;;  %v5511_v39 = vld [vmem:[%s8024_s3 + $0x164] sm:$0xf] }
 0x2e1   : > { %v6958_v10 = vpop.f32.mrf.mxu2  ;;  %v5039_v40 = vld [vmem:[%s8024_s3 + $0x168] sm:$0xf0] }
 0x2e2   : > { %2349 = vst [vmem:[#allocation2 + $0x28] sm:$0xff] %v2316_v7  ;;  %v5042_v5 = vor.u32 %v5511_v39, %v5039_v40 }
 0x2e4   : > { %v2093_v26 = vpop.f32.mrf.mxu0  ;;  %3113 = vmatpush.bf16.msrb.mxu1 %v5042_v5 }
 0x2e5   : > { %v2259_v53 = vadd.f32 %v2093_v26, %v6567_v2  ;;  %v2182_v13 = vpop.f32.mrf.mxu1  ;;  %v5512_v2 = vld [vmem:[%s8024_s3 + $0x164] sm:$0xf0] }
 0x2e6   : > { %v2260_v29 = vadd.f32 %v2182_v13, %v6569_v35  ;;  %v6966_v35 = vpop.f32.mrf.mxu3  ;;  %v5038_v1 = vor.u32 %v5512_v2, %v5037_v9 }
 0x2e7   : > { %4838 = vmatmul.msk.bf16.gmra.mxu0 %vm568_vm0, %v1944_v27 }
 0x2e8   : > { %v2317_v32 = vmax.f32 %v2259_v53, %v2260_v29  ;;  %4854 = vmatmul.msk.bf16.gmra.mxu1 %vm568_vm0, %v1944_v27  ;;  %3064 = vmatpush.bf16.msrb.mxu0 %v5038_v1 }
 0x2e9   : > { %v2380_v17 = vld [vmem:[#allocation2 + $0x20] ss:$2 sm:$0xff]  ;;  %v2412_v3 = vld [vmem:[#allocation2 + $0x21] ss:$2 sm:$0xff]  ;;  %v6983_v2 = vpop.f32.mrf.mxu2 }
 0x2ea   : > { %v2441_v47 = vmax.f32 %v2380_v17, %v2412_v3  ;;  %2350 = vst [vmem:[#allocation2 + $0x30] sm:$0xff] %v2317_v32  ;;  %v1925_v32 = vld [vmem:[%s5983_s25 + $0xc4] sm:$0xff]  ;;  %v1926_v17 = vld [vmem:[%s5983_s25 + $0xcc] sm:$0xff]  ;;  %v1853_v3 = vadd.f32 %v6867_v4, %v6594_v36 }
 0x2eb   : > { %v1945_v9 = vpack.c.bf16 %v1926_v17, %v1925_v32 }
 0x2ec   : > { %v2461_v7 = vadd.f32 %v6877_v41, %v2441_v47  ;;  %v2095_v45 = vpop.f32.mrf.mxu0  ;;  %v1854_v47 = vadd.f32 %v6869_v51, %v6597_v16  ;;  %v1855_v16 = vadd.f32 %v6880_v25, %v6604_v61  ;;  %v1856_v51 = vadd.f32 %v6883_v58, %v6607_v50  ;;  %v5510_v61 = vld [vmem:[%s8024_s3 + $0x154] sm:$0xf0]  ;;  %v5509_v50 = vld [vmem:[%s8024_s3 + $0x154] sm:$0xf] }
 0x2ed   : > { %v2261_v27 = vadd.f32 %v2095_v45, %v6589_v14  ;;  %v2184_v26 = vpop.f32.mrf.mxu1  ;;  %v1927_v58 = vld [vmem:[%s5983_s25 + $0xd4] sm:$0xff] }
 0x2ee   : > { %v2477_v53 = vmax.f32 %v2461_v7, 0.0  ;;  %v2262_v13 = vadd.f32 %v2184_v26, %v6591_v6  ;;  %v6985_v1 = vpop.f32.mrf.mxu3  ;;  %v2547_v7 = vld [vmem:[#allocation3 + $0x1] sm:$0xff] }
 0x2f0   : > { %2493 = vst [vmem:[#allocation3 + $0x10] sm:$0xff] %v2477_v53  ;;  %v2318_v29 = vmax.f32 %v2261_v27, %v2262_v13 }
 0x2f1   : > { %v6994_v17 = vpop.f32.mrf.mxu2 }
 0x2f2   : > { %2351 = vst [vmem:[#allocation2 + $0x38] sm:$0xff] %v2318_v29 }
 0x2f4   : > { %v2098_v14 = vpop.f32.mrf.mxu0 }
 0x2f5   : > { %v2263_v39 = vadd.f32 %v2098_v14, %v1853_v3  ;;  %v2187_v6 = vpop.f32.mrf.mxu1  ;;  %v5029_v14 = vld [vmem:[%s8024_s3 + $0x150] sm:$0xf] }
 0x2f6   : > { %v2264_v40 = vadd.f32 %v2187_v6, %v1854_v47  ;;  %v6996_v47 = vpop.f32.mrf.mxu3  ;;  %v5030_v6 = vor.u32 %v5510_v61, %v5029_v14  ;;  %v5505_v14 = vld [vmem:[%s8024_s3 + $0x134] sm:$0xf]  ;;  %v5015_v61 = vld [vmem:[%s8024_s3 + $0x138] sm:$0xf0] }
 0x2f7   : > { %4839 = vmatmul.msk.bf16.gmra.mxu0 %vm568_vm0, %v1945_v9  ;;  %v2548_v45 = vld [vmem:[#allocation3 + $0x9] sm:$0xff] }
 0x2f8   : > { %v2319_v5 = vmax.f32 %v2263_v39, %v2264_v40  ;;  %4855 = vmatmul.msk.bf16.gmra.mxu1 %vm568_vm0, %v1945_v9  ;;  %v2563_v36 = vpack.c.bf16 %v2548_v45, %v2547_v7  ;;  %v1928_v39 = vld [vmem:[%s5983_s25 + $0xdc] sm:$0xff]  ;;  %3065 = vmatpush.bf16.msrb.mxu0 %v5030_v6  ;;  %v1857_v45 = vadd.f32 %v6935_v52, %v6614_v0  ;;  %v5023_v0 = vld [vmem:[%s8024_s3 + $0x148] sm:$0xf0] }
 0x2f9   : > { %v2382_v4 = vld [vmem:[#allocation2 + $0x30] ss:$2 sm:$0xff]  ;;  %v2414_v27 = vld [vmem:[#allocation2 + $0x31] ss:$2 sm:$0xff] }
 0x2fa   : > { %v2442_v26 = vmax.f32 %v2382_v4, %v2414_v27  ;;  %2352 = vst [vmem:[#allocation2 + $0x40] sm:$0xff] %v2319_v5  ;;  %2675 = vmatmul.bf16.vlgmr.msra.gmra.mxu2 %v2563_v36  ;;  %2724 = vmatmul.bf16.vlgmr.msra.gmra.mxu3 %v2563_v36  ;;  %v5031_v40 = vld [vmem:[%s8024_s3 + $0x158] sm:$0xf0]  ;;  %v1946_v5 = vpack.c.bf16 %v1928_v39, %v1927_v58  ;;  %v5021_v36 = vld [vmem:[%s8024_s3 + $0x140] sm:$0xf] }
 0x2fb   : > { %v5034_v7 = vor.u32 %v5509_v50, %v5031_v40  ;;  %v5508_v4 = vld [vmem:[%s8024_s3 + $0x144] sm:$0xf0]  ;;  %v5507_v27 = vld [vmem:[%s8024_s3 + $0x144] sm:$0xf]  ;;  %v5018_v39 = vor.u32 %v5505_v14, %v5015_v61  ;;  %v1859_v40 = vadd.f32 %v6948_v8, %v6624_v18  ;;  %v1861_v61 = vadd.f32 %v6958_v10, %v6634_v54 }
 0x2fc   : > { %v2100_v53 = vpop.f32.mrf.mxu0  ;;  %v2462_v13 = vadd.f32 %v6877_v41, %v2442_v26  ;;  %v1858_v26 = vadd.f32 %v6941_v42, %v6617_v38  ;;  %v5506_v38 = vld [vmem:[%s8024_s3 + $0x134] sm:$0xf0]  ;;  %v7035_v42 = vpop.f32.mrf.mxu2 }
 0x2fd   : > { %v2265_v29 = vadd.f32 %v2100_v53, %v1855_v16  ;;  %v2189_v32 = vpop.f32.mrf.mxu1  ;;  %3114 = vmatpush.bf16.msrb.mxu1 %v5034_v7  ;;  %v5005_v7 = vld [vmem:[%s8024_s3 + $0x120] sm:$0xf] }
 0x2fe   : > { %v2266_v3 = vadd.f32 %v2189_v32, %v1856_v51  ;;  %v2478_v9 = vmax.f32 %v2462_v13, 0.0  ;;  %v5022_v51 = vor.u32 %v5508_v4, %v5021_v36  ;;  %v5026_v13 = vor.u32 %v5507_v27, %v5023_v0  ;;  %v5013_v32 = vld [vmem:[%s8024_s3 + $0x130] sm:$0xf]  ;;  %v7044_v50 = vpop.f32.mrf.mxu3  ;;  %v5007_v27 = vld [vmem:[%s8024_s3 + $0x128] sm:$0xf0] }
 0x2ff   : > { %v1860_v36 = vadd.f32 %v6952_v34, %v6627_v37  ;;  %v4997_v37 = vld [vmem:[%s8024_s3 + $0x110] sm:$0xf]  ;;  %v5502_v34 = vld [vmem:[%s8024_s3 + $0x114] sm:$0xf0] }
 0x300   : > { %v2320_v25 = vmax.f32 %v2265_v29, %v2266_v3  ;;  %2494 = vst [vmem:[#allocation3 + $0x18] sm:$0xff] %v2478_v9  ;;  %3066 = vmatpush.bf16.msrb.mxu0 %v5022_v51  ;;  %v5014_v9 = vor.u32 %v5506_v38, %v5013_v32  ;;  %v1930_v32 = vld [vmem:[%s5983_s25 + $0xec] sm:$0xff]  ;;  %v4998_v38 = vor.u32 %v5502_v34, %v4997_v37 }
 0x301   : > { %3115 = vmatpush.bf16.msrb.mxu1 %v5026_v13  ;;  %v1864_v37 = vadd.f32 %v6985_v1, %v6647_v31 }
 0x302   : > { %2353 = vst [vmem:[#allocation2 + $0x48] sm:$0xff] %v2320_v25 }
 0x304   : > { %v2103_v16 = vpop.f32.mrf.mxu0  ;;  %3067 = vmatpush.bf16.msrb.mxu0 %v5014_v9  ;;  %v7080_v14 = vpop.f32.mrf.mxu2 }
 0x305   : > { %v2267_v52 = vadd.f32 %v2103_v16, %v1857_v45  ;;  %v2192_v53 = vpop.f32.mrf.mxu1  ;;  %3116 = vmatpush.bf16.msrb.mxu1 %v5018_v39  ;;  %v5504_v45 = vld [vmem:[%s8024_s3 + $0x124] sm:$0xf0]  ;;  %v4989_v39 = vld [vmem:[%s8024_s3 + $0x100] sm:$0xf] }
 0x306   : > { %v2268_v29 = vadd.f32 %v2192_v53, %v1858_v26  ;;  %v5006_v8 = vor.u32 %v5504_v45, %v5005_v7  ;;  %v5501_v53 = vld [vmem:[%s8024_s3 + $0x114] sm:$0xf]  ;;  %v1862_v7 = vadd.f32 %v6966_v35, %v6637_v28  ;;  %v4991_v45 = vld [vmem:[%s8024_s3 + $0x108] sm:$0xf0] }
 0x307   : > { %4840 = vmatmul.msk.bf16.gmra.mxu0 %vm568_vm0, %v1946_v5 }
 0x308   : > { %v2321_v3 = vmax.f32 %v2267_v52, %v2268_v29  ;;  %4856 = vmatmul.msk.bf16.gmra.mxu1 %vm568_vm0, %v1946_v5  ;;  %v5503_v5 = vld [vmem:[%s8024_s3 + $0x124] sm:$0xf]  ;;  %3068 = vmatpush.bf16.msrb.mxu0 %v5006_v8  ;;  %v2549_v8 = vld [vmem:[#allocation3 + $0x11] sm:$0xff] }
 0x309   : > { %v2384_v25 = vld [vmem:[#allocation2 + $0x40] ss:$2 sm:$0xff]  ;;  %v2416_v58 = vld [vmem:[#allocation2 + $0x41] ss:$2 sm:$0xff]  ;;  %v5010_v51 = vor.u32 %v5503_v5, %v5007_v27 }
 0x30a   : > { %v2443_v6 = vmax.f32 %v2384_v25, %v2416_v58  ;;  %2354 = vst [vmem:[#allocation2 + $0x50] sm:$0xff] %v2321_v3  ;;  %v1929_v29 = vld [vmem:[%s5983_s25 + $0xe4] sm:$0xff]  ;;  %v4999_v3 = vld [vmem:[%s8024_s3 + $0x118] sm:$0xf0]  ;;  %v7084_v25 = vpop.f32.mrf.mxu3 }
 0x30b   : > { %3117 = vmatpush.bf16.msrb.mxu1 %v5010_v51  ;;  %v5002_v9 = vor.u32 %v5501_v53, %v4999_v3  ;;  %v1947_v58 = vpack.c.bf16 %v1930_v32, %v1929_v29 }
 0x30c   : > { %v2105_v4 = vpop.f32.mrf.mxu0  ;;  %v7060_v18 = vadd.f32 %v6877_v41, %v2443_v6  ;;  %3069 = vmatpush.bf16.msrb.mxu0 %v4998_v38  ;;  %v5500_v6 = vld [vmem:[%s8024_s3 + $0x104] sm:$0xf0]  ;;  %v7106_v34 = vpop.f32.mrf.mxu2 }
 0x30d   : > { %v2269_v26 = vadd.f32 %v2105_v4, %v1859_v40  ;;  %v2194_v16 = vpop.f32.mrf.mxu1  ;;  %v5499_v40 = vld [vmem:[%s8024_s3 + $0x104] sm:$0xf]  ;;  %v4990_v10 = vor.u32 %v5500_v6, %v4989_v39  ;;  %v1932_v39 = vld [vmem:[%s5983_s25 + $0xfc] sm:$0xf] }
 0x30e   : > { %v2270_v0 = vadd.f32 %v2194_v16, %v1860_v36  ;;  %v2479_v52 = vmax.f32 %v7060_v18, 0.0  ;;  %v4994_v4 = vor.u32 %v5499_v40, %v4991_v45 }
 0x30f   : > { %3118 = vmatpush.bf16.msrb.mxu1 %v5002_v9 }
 0x310   : > { %v2322_v13 = vmax.f32 %v2269_v26, %v2270_v0  ;;  %2495 = vst [vmem:[#allocation3 + $0x20] sm:$0xff] %v2479_v52  ;;  %3070 = vmatpush.bf16.msrb.mxu0 %v4990_v10  ;;  %v1863_v0 = vadd.f32 %v6983_v2, %v6644_v46  ;;  %v1865_v46 = vadd.f32 %v6994_v17, %v6654_v44 }
 0x311   : > { %v1866_v2 = vadd.f32 %v6996_v47, %v6657_v48  ;;  %v1867_v48 = vadd.f32 %v7035_v42, %v6664_v57  ;;  %v1868_v17 = vadd.f32 %v7044_v50, %v6667_v59  ;;  %v1869_v57 = vadd.f32 %v7080_v14, %v6672_v62  ;;  %v2943_v50 = vld [vmem:[#allocation3 + $0x2] sm:$0xff]  ;;  %v5482_v14 = vld [vmem:[%s8024_s3 + $0x74] sm:$0xf0] }
 0x312   : > { %2355 = vst [vmem:[#allocation2 + $0x58] sm:$0xff] %v2322_v13  ;;  %v7109_v29 = vpop.f32.mrf.mxu3  ;;  %v1870_v59 = vadd.f32 %v7084_v25, %v6675_v11  ;;  %v4981_v11 = vld [vmem:[%s8024_s3 + $0x70] sm:$0xf]  ;;  %v1871_v25 = vadd.f32 %v7106_v34, %v6692_v21 }
 0x313   : > { %3119 = vmatpush.bf16.msrb.mxu1 %v4994_v4 }
 0x314   : > { %v2108_v54 = vpop.f32.mrf.mxu0 }
 0x315   : > { %v2271_v5 = vadd.f32 %v2108_v54, %v1861_v61  ;;  %v2197_v36 = vpop.f32.mrf.mxu1  ;;  %v7119_v54 = vpop.f32.mrf.mxu2 }
 0x316   : > { %v2272_v18 = vadd.f32 %v2197_v36, %v1862_v7 }
 0x317   : > { %4841 = vmatmul.msk.bf16.gmra.mxu0 %vm568_vm0, %v1947_v58  ;;  %v2550_v27 = vld [vmem:[#allocation3 + $0x19] sm:$0xff] }
 0x318   : > { %v2323_v26 = vmax.f32 %v2271_v5, %v2272_v18  ;;  %4857 = vmatmul.msk.bf16.gmra.mxu1 %vm568_vm0, %v1947_v58  ;;  %v2564_v28 = vpack.c.bf16 %v2550_v27, %v2549_v8  ;;  %v1931_v58 = vld [vmem:[%s5983_s25 + $0xf4] sm:$0xff] }
 0x319   : > { %v2386_v35 = vld [vmem:[#allocation2 + $0x50] ss:$2 sm:$0xff]  ;;  %v2418_v16 = vld [vmem:[#allocation2 + $0x51] ss:$2 sm:$0xff]  ;;  %v1948_v31 = vpack.c.bf16 %v1932_v39, %v1931_v58 }
 0x31a   : > { %v2444_v51 = vmax.f32 %v2386_v35, %v2418_v16  ;;  %2356 = vst [vmem:[#allocation2 + $0x60] sm:$0xff] %v2323_v26  ;;  %2680 = vmatmul.bf16.gmra.mxu2 %v2564_v28  ;;  %2729 = vmatmul.bf16.gmra.mxu3 %v2564_v28  ;;  %v7121_v45 = vpop.f32.mrf.mxu3 }
 0x31c   : > { %v2110_v53 = vpop.f32.mrf.mxu0  ;;  %v2464_v13 = vadd.f32 %v6877_v41, %v2444_v51  ;;  %v2944_v51 = vld [vmem:[#allocation3 + $0xa] sm:$0xff] }
 0x31d   : > { %v2273_v32 = vadd.f32 %v2110_v53, %v1863_v0  ;;  %v2199_v38 = vpop.f32.mrf.mxu1  ;;  %v7130_v28 = vpop.f32.mrf.mxu2  ;;  %v2959_v53 = vpack.c.bf16 %v2944_v51, %v2943_v50 }
 0x31e   : > { %v2274_v3 = vadd.f32 %v2199_v38, %v1864_v37  ;;  %v2480_v9 = vmax.f32 %v2464_v13, 0.0 }
 0x320   : > { %v2324_v61 = vmax.f32 %v2273_v32, %v2274_v3  ;;  %2496 = vst [vmem:[#allocation3 + $0x28] sm:$0xff] %v2480_v9  ;;  %v7113_v6 = vpack.c.bf16 %v2480_v9, %v2479_v52 }
 0x322   : > { %2357 = vst [vmem:[#allocation2 + $0x68] sm:$0xff] %v2324_v61  ;;  %v7132_v16 = vpop.f32.mrf.mxu3 }
 0x324   : > { %v2113_v1 = vpop.f32.mrf.mxu0 }
 0x325   : > { %v2275_v40 = vadd.f32 %v2113_v1, %v1865_v46  ;;  %v2202_v7 = vpop.f32.mrf.mxu1  ;;  %v7138_v39 = vpop.f32.mrf.mxu2  ;;  %v4983_v1 = vld [vmem:[%s8024_s3 + $0x78] sm:$0xf0] }
 0x326   : > { %v2276_v10 = vadd.f32 %v2202_v7, %v1866_v2  ;;  %v5481_v2 = vld [vmem:[%s8024_s3 + $0x74] sm:$0xf] }
 0x327   : > { %4842 = vmatmul.msk.bf16.gmra.mxu0 %vm568_vm0, %v1948_v31  ;;  %v2551_v32 = vld [vmem:[#allocation3 + $0x21] sm:$0xff] }
 0x328   : > { %v2325_v52 = vmax.f32 %v2275_v40, %v2276_v10  ;;  %4858 = vmatmul.msk.bf16.gmra.mxu1 %vm568_vm0, %v1948_v31  ;;  %v4982_v31 = vor.u32 %v5482_v14, %v4981_v11  ;;  %v1872_v40 = vadd.f32 %v7109_v29, %v6695_v24  ;;  %v1874_v24 = vadd.f32 %v7121_v45, %v6703_v60  ;;  %v5480_v60 = vld [vmem:[%s8024_s3 + $0x64] sm:$0xf0] }
 0x329   : > { %v2388_v5 = vld [vmem:[#allocation2 + $0x60] ss:$2 sm:$0xff]  ;;  %v2420_v36 = vld [vmem:[#allocation2 + $0x61] ss:$2 sm:$0xff]  ;;  %v1877_v14 = vadd.f32 %v7138_v39, %v6716_v19  ;;  %v4965_v19 = vld [vmem:[%s8024_s3 + $0x50] sm:$0xf] }
 0x32a   : > { %v2445_v44 = vmax.f32 %v2388_v5, %v2420_v36  ;;  %2358 = vst [vmem:[#allocation2 + $0x70] sm:$0xff] %v2325_v52  ;;  %v1807_v46 = vpop.f32.mrf.mxu3  ;;  %v4986_v52 = vor.u32 %v5481_v2, %v4983_v1  ;;  %2845 = vmatpush.bf16.msrb.mxu2 %v4982_v31 }
 0x32c   : > { %v2115_v47 = vpop.f32.mrf.mxu0  ;;  %v2465_v4 = vadd.f32 %v6877_v41, %v2445_v44  ;;  %2894 = vmatpush.bf16.msrb.mxu3 %v4986_v52 }
 0x32d   : > { %v2277_v18 = vadd.f32 %v2115_v47, %v1867_v48  ;;  %v2204_v8 = vpop.f32.mrf.mxu1  ;;  %v1873_v47 = vadd.f32 %v7119_v54, %v6700_v63  ;;  %v1720_v29 = vpop.f32.mrf.mxu2  ;;  %v4973_v63 = vld [vmem:[%s8024_s3 + $0x60] sm:$0xf]  ;;  %v1875_v54 = vadd.f32 %v7130_v28, %v6708_v12 }
 0x32e   : > { %v2278_v27 = vadd.f32 %v2204_v8, %v1868_v17  ;;  %v2481_v26 = vmax.f32 %v2465_v4, 0.0  ;;  %v2946_v17 = vld [vmem:[#allocation3 + $0x1a] sm:$0xff]  ;;  %v4974_v45 = vor.u32 %v5480_v60, %v4973_v63  ;;  %v1879_v39 = vadd.f32 %v1720_v29, %v6736_v49 }
 0x330   : > { %v2326_v35 = vmax.f32 %v2277_v18, %v2278_v27  ;;  %2497 = vst [vmem:[#allocation3 + $0x30] sm:$0xff] %v2481_v26  ;;  %v2945_v18 = vld [vmem:[#allocation3 + $0x12] sm:$0xff]  ;;  %2846 = vmatpush.bf16.msrb.mxu2 %v4974_v45 }
 0x331   : > { %v2960_v51 = vpack.c.bf16 %v2946_v17, %v2945_v18 }
 0x332   : > { %2359 = vst [vmem:[#allocation2 + $0x78] sm:$0xff] %v2326_v35  ;;  %v1809_v8 = vpop.f32.mrf.mxu3 }
 0x334   : > { %v2118_v42 = vpop.f32.mrf.mxu0 }
 0x335   : > { %v2279_v0 = vadd.f32 %v2118_v42, %v1869_v57  ;;  %v2207_v37 = vpop.f32.mrf.mxu1  ;;  %v1723_v12 = vpop.f32.mrf.mxu2 }
 0x336   : > { %v2280_v13 = vadd.f32 %v2207_v37, %v1870_v59  ;;  %v4975_v37 = vld [vmem:[%s8024_s3 + $0x68] sm:$0xf0]  ;;  %v1881_v63 = vadd.f32 %v1723_v12, %v6744_v30  ;;  %v4957_v30 = vld [vmem:[%s8024_s3 + $0x40] sm:$0xf]  ;;  %v5476_v12 = vld [vmem:[%s8024_s3 + $0x44] sm:$0xf0] }
 0x337   : > { %3071 = vmatmul.bf16.vlgmr.msrb.gmra.mxu0 %v2959_v53  ;;  %v2552_v38 = vld [vmem:[#allocation3 + $0x29] sm:$0xff] }
 0x338   : > { %v2327_v3 = vmax.f32 %v2279_v0, %v2280_v13  ;;  %3120 = vmatmul.bf16.vlgmr.msrb.gmra.mxu1 %v2959_v53  ;;  %v2565_v9 = vpack.c.bf16 %v2552_v38, %v2551_v32  ;;  %v5479_v0 = vld [vmem:[%s8024_s3 + $0x64] sm:$0xf]  ;;  %v1876_v53 = vadd.f32 %v7132_v16, %v6711_v20  ;;  %v2948_v11 = vld [vmem:[#allocation3 + $0x2a] sm:$0xff]  ;;  %v1878_v20 = vadd.f32 %v1807_v46, %v6719_v22  ;;  %v5478_v22 = vld [vmem:[%s8024_s3 + $0x54] sm:$0xf0] }
 0x339   : > { %v2390_v61 = vld [vmem:[#allocation2 + $0x70] ss:$2 sm:$0xff]  ;;  %v2422_v58 = vld [vmem:[#allocation2 + $0x71] ss:$2 sm:$0xff]  ;;  %v4978_v38 = vor.u32 %v5479_v0, %v4975_v37  ;;  %v4966_v46 = vor.u32 %v5478_v22, %v4965_v19 }
 0x33a   : > { %v2446_v62 = vmax.f32 %v2390_v61, %v2422_v58  ;;  %2360 = vst [vmem:[#allocation2 + $0x80] sm:$0xff] %v2327_v3  ;;  %2685 = vmatmul.bf16.gmra.mxu2 %v2565_v9  ;;  %2734 = vmatmul.bf16.gmra.mxu3 %v2565_v9  ;;  %v1812_v58 = vpop.f32.mrf.mxu3 }
 0x33b   : > { %2895 = vmatpush.bf16.msrb.mxu3 %v4978_v38  ;;  %2847 = vmatpush.bf16.msrb.mxu2 %v4966_v46 }
 0x33c   : > { %v2120_v7 = vpop.f32.mrf.mxu0  ;;  %v2466_v10 = vadd.f32 %v6877_v41, %v2446_v62 }
 0x33d   : > { %v2281_v5 = vadd.f32 %v2120_v7, %v1871_v25  ;;  %v2209_v36 = vpop.f32.mrf.mxu1  ;;  %v2947_v25 = vld [vmem:[#allocation3 + $0x22] sm:$0xff]  ;;  %v1725_v52 = vpop.f32.mrf.mxu2 }
 0x33e   : > { %v2282_v21 = vadd.f32 %v2209_v36, %v1872_v40  ;;  %v2482_v34 = vmax.f32 %v2466_v10, 0.0  ;;  %v2961_v1 = vpack.c.bf16 %v2948_v11, %v2947_v25  ;;  %v4959_v11 = vld [vmem:[%s8024_s3 + $0x48] sm:$0xf0] }
 0x340   : > { %v2328_v44 = vmax.f32 %v2281_v5, %v2282_v21  ;;  %2498 = vst [vmem:[#allocation3 + $0x38] sm:$0xff] %v2482_v34  ;;  %v7157_v48 = vpack.c.bf16 %v2482_v34, %v2481_v26 }
 0x342   : > { %2361 = vst [vmem:[#allocation2 + $0x88] sm:$0xff] %v2328_v44  ;;  %v1814_v21 = vpop.f32.mrf.mxu3 }
 0x344   : > { %v2123_v4 = vpop.f32.mrf.mxu0 }
 0x345   : > { %v2283_v27 = vadd.f32 %v2123_v4, %v1873_v47  ;;  %v2212_v35 = vpop.f32.mrf.mxu1  ;;  %v5477_v47 = vld [vmem:[%s8024_s3 + $0x54] sm:$0xf]  ;;  %v1880_v4 = vadd.f32 %v1809_v8, %v6739_v15 }
 0x346   : > { %v2284_v57 = vadd.f32 %v2212_v35, %v1874_v24  ;;  %v4967_v24 = vld [vmem:[%s8024_s3 + $0x58] sm:$0xf0]  ;;  %v8088_v8 = vld [vmem:[#allocation10_spill] sm:$0xff] }
 0x347   : > { %3076 = vmatmul.bf16.gmra.mxu0 %v2960_v51  ;;  %v2553_v7 = vld [vmem:[#allocation3 + $0x31] sm:$0xff]  ;;  %v4970_v35 = vor.u32 %v5477_v47, %v4967_v24  ;;  %v1882_v60 = vadd.f32 %v1812_v58, %v8088_v8  ;;  %v4958_v58 = vor.u32 %v5476_v12, %v4957_v30 }
 0x348   : > { %v2329_v59 = vmax.f32 %v2283_v27, %v2284_v57  ;;  %3125 = vmatmul.bf16.gmra.mxu1 %v2960_v51  ;;  %v2949_v45 = vld [vmem:[#allocation3 + $0x32] sm:$0xff] }
 0x349   : > { %v2392_v26 = vld [vmem:[#allocation2 + $0x80] ss:$2 sm:$0xff]  ;;  %v2424_v42 = vld [vmem:[#allocation2 + $0x81] ss:$2 sm:$0xff]  ;;  %2896 = vmatpush.bf16.msrb.mxu3 %v4970_v35  ;;  %2848 = vmatpush.bf16.msrb.mxu2 %v4958_v58  ;;  %v5473_v8 = vld [vmem:[%s8024_s3 + $0x34] sm:$0xf] }
 0x34a   : > { %v2447_v50 = vmax.f32 %v2392_v26, %v2424_v42  ;;  %2362 = vst [vmem:[#allocation2 + $0x90] sm:$0xff] %v2329_v59  ;;  %v1728_v42 = vpop.f32.mrf.mxu2  ;;  %v1817_v15 = vpop.f32.mrf.mxu3  ;;  %v8095_v58 = vld [vmem:[#allocation17_spill] sm:$0xff] }
 0x34c   : > { %v2125_v13 = vpop.f32.mrf.mxu0  ;;  %v2467_v32 = vadd.f32 %v6877_v41, %v2447_v50 }
 0x34d   : > { %v2285_v3 = vadd.f32 %v2125_v13, %v1875_v54  ;;  %v2214_v9 = vpop.f32.mrf.mxu1 }
 0x34e   : > { %v2286_v28 = vadd.f32 %v2214_v9, %v1876_v53  ;;  %v2483_v61 = vmax.f32 %v2467_v32, 0.0 }
 0x350   : > { %v2330_v62 = vmax.f32 %v2285_v3, %v2286_v28  ;;  %2499 = vst [vmem:[#allocation3 + $0x40] sm:$0xff] %v2483_v61  ;;  %v8089_v28 = vld [vmem:[#allocation11_spill] sm:$0xff] }
 0x352   : > { %2363 = vst [vmem:[#allocation2 + $0x98] sm:$0xff] %v2330_v62  ;;  %v5475_v62 = vld [vmem:[%s8024_s3 + $0x44] sm:$0xf] }
 0x354   : > { %v2128_v16 = vpop.f32.mrf.mxu0 }
 0x355   : > { %v2287_v31 = vadd.f32 %v2128_v16, %v1877_v14  ;;  %v2217_v2 = vpop.f32.mrf.mxu1  ;;  %v8090_v14 = vld [vmem:[#allocation12_spill] sm:$0xff]  ;;  %v1730_v16 = vpop.f32.mrf.mxu2 }
 0x356   : > { %v2288_v40 = vadd.f32 %v2217_v2, %v1878_v20  ;;  %v1884_v20 = vadd.f32 %v1814_v21, %v8090_v14  ;;  %v4962_v2 = vor.u32 %v5475_v62, %v4959_v11 }
 0x357   : > { %3081 = vmatmul.bf16.gmra.mxu0 %v2961_v1  ;;  %v2554_v10 = vld [vmem:[#allocation3 + $0x39] sm:$0xff] }
 0x358   : > { %v2331_v5 = vmax.f32 %v2287_v31, %v2288_v40  ;;  %3130 = vmatmul.bf16.gmra.mxu1 %v2961_v1  ;;  %v2566_v36 = vpack.c.bf16 %v2554_v10, %v2553_v7  ;;  %v2950_v50 = vld [vmem:[#allocation3 + $0x3a] sm:$0xff]  ;;  %v1819_v1 = vpop.f32.mrf.mxu3  ;;  %2897 = vmatpush.bf16.msrb.mxu3 %v4962_v2 }
 0x359   : > { %v2394_v34 = vld [vmem:[#allocation2 + $0x90] ss:$2 sm:$0xff]  ;;  %v2426_v44 = vld [vmem:[#allocation2 + $0x91] ss:$2 sm:$0xff]  ;;  %v2962_v53 = vpack.c.bf16 %v2950_v50, %v2949_v45 }
 0x35a   : > { %v2448_v17 = vmax.f32 %v2394_v34, %v2426_v44  ;;  %2364 = vst [vmem:[#allocation2 + $0xa0] sm:$0xff] %v2331_v5  ;;  %2690 = vmatmul.bf16.gmra.mxu2 %v2566_v36  ;;  %2739 = vmatmul.bf16.gmra.mxu3 %v2566_v36  ;;  %v8091_v36 = vld [vmem:[#allocation13_spill] sm:$0xff]  ;;  %v8092_v44 = vld [vmem:[#allocation14_spill] sm:$0xff]  ;;  %v5474_v50 = vld [vmem:[%s8024_s3 + $0x34] sm:$0xf0] }
 0x35b   : > { %v1885_v34 = vadd.f32 %v1728_v42, %v8091_v36  ;;  %v4949_v42 = vld [vmem:[%s8024_s3 + $0x30] sm:$0xf] }
 0x35c   : > { %v2130_v18 = vpop.f32.mrf.mxu0  ;;  %v2468_v27 = vadd.f32 %v6877_v41, %v2448_v17  ;;  %v1886_v17 = vadd.f32 %v1817_v15, %v8092_v44  ;;  %v4950_v15 = vor.u32 %v5474_v50, %v4949_v42  ;;  %v4943_v44 = vld [vmem:[%s8024_s3 + $0x28] sm:$0xf0] }
 0x35d   : > { %v2289_v51 = vadd.f32 %v2130_v18, %v1879_v39  ;;  %v2219_v57 = vpop.f32.mrf.mxu1  ;;  %v1733_v39 = vpop.f32.mrf.mxu2 }
 0x35e   : > { %v2290_v59 = vadd.f32 %v2219_v57, %v1880_v4  ;;  %v2484_v49 = vmax.f32 %v2468_v27, 0.0  ;;  %2849 = vmatpush.bf16.msrb.mxu2 %v4950_v15 }
 0x360   : > { %v2332_v29 = vmax.f32 %v2289_v51, %v2290_v59  ;;  %2500 = vst [vmem:[#allocation3 + $0x48] sm:$0xff] %v2484_v49  ;;  %v7198_v26 = vpack.c.bf16 %v2484_v49, %v2483_v61  ;;  %v1883_v61 = vadd.f32 %v1725_v52, %v8089_v28  ;;  %v1822_v24 = vpop.f32.mrf.mxu3  ;;  %v8094_v28 = vld [vmem:[#allocation16_spill] sm:$0xff] }
 0x361   : > { %v1890_v62 = vadd.f32 %v1822_v24, %v8095_v58  ;;  %v5469_v58 = vld [vmem:[%s8024_s3 + $0x14] sm:$0xf] }
 0x362   : > { %2365 = vst [vmem:[#allocation2 + $0xa8] sm:$0xff] %v2332_v29 }
 0x364   : > { %v2133_v54 = vpop.f32.mrf.mxu0 }
 0x365   : > { %v2291_v0 = vadd.f32 %v2133_v54, %v1881_v63  ;;  %v2222_v37 = vpop.f32.mrf.mxu1  ;;  %v1887_v63 = vadd.f32 %v1730_v16, %v6780_v55  ;;  %v8093_v54 = vld [vmem:[#allocation15_spill] sm:$0xff] }
 0x366   : > { %v2292_v13 = vadd.f32 %v2222_v37, %v1882_v60  ;;  %v4951_v60 = vld [vmem:[%s8024_s3 + $0x38] sm:$0xf0]  ;;  %v1888_v45 = vadd.f32 %v1819_v1, %v8093_v54 }
 0x367   : > { %3086 = vmatmul.bf16.gmra.mxu0 %v2962_v53  ;;  %v2555_v47 = vld [vmem:[#allocation3 + $0x41] sm:$0xff] }
 0x368   : > { %v2333_v32 = vmax.f32 %v2291_v0, %v2292_v13  ;;  %3135 = vmatmul.bf16.gmra.mxu1 %v2962_v53  ;;  %v2951_v18 = vld [vmem:[#allocation3 + $0x42] sm:$0xff]  ;;  %v4954_v53 = vor.u32 %v5473_v8, %v4951_v60  ;;  %v1824_v12 = vpop.f32.mrf.mxu3 }
 0x369   : > { %v2396_v38 = vld [vmem:[#allocation2 + $0xa0] ss:$2 sm:$0xff]  ;;  %v2428_v3 = vld [vmem:[#allocation2 + $0xa1] ss:$2 sm:$0xff] }
 0x36a   : > { %v2449_v9 = vmax.f32 %v2396_v38, %v2428_v3  ;;  %2366 = vst [vmem:[#allocation2 + $0xb0] sm:$0xff] %v2333_v32  ;;  %2898 = vmatpush.bf16.msrb.mxu3 %v4954_v53  ;;  %v1735_v3 = vpop.f32.mrf.mxu2 }
 0x36c   : > { %v2135_v25 = vpop.f32.mrf.mxu0  ;;  %v2469_v31 = vadd.f32 %v6877_v41, %v2449_v9 }
 0x36d   : > { %v2293_v40 = vadd.f32 %v2135_v25, %v1883_v61  ;;  %v2224_v7 = vpop.f32.mrf.mxu1  ;;  %v1889_v61 = vadd.f32 %v1733_v39, %v8094_v28 }
 0x36e   : > { %v2294_v10 = vadd.f32 %v2224_v7, %v1884_v20  ;;  %v2485_v52 = vmax.f32 %v2469_v31, 0.0  ;;  %v5472_v7 = vld [vmem:[%s8024_s3 + $0x24] sm:$0xf0] }
 0x370   : > { %v2334_v5 = vmax.f32 %v2293_v40, %v2294_v10  ;;  %2501 = vst [vmem:[#allocation3 + $0x50] sm:$0xff] %v2485_v52  ;;  %v4941_v40 = vld [vmem:[%s8024_s3 + $0x20] sm:$0xf]  ;;  %v8096_v10 = vld [vmem:[#allocation18_spill] sm:$0xff] }
 0x371   : > { %v4942_v36 = vor.u32 %v5472_v7, %v4941_v40  ;;  %v5544_v7 = vld [vmem:[%s8024_s3 + $0x264] sm:$0xf0] }
 0x372   : > { %2367 = vst [vmem:[#allocation2 + $0xb8] sm:$0xff] %v2334_v5  ;;  %v1738_v2 = vpop.f32.mrf.mxu2  ;;  %v1827_v5 = vpop.f32.mrf.mxu3 }
 0x373   : > { %2850 = vmatpush.bf16.msrb.mxu2 %v4942_v36 }
 0x374   : > { %v2138_v21 = vpop.f32.mrf.mxu0 }
 0x375   : > { %v2295_v19 = vadd.f32 %v2138_v21, %v1885_v34  ;;  %v2227_v22 = vpop.f32.mrf.mxu1  ;;  %v5471_v34 = vld [vmem:[%s8024_s3 + $0x24] sm:$0xf] }
 0x376   : > { %v2296_v46 = vadd.f32 %v2227_v22, %v1886_v17  ;;  %v8097_v17 = vld [vmem:[#allocation19_spill] sm:$0xff]  ;;  %v7255_v22 = vld [vmem:[%s8023_s2] ss:$0 sm:$0xff] }
 0x377   : > { %v2556_v4 = vld [vmem:[#allocation3 + $0x49] sm:$0xff]  ;;  %v1892_v21 = vadd.f32 %v1824_v12, %v8097_v17  ;;  %v5470_v12 = vld [vmem:[%s8024_s3 + $0x14] sm:$0xf0] }
 0x378   : > { %v2952_v27 = vld [vmem:[#allocation3 + $0x4a] sm:$0xff]  ;;  %v2335_v35 = vmax.f32 %v2295_v19, %v2296_v46  ;;  %v2567_v51 = vpack.c.bf16 %v2556_v4, %v2555_v47  ;;  %v4946_v46 = vor.u32 %v5471_v34, %v4943_v44 }
 0x379   : > { %v2963_v57 = vpack.c.bf16 %v2952_v27, %v2951_v18  ;;  %v2398_v59 = vld [vmem:[#allocation2 + $0xb0] ss:$2 sm:$0xff]  ;;  %v2430_v49 = vld [vmem:[#allocation2 + $0xb1] ss:$2 sm:$0xff]  ;;  %v5167_v44 = vld [vmem:[%s8024_s3 + $0x268] sm:$0xf0] }
 0x37a   : > { %v2450_v29 = vmax.f32 %v2398_v59, %v2430_v49  ;;  %2368 = vst [vmem:[#allocation2 + $0xc0] sm:$0xff] %v2335_v35  ;;  %2695 = vmatmul.bf16.gmra.mxu2 %v2567_v51  ;;  %2744 = vmatmul.bf16.gmra.mxu3 %v2567_v51  ;;  %v5714_v35 = vmov 0.0   ;;  %v8098_v51 = vld [vmem:[#allocation20_spill] sm:$0xff]  ;;  %v8099_v59 = vld [vmem:[#allocation21_spill] sm:$0xff]  ;;  %v1829_v50 = vpop.f32.mrf.mxu3 }
 0x37b   : > { %3091 = vmatmul.bf16.gmra.mxu0 %v2963_v57  ;;  %3140 = vmatmul.bf16.gmra.mxu1 %v2963_v57  ;;  %2343 = vst [vmem:[#allocation2 + $0xfc] sm:$0xf] %v5714_v35  ;;  %v1893_v57 = vadd.f32 %v1738_v2, %v8098_v51  ;;  %v1894_v49 = vadd.f32 %v1827_v5, %v8099_v59 }
 0x37c   : > { %v2140_v0 = vpop.f32.mrf.mxu0  ;;  %v2470_v37 = vadd.f32 %v6877_v41, %v2450_v29  ;;  %2899 = vmatpush.bf16.msrb.mxu3 %v4946_v46  ;;  %3709 = vst [vmem:[#allocation4 + $0x7c] sm:$0xf] %v5714_v35  ;;  %v1740_v29 = vpop.f32.mrf.mxu2  ;;  %v5542_v46 = vld [vmem:[%s8024_s3 + $0x254] sm:$0xf0] }
 0x37d   : > { %v2297_v13 = vadd.f32 %v2140_v0, %v1887_v63  ;;  %v2229_v32 = vpop.f32.mrf.mxu1  ;;  %v1895_v28 = vadd.f32 %v1740_v29, %v6824_v56 }
 0x37e   : > { %v2298_v55 = vadd.f32 %v2229_v32, %v1888_v45  ;;  %v2486_v38 = vmax.f32 %v2470_v37, 0.0 }
 0x380   : > { %v2336_v9 = vmax.f32 %v2297_v13, %v2298_v55  ;;  %2502 = vst [vmem:[#allocation3 + $0x58] sm:$0xff] %v2486_v38  ;;  %v7234_v30 = vpack.c.bf16 %v2486_v38, %v2485_v52  ;;  %v1891_v52 = vadd.f32 %v1735_v3, %v8096_v10  ;;  %v5173_v38 = vld [vmem:[%s8024_s3 + $0x270] sm:$0xf]  ;;  %v5543_v10 = vld [vmem:[%s8024_s3 + $0x264] sm:$0xf] }
 0x382   : > { %2369 = vst [vmem:[#allocation2 + $0xc8] sm:$0xff] %v2336_v9  ;;  %v4933_v9 = vld [vmem:[%s8024_s3 + $0x10] sm:$0xf]  ;;  %v1832_v17 = vpop.f32.mrf.mxu3 }
 0x383   : > { %v1898_v59 = vadd.f32 %v1832_v17, %v6835_v43  ;;  %v5151_v43 = vld [vmem:[%s8024_s3 + $0x248] sm:$0xf0]  ;;  %v5533_v17 = vld [vmem:[%s8024_s3 + $0x214] sm:$0xf] }
 0x384   : > { %v2143_v11 = vpop.f32.mrf.mxu0 }
 0x385   : > { %v2299_v41 = vadd.f32 %v2143_v11, %v1889_v61  ;;  %v2232_v14 = vpop.f32.mrf.mxu1  ;;  %v4934_v61 = vor.u32 %v5470_v12, %v4933_v9  ;;  %v5546_v11 = vld [vmem:[%s8024_s3 + $0x274] sm:$0xf0]  ;;  %v5467_v9 = vld [vmem:[%s8024_s3 + $0x4] sm:$0xf]  ;;  %v4927_v12 = vld [vmem:[%s8024_s3 + $0x8] sm:$0xf0] }
 0x386   : > { %v2300_v20 = vadd.f32 %v2232_v14, %v1890_v62  ;;  %v4935_v62 = vld [vmem:[%s8024_s3 + $0x18] sm:$0xf0] }
 0x387   : > { %v2557_v60 = vld [vmem:[#allocation3 + $0x51] sm:$0xff]  ;;  %2851 = vmatpush.bf16.msrb.mxu2 %v4934_v61 }
 0x388   : > { %v2337_v16 = vmax.f32 %v2299_v41, %v2300_v20  ;;  %v2953_v45 = vld [vmem:[#allocation3 + $0x52] sm:$0xff]  ;;  %v1896_v41 = vadd.f32 %v1829_v50, %v6827_v23  ;;  %v4938_v20 = vor.u32 %v5469_v58, %v4935_v62  ;;  %v5165_v23 = vld [vmem:[%s8024_s3 + $0x260] sm:$0xf] }
 0x389   : > { %v2400_v25 = vld [vmem:[#allocation2 + $0xc0] ss:$2 sm:$0xff]  ;;  %v2432_v31 = vld [vmem:[#allocation2 + $0xc1] ss:$2 sm:$0xff]  ;;  %v5166_v34 = vor.u32 %v5544_v7, %v5165_v23  ;;  %v8101_v61 = vld [vmem:[#allocation23_spill] sm:$0xff] }
 0x38a   : > { %v2451_v1 = vmax.f32 %v2400_v25, %v2432_v31  ;;  %2370 = vst [vmem:[#allocation2 + $0xd0] sm:$0xff] %v2337_v16  ;;  %v5174_v16 = vor.u32 %v5546_v11, %v5173_v38  ;;  %v5545_v25 = vld [vmem:[%s8024_s3 + $0x274] sm:$0xf]  ;;  %v5175_v31 = vld [vmem:[%s8024_s3 + $0x278] sm:$0xf0]  ;;  %2900 = vmatpush.bf16.msrb.mxu3 %v4938_v20 }
 0x38b   : > { %v5178_v40 = vor.u32 %v5545_v25, %v5175_v31  ;;  %v5149_v50 = vld [vmem:[%s8024_s3 + $0x240] sm:$0xf]  ;;  %v5143_v20 = vld [vmem:[%s8024_s3 + $0x238] sm:$0xf0] }
 0x38c   : > { %v2145_v19 = vpop.f32.mrf.mxu0  ;;  %v7258_v39 = vadd.f32 %v7255_v22, %v2451_v1  ;;  %3563 = vmatpush.bf16.msra.mxu0 %v5174_v16 }
 0x38d   : > { %v2301_v47 = vadd.f32 %v2145_v19, %v1891_v52  ;;  %v2234_v24 = vpop.f32.mrf.mxu1  ;;  %v1743_v52 = vpop.f32.mrf.mxu2  ;;  %3612 = vmatpush.bf16.msra.mxu1 %v5178_v40  ;;  %v5157_v19 = vld [vmem:[%s8024_s3 + $0x250] sm:$0xf]  ;;  %v5535_v40 = vld [vmem:[%s8024_s3 + $0x224] sm:$0xf] }
 0x38e   : > { %v2302_v4 = vadd.f32 %v2234_v24, %v1892_v21  ;;  %v2487_v18 = vmax.f32 %v7258_v39, 0.0  ;;  %v5170_v21 = vor.u32 %v5543_v10, %v5167_v44  ;;  %v5541_v24 = vld [vmem:[%s8024_s3 + $0x254] sm:$0xf]  ;;  %v5158_v35 = vor.u32 %v5542_v46, %v5157_v19  ;;  %v5540_v39 = vld [vmem:[%s8024_s3 + $0x244] sm:$0xf0] }
 0x38f   : > { %v1897_v51 = vadd.f32 %v1743_v52, %v6832_v33  ;;  %v5135_v52 = vld [vmem:[%s8024_s3 + $0x228] sm:$0xf0] }
 0x390   : > { %v2338_v27 = vmax.f32 %v2301_v47, %v2302_v4  ;;  %2503 = vst [vmem:[#allocation3 + $0x60] sm:$0xff] %v2487_v18  ;;  %v5159_v4 = vld [vmem:[%s8024_s3 + $0x258] sm:$0xf0]  ;;  %3564 = vmatpush.bf16.msra.mxu0 %v5166_v34  ;;  %v5534_v34 = vld [vmem:[%s8024_s3 + $0x214] sm:$0xf0] }
 0x391   : > { %3613 = vmatpush.bf16.msra.mxu1 %v5170_v21  ;;  %v5127_v21 = vld [vmem:[%s8024_s3 + $0x218] sm:$0xf0] }
 0x392   : > { %2371 = vst [vmem:[#allocation2 + $0xd8] sm:$0xff] %v2338_v27  ;;  %v5130_v46 = vor.u32 %v5533_v17, %v5127_v21  ;;  %v3446_v17 = vld [vmem:[#allocation3 + $0x1c] sm:$0xff]  ;;  %v2509_v21 = vld [vmem:[#allocation3 + $0x10] sm:$0xff] }
 0x394   : > { %v2148_v42 = vpop.f32.mrf.mxu0  ;;  %3565 = vmatpush.bf16.msra.mxu0 %v5158_v35 }
 0x395   : > { %v2303_v63 = vadd.f32 %v2148_v42, %v1893_v57  ;;  %v2237_v15 = vpop.f32.mrf.mxu1  ;;  %v5162_v57 = vor.u32 %v5541_v24, %v5159_v4  ;;  %v5532_v24 = vld [vmem:[%s8024_s3 + $0x204] sm:$0xf0]  ;;  %v5531_v4 = vld [vmem:[%s8024_s3 + $0x204] sm:$0xf] }
 0x396   : > { %v2304_v8 = vadd.f32 %v2237_v15, %v1894_v49 }
 0x397   : > { %v2558_v54 = vld [vmem:[#allocation3 + $0x59] sm:$0xff]  ;;  %3614 = vmatpush.bf16.msra.mxu1 %v5162_v57 }
 0x398   : > { %v2954_v0 = vld [vmem:[#allocation3 + $0x5a] sm:$0xff]  ;;  %v2339_v37 = vmax.f32 %v2303_v63, %v2304_v8  ;;  %v2568_v53 = vpack.c.bf16 %v2558_v54, %v2557_v60  ;;  %v5150_v63 = vor.u32 %v5540_v39, %v5149_v50  ;;  %v1745_v8 = vpop.f32.mrf.mxu2  ;;  %v1834_v54 = vpop.f32.mrf.mxu3 }
 0x399   : > { %v2964_v13 = vpack.c.bf16 %v2954_v0, %v2953_v45  ;;  %v2402_v32 = vld [vmem:[#allocation2 + $0xd0] ss:$2 sm:$0xff]  ;;  %v2434_v55 = vld [vmem:[#allocation2 + $0xd1] ss:$2 sm:$0xff]  ;;  %v1900_v58 = vadd.f32 %v1834_v54, %v8101_v61  ;;  %v5103_v61 = vld [vmem:[%s8024_s3 + $0x1e8] sm:$0xf0] }
 0x39a   : > { %v2452_v3 = vmax.f32 %v2402_v32, %v2434_v55  ;;  %2372 = vst [vmem:[#allocation2 + $0xe0] sm:$0xff] %v2339_v37  ;;  %2700 = vmatmul.bf16.gmra.mxu2 %v2568_v53  ;;  %2749 = vmatmul.bf16.gmra.mxu3 %v2568_v53  ;;  %v5141_v37 = vld [vmem:[%s8024_s3 + $0x230] sm:$0xf]  ;;  %v5468_v32 = vld [vmem:[%s8024_s3 + $0x4] sm:$0xf0] }
 0x39b   : > { %3096 = vmatmul.bf16.gmra.mxu0 %v2964_v13  ;;  %3145 = vmatmul.bf16.gmra.mxu1 %v2964_v13  ;;  %v4925_v13 = vld [vmem:[%s8024_s3] sm:$0xf]  ;;  %v8100_v55 = vld [vmem:[#allocation22_spill] sm:$0xff]  ;;  %v5111_v54 = vld [vmem:[%s8024_s3 + $0x1f8] sm:$0xf0] }
 0x39c   : > { %v2150_v14 = vpop.f32.mrf.mxu0  ;;  %v2472_v56 = vadd.f32 %v7255_v22, %v2452_v3  ;;  %3566 = vmatpush.bf16.msra.mxu0 %v5150_v63  ;;  %v1899_v38 = vadd.f32 %v1745_v8, %v8100_v55  ;;  %v4926_v3 = vor.u32 %v5468_v32, %v4925_v13  ;;  %v5529_v8 = vld [vmem:[%s8024_s3 + $0x1f4] sm:$0xf] }
 0x39d   : > { %v2305_v2 = vadd.f32 %v2150_v14, %v1895_v28  ;;  %v2239_v1 = vpop.f32.mrf.mxu1  ;;  %v5538_v28 = vld [vmem:[%s8024_s3 + $0x234] sm:$0xf0] }
 0x39e   : > { %v2306_v5 = vadd.f32 %v2239_v1, %v1896_v41  ;;  %v2488_v36 = vmax.f32 %v2472_v56, 0.0  ;;  %v4930_v41 = vor.u32 %v5467_v9, %v4927_v12  ;;  %v5142_v14 = vor.u32 %v5538_v28, %v5141_v37  ;;  %v5537_v56 = vld [vmem:[%s8024_s3 + $0x234] sm:$0xf]  ;;  %2852 = vmatpush.bf16.msrb.mxu2 %v4926_v3  ;;  %v5536_v1 = vld [vmem:[%s8024_s3 + $0x224] sm:$0xf0] }
 0x39f   : > { %v5146_v31 = vor.u32 %v5537_v56, %v5143_v20  ;;  %v5101_v9 = vld [vmem:[%s8024_s3 + $0x1e0] sm:$0xf]  ;;  %v5527_v12 = vld [vmem:[%s8024_s3 + $0x1e4] sm:$0xf]  ;;  %v3444_v56 = vld [vmem:[#allocation3 + $0xc] sm:$0xff] }
 0x3a0   : > { %v2340_v47 = vmax.f32 %v2305_v2, %v2306_v5  ;;  %2504 = vst [vmem:[#allocation3 + $0x68] sm:$0xff] %v2488_v36  ;;  %v7318_v27 = vpack.c.bf16 %v2488_v36, %v2487_v18  ;;  %v5539_v18 = vld [vmem:[%s8024_s3 + $0x244] sm:$0xf]  ;;  %v5133_v2 = vld [vmem:[%s8024_s3 + $0x220] sm:$0xf]  ;;  %2901 = vmatpush.bf16.msrb.mxu3 %v4930_v41  ;;  %3567 = vmatpush.bf16.msra.mxu0 %v5142_v14  ;;  %v7429_v41 = vpop.f32.mrf.mxu3  ;;  %v2508_v14 = vld [vmem:[#allocation3 + $0x8] sm:$0xff] }
 0x3a1   : > { %v5154_v15 = vor.u32 %v5539_v18, %v5151_v43  ;;  %v5134_v10 = vor.u32 %v5536_v1, %v5133_v2  ;;  %v5138_v5 = vor.u32 %v5535_v40, %v5135_v52  ;;  %v5125_v36 = vld [vmem:[%s8024_s3 + $0x210] sm:$0xf]  ;;  %v2507_v20 = vld [vmem:[#allocation3] sm:$0xff]  ;;  %v5526_v1 = vld [vmem:[%s8024_s3 + $0x1d4] sm:$0xf0] }
 0x3a2   : > { %2373 = vst [vmem:[#allocation2 + $0xe8] sm:$0xff] %v2340_v47  ;;  %v5126_v19 = vor.u32 %v5534_v34, %v5125_v36  ;;  %v5117_v47 = vld [vmem:[%s8024_s3 + $0x200] sm:$0xf]  ;;  %v5109_v43 = vld [vmem:[%s8024_s3 + $0x1f0] sm:$0xf] }
 0x3a3   : > { %3615 = vmatpush.bf16.msra.mxu1 %v5154_v15  ;;  %v5118_v50 = vor.u32 %v5532_v24, %v5117_v47  ;;  %v5530_v15 = vld [vmem:[%s8024_s3 + $0x1f4] sm:$0xf0]  ;;  %v5093_v2 = vld [vmem:[%s8024_s3 + $0x1d0] sm:$0xf]  ;;  %v5525_v40 = vld [vmem:[%s8024_s3 + $0x1d4] sm:$0xf] }
 0x3a4   : > { %v2153_v49 = vpop.f32.mrf.mxu0  ;;  %3568 = vmatpush.bf16.msra.mxu0 %v5134_v10  ;;  %v5094_v52 = vor.u32 %v5526_v1, %v5093_v2  ;;  %v3445_v47 = vld [vmem:[#allocation3 + $0x14] sm:$0xff]  ;;  %v3451_v2 = vld [vmem:[#allocation3 + $0x44] sm:$0xff] }
 0x3a5   : > { %v2307_v29 = vadd.f32 %v2153_v49, %v1897_v51  ;;  %v2242_v42 = vpop.f32.mrf.mxu1  ;;  %v5119_v51 = vld [vmem:[%s8024_s3 + $0x208] sm:$0xf0]  ;;  %v3460_v24 = vpack.c.bf16 %v3446_v17, %v3445_v47  ;;  %v5517_v17 = vld [vmem:[%s8024_s3 + $0x194] sm:$0xf] }
 0x3a6   : > { %v2308_v33 = vadd.f32 %v2242_v42, %v1898_v59  ;;  %v5122_v39 = vor.u32 %v5531_v4, %v5119_v51  ;;  %v5085_v4 = vld [vmem:[%s8024_s3 + $0x1c0] sm:$0xf]  ;;  %v5523_v51 = vld [vmem:[%s8024_s3 + $0x1c4] sm:$0xf] }
 0x3a7   : > { %3616 = vmatpush.bf16.msra.mxu1 %v5146_v31  ;;  %v2559_v35 = vld [vmem:[#allocation3 + $0x61] sm:$0xff] }
 0x3a8   : > { %v2341_v60 = vmax.f32 %v2307_v29, %v2308_v33  ;;  %3569 = vmatpush.bf16.msra.mxu0 %v5126_v19  ;;  %v2955_v59 = vld [vmem:[#allocation3 + $0x62] sm:$0xff]  ;;  %v7442_v10 = vpop.f32.mrf.mxu3  ;;  %v5649_v19 = vld [vmem:[#allocation3 + $0x18] sm:$0xff] }
 0x3a9   : > { %v2404_v45 = vld [vmem:[#allocation2 + $0xe0] ss:$2 sm:$0xff]  ;;  %v2436_v0 = vld [vmem:[#allocation2 + $0xe1] ss:$2 sm:$0xff] }
 0x3aa   : > { %v2453_v53 = vmax.f32 %v2404_v45, %v2436_v0  ;;  %2374 = vst [vmem:[#allocation2 + $0xf0] sm:$0xff] %v2341_v60  ;;  %v5110_v60 = vor.u32 %v5530_v15, %v5109_v43  ;;  %v5114_v0 = vor.u32 %v5529_v8, %v5111_v54  ;;  %v5077_v43 = vld [vmem:[%s8024_s3 + $0x1b0] sm:$0xf]  ;;  %v5522_v15 = vld [vmem:[%s8024_s3 + $0x1b4] sm:$0xf0] }
 0x3ab   : > { %3617 = vmatpush.bf16.msra.mxu1 %v5138_v5  ;;  %v5095_v5 = vld [vmem:[%s8024_s3 + $0x1d8] sm:$0xf0]  ;;  %v5521_v8 = vld [vmem:[%s8024_s3 + $0x1b4] sm:$0xf] }
 0x3ac   : > { %v2155_v62 = vpop.f32.mrf.mxu0  ;;  %v7355_v11 = vadd.f32 %v7255_v22, %v2453_v53  ;;  %3570 = vmatpush.bf16.msra.mxu0 %v5118_v50  ;;  %3313 = vmatpush.bf16.msra.mxu2 %v5110_v60  ;;  %v5098_v36 = vor.u32 %v5525_v40, %v5095_v5  ;;  %v5078_v60 = vor.u32 %v5522_v15, %v5077_v43  ;;  %v5079_v54 = vld [vmem:[%s8024_s3 + $0x1b8] sm:$0xf0]  ;;  %v5061_v5 = vld [vmem:[%s8024_s3 + $0x190] sm:$0xf] }
 0x3ad   : > { %v2309_v16 = vadd.f32 %v2155_v62, %v1899_v38  ;;  %v2244_v25 = vpop.f32.mrf.mxu1  ;;  %3362 = vmatpush.bf16.msra.mxu3 %v5114_v0  ;;  %v7427_v62 = vpop.f32.mrf.mxu2 }
 0x3ae   : > { %v2310_v23 = vadd.f32 %v2244_v25, %v1900_v58  ;;  %v2489_v7 = vmax.f32 %v7355_v11, 0.0  ;;  %v5106_v58 = vor.u32 %v5527_v12, %v5103_v61  ;;  %v3443_v25 = vld [vmem:[#allocation3 + $0x4] sm:$0xff]  ;;  %v5071_v61 = vld [vmem:[%s8024_s3 + $0x1a8] sm:$0xf0] }
 0x3af   : > { %3618 = vmatpush.bf16.msra.mxu1 %v5130_v46  ;;  %v3459_v31 = vpack.c.bf16 %v3444_v56, %v3443_v25  ;;  %v2524_v46 = vpack.c.bf16 %v5649_v19, %v2509_v21  ;;  %v5519_v12 = vld [vmem:[%s8024_s3 + $0x1a4] sm:$0xf]  ;;  %v5063_v19 = vld [vmem:[%s8024_s3 + $0x198] sm:$0xf0] }
 0x3b0   : > { %v2342_v44 = vmax.f32 %v2309_v16, %v2310_v23  ;;  %2505 = vst [vmem:[#allocation3 + $0x70] sm:$0xff] %v2489_v7  ;;  %v2523_v16 = vpack.c.bf16 %v2508_v14, %v2507_v20  ;;  %v3193_v11 = vld [vmem:[#allocation3 + $0x3] sm:$0xff] }
 0x3b1   : > { %3363 = vmatpush.bf16.msra.mxu3 %v5106_v58 }
 0x3b2   : > { %2375 = vst [vmem:[#allocation2 + $0xf8] sm:$0xf] %v2342_v44  ;;  %v7449_v44 = vpop.f32.mrf.mxu3 }
 0x3b3   : > { %3619 = vmatpush.bf16.msra.mxu1 %v5122_v39 }
 0x3b5   : > { %v7440_v23 = vpop.f32.mrf.mxu2  ;;  %3364 = vmatpush.bf16.msra.mxu3 %v5098_v36  ;;  %v5518_v36 = vld [vmem:[%s8024_s3 + $0x194] sm:$0xf0] }
 0x3b6   : > { %v5062_v21 = vor.u32 %v5518_v36, %v5061_v5 }
 0x3b7   : > { %v2560_v57 = vld [vmem:[#allocation3 + $0x69] sm:$0xff] }
 0x3b8   : > { %v2956_v49 = vld [vmem:[#allocation3 + $0x6a] sm:$0xff]  ;;  %v2569_v29 = vpack.c.bf16 %v2560_v57, %v2559_v35 }
 0x3b9   : > { %v2965_v42 = vpack.c.bf16 %v2956_v49, %v2955_v59  ;;  %v2406_v18 = vld [vmem:[#allocation2 + $0xf0] ss:$2 sm:$0xff]  ;;  %v2438_v33 = vld [vmem:[#allocation2 + $0xf1] ss:$2 sm:$0xff]  ;;  %v5524_v35 = vld [vmem:[%s8024_s3 + $0x1c4] sm:$0xf0] }
 0x3ba   : > { %v2454_v63 = vmax.f32 %v2406_v18, %v2438_v33  ;;  %2705 = vmatmul.bf16.gmra.mxu2 %v2569_v29  ;;  %2754 = vmatmul.bf16.gmra.mxu3 %v2569_v29  ;;  %v5086_v57 = vor.u32 %v5524_v35, %v5085_v4  ;;  %v5087_v59 = vld [vmem:[%s8024_s3 + $0x1c8] sm:$0xf0]  ;;  %v3447_v33 = vld [vmem:[#allocation3 + $0x24] sm:$0xff]  ;;  %v3454_v35 = vld [vmem:[#allocation3 + $0x5c] sm:$0xff] }
 0x3bb   : > { %3101 = vmatmul.bf16.gmra.mxu0 %v2965_v42  ;;  %3150 = vmatmul.bf16.gmra.mxu1 %v2965_v42  ;;  %v5090_v49 = vor.u32 %v5523_v51, %v5087_v59  ;;  %v7465_v42 = vpop.f32.mrf.mxu3  ;;  %v3448_v18 = vld [vmem:[#allocation3 + $0x2c] sm:$0xff]  ;;  %v3453_v51 = vld [vmem:[#allocation3 + $0x54] sm:$0xff]  ;;  %v5053_v59 = vld [vmem:[%s8024_s3 + $0x180] sm:$0xf] }
 0x3bc   : > { %v2474_v45 = vadd.f32 %v7255_v22, %v2454_v63  ;;  %v5528_v22 = vld [vmem:[%s8024_s3 + $0x1e4] sm:$0xf0]  ;;  %v3461_v63 = vpack.c.bf16 %v3448_v18, %v3447_v33  ;;  %v5515_v18 = vld [vmem:[%s8024_s3 + $0x184] sm:$0xf] }
 0x3bd   : > { %v5102_v28 = vor.u32 %v5528_v22, %v5101_v9  ;;  %v7447_v34 = vpop.f32.mrf.mxu2  ;;  %3365 = vmatpush.bf16.msra.mxu3 %v5090_v49  ;;  %v5069_v9 = vld [vmem:[%s8024_s3 + $0x1a0] sm:$0xf]  ;;  %v5520_v22 = vld [vmem:[%s8024_s3 + $0x1a4] sm:$0xf0] }
 0x3be   : > { %v2490_v37 = vmax.f32 %v2474_v45, 0.0  ;;  %v5516_v49 = vld [vmem:[%s8024_s3 + $0x184] sm:$0xf0] }
 0x3bf   : > { %3314 = vmatpush.bf16.msra.mxu2 %v5102_v28  ;;  %v5070_v28 = vor.u32 %v5520_v22, %v5069_v9  ;;  %v5054_v43 = vor.u32 %v5516_v49, %v5053_v59  ;;  %v3455_v9 = vld [vmem:[#allocation3 + $0x64] sm:$0xff] }
 0x3c0   : > { %2506 = vst [vmem:[#allocation3 + $0x78] sm:$0xff] %v2490_v37  ;;  %v7489_v37 = vpop.f32.mrf.mxu0  ;;  %v3194_v59 = vld [vmem:[#allocation3 + $0xb] sm:$0xff] }
 0x3c3   : > { %3315 = vmatpush.bf16.msra.mxu2 %v5094_v52  ;;  %v7469_v39 = vpop.f32.mrf.mxu3 }
 0x3c5   : > { %v7463_v29 = vpop.f32.mrf.mxu2 }
 0x3c7   : > { %v2561_v53 = vld [vmem:[#allocation3 + $0x71] sm:$0xff]  ;;  %v2562_v13 = vld [vmem:[#allocation3 + $0x79] sm:$0xf]  ;;  %3316 = vmatpush.bf16.msra.mxu2 %v5086_v57  ;;  %v3464_v57 = vpack.c.bf16 %v3454_v35, %v3453_v51 }
 0x3c8   : > { %v2957_v32 = vld [vmem:[#allocation3 + $0x72] sm:$0xff]  ;;  %v2570_v55 = vpack.c.bf16 %v2562_v13, %v2561_v53  ;;  %v2958_v38 = vld [vmem:[#allocation3 + $0x7a] sm:$0xf]  ;;  %v7491_v53 = vpop.f32.mrf.mxu1  ;;  %v7511_v58 = vpop.f32.mrf.mxu0 }
 0x3c9   : > { %v2966_v3 = vpack.c.bf16 %v2958_v38, %v2957_v32  ;;  %v3450_v13 = vld [vmem:[#allocation3 + $0x3c] sm:$0xff]  ;;  %v3449_v38 = vld [vmem:[#allocation3 + $0x34] sm:$0xff] }
 0x3ca   : > { %2710 = vmatmul.bf16.gmra.mxu2 %v2570_v55  ;;  %2759 = vmatmul.bf16.gmra.mxu3 %v2570_v55  ;;  %v3457_v5 = vld [vmem:[#allocation3 + $0x74] sm:$0xff]  ;;  %v3458_v36 = vld [vmem:[#allocation3 + $0x7c] sm:$0xf] }
 0x3cb   : > { %3106 = vmatmul.bf16.gmra.mxu0 %v2966_v3  ;;  %3155 = vmatmul.bf16.gmra.mxu1 %v2966_v3  ;;  %v7487_v0 = vpop.f32.mrf.mxu3  ;;  %v3462_v3 = vpack.c.bf16 %v3450_v13, %v3449_v38  ;;  %v3456_v13 = vld [vmem:[#allocation3 + $0x6c] sm:$0xff] }
 0x3cc   : > { %3317 = vmatpush.bf16.msra.mxu2 %v5078_v60  ;;  %v3465_v22 = vpack.c.bf16 %v3456_v13, %v3455_v9  ;;  %v3195_v13 = vld [vmem:[#allocation3 + $0x13] sm:$0xff] }
 0x3cd   : > { %v7467_v50 = vpop.f32.mrf.mxu2 }
 0x3d0   : > { %3318 = vmatpush.bf16.msra.mxu2 %v5070_v28  ;;  %v7513_v14 = vpop.f32.mrf.mxu1  ;;  %v7519_v25 = vpop.f32.mrf.mxu0 }
 0x3d4   : > { %3319 = vmatpush.bf16.msra.mxu2 %v5062_v21 }
 0x3d5   : > { %v7485_v45 = vpop.f32.mrf.mxu2 }
 0x3d8   : > { %3320 = vmatpush.bf16.msra.mxu2 %v5054_v43 }
 0x3da   : > { %2853 = vmatmul.bf16.vlgmr.msrb.gmra.mxu2 %v2523_v16  ;;  %2902 = vmatmul.bf16.vlgmr.msrb.gmra.mxu3 %v2523_v16  ;;  %v3452_v16 = vld [vmem:[#allocation3 + $0x4c] sm:$0xff] }
 0x3db   : > { %3571 = vmatmul.bf16.vlgmr.msra.gmra.mxu0 %v3459_v31  ;;  %3620 = vmatmul.bf16.vlgmr.msra.gmra.mxu1 %v3459_v31  ;;  %v7521_v31 = vpop.f32.mrf.mxu1  ;;  %v3463_v52 = vpack.c.bf16 %v3452_v16, %v3451_v2 }
 0x3dd   : > { %v7493_v32 = vpop.f32.mrf.mxu2  ;;  %v7495_v55 = vpop.f32.mrf.mxu3 }
 0x3e3   : > { %v7543_v47 = vpop.f32.mrf.mxu1 }
 0x3e5   : > { %v7515_v56 = vpop.f32.mrf.mxu2  ;;  %v7517_v20 = vpop.f32.mrf.mxu3 }
 0x3ea   : > { %2858 = vmatmul.bf16.gmra.mxu2 %v2524_v46  ;;  %2907 = vmatmul.bf16.gmra.mxu3 %v2524_v46  ;;  %v7541_v46 = vpop.f32.mrf.mxu0 }
 0x3eb   : > { %3576 = vmatmul.bf16.gmra.mxu0 %v3460_v24  ;;  %3625 = vmatmul.bf16.gmra.mxu1 %v3460_v24  ;;  %v7569_v60 = vpop.f32.mrf.mxu1 }
 0x3fa   : > { %2863 = vmatmul.bf16.gmra.mxu2 %v7113_v6  ;;  %2912 = vmatmul.bf16.gmra.mxu3 %v7113_v6  ;;  %v5082_v6 = vor.u32 %v5521_v8, %v5079_v54  ;;  %v7567_v8 = vpop.f32.mrf.mxu0 }
 0x3fb   : > { %3581 = vmatmul.bf16.gmra.mxu0 %v3461_v63  ;;  %3630 = vmatmul.bf16.gmra.mxu1 %v3461_v63 }
 0x3fc   : > { %3366 = vmatpush.bf16.msra.mxu3 %v5082_v6 }
 0x3fd   : > { %v7523_v1 = vpop.f32.mrf.mxu2  ;;  %v7525_v40 = vpop.f32.mrf.mxu3 }
 0x3fe   : > { %8102 = vst [vmem:[#allocation24_spill] sm:$0xff] %v7523_v1 }
 0x3ff   : > { %8103 = vst [vmem:[#allocation25_spill] sm:$0xff] %v7525_v40 }
 0x402   : > { %v7575_v38 = vpop.f32.mrf.mxu0 }
 0x405   : > { %v7545_v24 = vpop.f32.mrf.mxu2  ;;  %v7547_v4 = vpop.f32.mrf.mxu3 }
 0x406   : > { %8104 = vst [vmem:[#allocation26_spill] sm:$0xff] %v7545_v24  ;;  %v3204_v24 = vld [vmem:[#allocation3 + $0x5b] sm:$0xff] }
 0x407   : > { %8105 = vst [vmem:[#allocation10_spill] sm:$0xff] %v7547_v4 }
 0x40a   : > { %2868 = vmatmul.bf16.gmra.mxu2 %v7157_v48  ;;  %2917 = vmatmul.bf16.gmra.mxu3 %v7157_v48  ;;  %v5074_v48 = vor.u32 %v5519_v12, %v5071_v61  ;;  %v7585_v61 = vpop.f32.mrf.mxu0 }
 0x40b   : > { %3586 = vmatmul.bf16.gmra.mxu0 %v3462_v3  ;;  %3635 = vmatmul.bf16.gmra.mxu1 %v3462_v3  ;;  %v7577_v3 = vpop.f32.mrf.mxu1 }
 0x40c   : > { %3367 = vmatpush.bf16.msra.mxu3 %v5074_v48 }
 0x412   : > { %v7595_v21 = vpop.f32.mrf.mxu0 }
 0x413   : > { %v7587_v48 = vpop.f32.mrf.mxu1  ;;  %8114 = vst [vmem:[#allocation19_spill] sm:$0xff] %v7595_v21 }
 0x41a   : > { %2873 = vmatmul.bf16.gmra.mxu2 %v7198_v26  ;;  %2922 = vmatmul.bf16.gmra.mxu3 %v7198_v26  ;;  %v5066_v26 = vor.u32 %v5517_v17, %v5063_v19  ;;  %v3466_v17 = vpack.c.bf16 %v3458_v36, %v3457_v5  ;;  %v7619_v5 = vpop.f32.mrf.mxu0 }
 0x41b   : > { %3591 = vmatmul.bf16.gmra.mxu0 %v3463_v52  ;;  %3640 = vmatmul.bf16.gmra.mxu1 %v3463_v52  ;;  %v2522_v52 = vld [vmem:[#allocation3 + $0x78] sm:$0xf]  ;;  %v7597_v19 = vpop.f32.mrf.mxu1  ;;  %8120 = vst [vmem:[#allocation28_spill] sm:$0xff] %v7619_v5 }
 0x41c   : > { %3368 = vmatpush.bf16.msra.mxu3 %v5066_v26  ;;  %8115 = vst [vmem:[#allocation20_spill] sm:$0xff] %v7597_v19 }
 0x41d   : > { %v7560_v33 = vpop.f32.mrf.mxu2  ;;  %v7562_v63 = vpop.f32.mrf.mxu3 }
 0x41e   : > { %8106 = vst [vmem:[#allocation11_spill] sm:$0xff] %v7560_v33  ;;  %v3202_v33 = vld [vmem:[#allocation3 + $0x4b] sm:$0xff] }
 0x41f   : > { %8107 = vst [vmem:[#allocation12_spill] sm:$0xff] %v7562_v63 }
 0x423   : > { %v7621_v36 = vpop.f32.mrf.mxu1 }
 0x424   : > { %8121 = vst [vmem:[#allocation29_spill] sm:$0xff] %v7621_v36  ;;  %v3203_v36 = vld [vmem:[#allocation3 + $0x53] sm:$0xff] }
 0x425   : > { %v7571_v54 = vpop.f32.mrf.mxu2  ;;  %v7573_v6 = vpop.f32.mrf.mxu3 }
 0x426   : > { %8108 = vst [vmem:[#allocation13_spill] sm:$0xff] %v7571_v54 }
 0x427   : > { %8109 = vst [vmem:[#allocation14_spill] sm:$0xff] %v7573_v6 }
 0x42a   : > { %2878 = vmatmul.bf16.gmra.mxu2 %v7234_v30  ;;  %2927 = vmatmul.bf16.gmra.mxu3 %v7234_v30  ;;  %v5055_v30 = vld [vmem:[%s8024_s3 + $0x188] sm:$0xf0] }
 0x42b   : > { %3596 = vmatmul.bf16.gmra.mxu0 %v3464_v57  ;;  %3645 = vmatmul.bf16.gmra.mxu1 %v3464_v57  ;;  %v5058_v15 = vor.u32 %v5515_v18, %v5055_v30 }
 0x42d   : > { %3369 = vmatpush.bf16.msra.mxu3 %v5058_v15  ;;  %v3196_v15 = vld [vmem:[#allocation3 + $0x1b] sm:$0xff] }
 0x42e   : > { %v3210_v9 = vpack.c.bf16 %v3196_v15, %v3195_v13 }
 0x43a   : > { %2883 = vmatmul.bf16.gmra.mxu2 %v7318_v27  ;;  %2932 = vmatmul.bf16.gmra.mxu3 %v7318_v27  ;;  %v2530_v27 = vpack.c.bf16 %v2522_v52, %v2489_v7  ;;  %v3209_v7 = vpack.c.bf16 %v3194_v59, %v3193_v11  ;;  %v3198_v59 = vld [vmem:[#allocation3 + $0x2b] sm:$0xff]  ;;  %v3197_v11 = vld [vmem:[#allocation3 + $0x23] sm:$0xff] }
 0x43b   : > { %3601 = vmatmul.bf16.gmra.mxu0 %v3465_v22  ;;  %3650 = vmatmul.bf16.gmra.mxu1 %v3465_v22 }
 0x43d   : > { %v7581_v12 = vpop.f32.mrf.mxu2  ;;  %v7583_v28 = vpop.f32.mrf.mxu3 }
 0x43e   : > { %8110 = vst [vmem:[#allocation15_spill] sm:$0xff] %v7581_v12 }
 0x43f   : > { %8111 = vst [vmem:[#allocation16_spill] sm:$0xff] %v7583_v28 }
 0x445   : > { %v7589_v16 = vpop.f32.mrf.mxu2  ;;  %v7591_v2 = vpop.f32.mrf.mxu3 }
 0x446   : > { %8112 = vst [vmem:[#allocation17_spill] sm:$0xff] %v7589_v16 }
 0x447   : > { %8113 = vst [vmem:[#allocation18_spill] sm:$0xff] %v7591_v2 }
 0x44a   : > { %2888 = vmatmul.bf16.gmra.mxu2 %v2530_v27  ;;  %2937 = vmatmul.bf16.gmra.mxu3 %v2530_v27 }
 0x44b   : > { %3606 = vmatmul.bf16.gmra.mxu0 %v3466_v17  ;;  %3655 = vmatmul.bf16.gmra.mxu1 %v3466_v17 }
 0x44d   : > { %v7599_v26 = vpop.f32.mrf.mxu2  ;;  %v7601_v35 = vpop.f32.mrf.mxu3 }
 0x44e   : > { %8116 = vst [vmem:[#allocation21_spill] sm:$0xff] %v7599_v26  ;;  %v3200_v26 = vld [vmem:[#allocation3 + $0x3b] sm:$0xff] }
 0x44f   : > { %8117 = vst [vmem:[#allocation22_spill] sm:$0xff] %v7601_v35 }
 0x455   : > { %v7603_v51 = vpop.f32.mrf.mxu2  ;;  %v7605_v57 = vpop.f32.mrf.mxu3 }
 0x456   : > { %8118 = vst [vmem:[#allocation23_spill] sm:$0xff] %v7603_v51 }
 0x457   : > { %8119 = vst [vmem:[#allocation27_spill] sm:$0xff] %v7605_v57  ;;  %v7633_v57 = vpop.f32.mrf.mxu1 }
 0x458   : > { %8123 = vst [vmem:[#allocation31_spill] sm:$0xff] %v7633_v57 }
 0x45a   : > { %3321 = vmatmul.bf16.vlgmr.msra.gmra.mxu2 %v3209_v7  ;;  %3370 = vmatmul.bf16.vlgmr.msra.gmra.mxu3 %v3209_v7  ;;  %v3211_v7 = vpack.c.bf16 %v3198_v59, %v3197_v11  ;;  %v3199_v59 = vld [vmem:[#allocation3 + $0x33] sm:$0xff] }
 0x45b   : > { %v3212_v11 = vpack.c.bf16 %v3200_v26, %v3199_v59 }
 0x45d   : > { %v7607_v49 = vpop.f32.mrf.mxu2  ;;  %v7609_v18 = vpop.f32.mrf.mxu3 }
 0x45f   : > { %v7641_v16 = vpop.f32.mrf.mxu1 }
 0x460   : > { %8125 = vst [vmem:[#allocation33_spill] sm:$0xff] %v7641_v16 }
 0x465   : > { %v7611_v43 = vpop.f32.mrf.mxu2  ;;  %v7613_v30 = vpop.f32.mrf.mxu3 }
 0x467   : > { %v7649_v6 = vpop.f32.mrf.mxu1 }
 0x468   : > { %8127 = vst [vmem:[#allocation35_spill] sm:$0xff] %v7649_v6 }
 0x46a   : > { %3326 = vmatmul.bf16.gmra.mxu2 %v3210_v9  ;;  %3375 = vmatmul.bf16.gmra.mxu3 %v3210_v9  ;;  %v7631_v9 = vpop.f32.mrf.mxu0 }
 0x46b   : > { %8122 = vst [vmem:[#allocation30_spill] sm:$0xff] %v7631_v9 }
 0x46d   : > { %v7615_v22 = vpop.f32.mrf.mxu2  ;;  %v7617_v52 = vpop.f32.mrf.mxu3 }
 0x46f   : > { %v7657_v16 = vpop.f32.mrf.mxu1 }
 0x470   : > { %8130 = vst [vmem:[#allocation38_spill] sm:$0xff] %v7657_v16 }
 0x472   : > { %v7639_v2 = vpop.f32.mrf.mxu0 }
 0x473   : > { %8124 = vst [vmem:[#allocation32_spill] sm:$0xff] %v7639_v2  ;;  %v3201_v2 = vld [vmem:[#allocation3 + $0x43] sm:$0xff] }
 0x474   : > { %v3213_v26 = vpack.c.bf16 %v3202_v33, %v3201_v2 }
 0x475   : > { %v7623_v27 = vpop.f32.mrf.mxu2  ;;  %v7625_v17 = vpop.f32.mrf.mxu3 }
 0x477   : > { %v7665_v6 = vpop.f32.mrf.mxu1 }
 0x478   : > { %8134 = vst [vmem:[#allocation42_spill] sm:$0xff] %v7665_v6 }
 0x47a   : > { %3331 = vmatmul.bf16.gmra.mxu2 %v3211_v7  ;;  %3380 = vmatmul.bf16.gmra.mxu3 %v3211_v7  ;;  %v7647_v12 = vpop.f32.mrf.mxu0 }
 0x47b   : > { %8126 = vst [vmem:[#allocation34_spill] sm:$0xff] %v7647_v12 }
 0x47d   : > { %v7627_v15 = vpop.f32.mrf.mxu2  ;;  %v7629_v13 = vpop.f32.mrf.mxu3 }
 0x47f   : > { %v7673_v2 = vpop.f32.mrf.mxu1 }
 0x480   : > { %8138 = vst [vmem:[#allocation46_spill] sm:$0xff] %v7673_v2 }
 0x482   : > { %v7655_v57 = vpop.f32.mrf.mxu0 }
 0x483   : > { %8129 = vst [vmem:[#allocation37_spill] sm:$0xff] %v7655_v57  ;;  %v3214_v57 = vpack.c.bf16 %v3204_v24, %v3203_v36  ;;  %v3205_v24 = vld [vmem:[#allocation3 + $0x63] sm:$0xff] }
 0x485   : > { %v7635_v51 = vpop.f32.mrf.mxu2  ;;  %v7637_v35 = vpop.f32.mrf.mxu3 }
 0x48a   : > { %3336 = vmatmul.bf16.gmra.mxu2 %v3212_v11  ;;  %3385 = vmatmul.bf16.gmra.mxu3 %v3212_v11  ;;  %v7663_v12 = vpop.f32.mrf.mxu0 }
 0x48b   : > { %8133 = vst [vmem:[#allocation41_spill] sm:$0xff] %v7663_v12 }
 0x48d   : > { %v7643_v7 = vpop.f32.mrf.mxu2  ;;  %v7645_v28 = vpop.f32.mrf.mxu3 }
 0x492   : > { %v7671_v33 = vpop.f32.mrf.mxu0 }
 0x493   : > { %8137 = vst [vmem:[#allocation45_spill] sm:$0xff] %v7671_v33 }
 0x495   : > { %v7651_v54 = vpop.f32.mrf.mxu2  ;;  %v7653_v63 = vpop.f32.mrf.mxu3 }
 0x496   : > { %8128 = vst [vmem:[#allocation36_spill] sm:$0xff] %v7653_v63 }
 0x49a   : > { %3341 = vmatmul.bf16.gmra.mxu2 %v3213_v26  ;;  %3390 = vmatmul.bf16.gmra.mxu3 %v3213_v26  ;;  %v7683_v5 = vpop.f32.mrf.mxu0 }
 0x49b   : > { %8143 = vst [vmem:[#allocation51_spill] sm:$0xff] %v7683_v5 }
 0x49d   : > { %v7659_v59 = vpop.f32.mrf.mxu2  ;;  %v7661_v11 = vpop.f32.mrf.mxu3 }
 0x49e   : > { %8131 = vst [vmem:[#allocation39_spill] sm:$0xff] %v7659_v59 }
 0x49f   : > { %8132 = vst [vmem:[#allocation40_spill] sm:$0xff] %v7661_v11  ;;  %v3208_v11 = vld [vmem:[#allocation3 + $0x7b] sm:$0xf] }
 0x4a2   : > { %v3572_v33 = vpop.f32.mrf.mxu0 }
 0x4a5   : > { %v7667_v9 = vpop.f32.mrf.mxu2  ;;  %v7669_v4 = vpop.f32.mrf.mxu3 }
 0x4a6   : > { %8135 = vst [vmem:[#allocation43_spill] sm:$0xff] %v7667_v9  ;;  %v3206_v9 = vld [vmem:[#allocation3 + $0x6b] sm:$0xff] }
 0x4a7   : > { %8136 = vst [vmem:[#allocation44_spill] sm:$0xff] %v7669_v4  ;;  %v7685_v4 = vpop.f32.mrf.mxu1  ;;  %v3215_v36 = vpack.c.bf16 %v3206_v9, %v3205_v24 }
 0x4a8   : > { %8144 = vst [vmem:[#allocation52_spill] sm:$0xff] %v7685_v4 }
 0x4aa   : > { %3346 = vmatmul.bf16.gmra.mxu2 %v3214_v57  ;;  %3395 = vmatmul.bf16.gmra.mxu3 %v3214_v57  ;;  %v3574_v5 = vpop.f32.mrf.mxu0 }
 0x4ad   : > { %v7675_v26 = vpop.f32.mrf.mxu2  ;;  %v7677_v16 = vpop.f32.mrf.mxu3 }
 0x4ae   : > { %8139 = vst [vmem:[#allocation47_spill] sm:$0xff] %v7675_v26 }
 0x4af   : > { %8140 = vst [vmem:[#allocation48_spill] sm:$0xff] %v7677_v16  ;;  %v3621_v26 = vpop.f32.mrf.mxu1 }
 0x4b5   : > { %v7679_v12 = vpop.f32.mrf.mxu2  ;;  %v7681_v6 = vpop.f32.mrf.mxu3 }
 0x4b6   : > { %8141 = vst [vmem:[#allocation49_spill] sm:$0xff] %v7679_v12 }
 0x4b7   : > { %8142 = vst [vmem:[#allocation50_spill] sm:$0xff] %v7681_v6  ;;  %v3207_v6 = vld [vmem:[#allocation3 + $0x73] sm:$0xff]  ;;  %v3623_v59 = vpop.f32.mrf.mxu1 }
 0x4b8   : > { %v3216_v40 = vpack.c.bf16 %v3208_v11, %v3207_v6  ;;  %v2904_v6 = vadd.f32 %v7609_v18, %v7429_v41 }
 0x4ba   : > { %3351 = vmatmul.bf16.gmra.mxu2 %v3215_v36  ;;  %3400 = vmatmul.bf16.gmra.mxu3 %v3215_v36  ;;  %v3577_v36 = vpop.f32.mrf.mxu0 }
 0x4bd   : > { %v7687_v57 = vpop.f32.mrf.mxu2  ;;  %v7689_v2 = vpop.f32.mrf.mxu3 }
 0x4be   : > { %8145 = vst [vmem:[#allocation53_spill] sm:$0xff] %v7687_v57 }
 0x4bf   : > { %8146 = vst [vmem:[#allocation54_spill] sm:$0xff] %v7689_v2  ;;  %v3626_v4 = vpop.f32.mrf.mxu1 }
 0x4c2   : > { %v3579_v1 = vpop.f32.mrf.mxu0 }
 0x4c5   : > { %v7691_v16 = vpop.f32.mrf.mxu2  ;;  %v7693_v12 = vpop.f32.mrf.mxu3 }
 0x4c6   : > { %8147 = vst [vmem:[#allocation55_spill] sm:$0xff] %v7691_v16 }
 0x4c7   : > { %8148 = vst [vmem:[#allocation56_spill] sm:$0xff] %v7693_v12  ;;  %v2855_v12 = vadd.f32 %v7607_v49, %v7427_v62 }
 0x4c9   : > { %v3161_v11 = vadd.f32 %v7489_v37, %v2855_v12 }
 0x4ca   : > { %3356 = vmatmul.bf16.gmra.mxu2 %v3216_v40  ;;  %3405 = vmatmul.bf16.gmra.mxu3 %v3216_v40  ;;  %v3162_v40 = vadd.f32 %v7491_v53, %v2904_v6 }
 0x4cd   : > { %v7695_v9 = vpop.f32.mrf.mxu2  ;;  %v7697_v24 = vpop.f32.mrf.mxu3 }
 0x4ce   : > { %8149 = vst [vmem:[#allocation57_spill] sm:$0xff] %v7695_v9 }
 0x4cf   : > { %8150 = vst [vmem:[#allocation58_spill] sm:$0xff] %v7697_v24  ;;  %v3628_v24 = vpop.f32.mrf.mxu1 }
 0x4d5   : > { %v7699_v2 = vpop.f32.mrf.mxu2  ;;  %v7701_v57 = vpop.f32.mrf.mxu3 }
 0x4d6   : > { %8151 = vst [vmem:[#allocation59_spill] sm:$0xff] %v7699_v2  ;;  %v2857_v2 = vadd.f32 %v7611_v43, %v7440_v23  ;;  %v2909_v23 = vadd.f32 %v7617_v52, %v7449_v44  ;;  %v3582_v43 = vpop.f32.mrf.mxu0 }
 0x4d7   : > { %8152 = vst [vmem:[#allocation60_spill] sm:$0xff] %v7701_v57  ;;  %v2906_v57 = vadd.f32 %v7613_v30, %v7442_v10  ;;  %v3631_v10 = vpop.f32.mrf.mxu1 }
 0x4d8   : > { %v3163_v41 = vadd.f32 %v7511_v58, %v2857_v2  ;;  %v5562_v58 = vld [vmem:[%s8026_s5 + $0x78] sm:$0xff] }
 0x4d9   : > { %v3164_v37 = vadd.f32 %v7513_v14, %v2906_v57  ;;  %v5554_v14 = vld [vmem:[%s8026_s5 + $0x38] sm:$0xff]  ;;  %3882 = vmatpush.bf16.msrb.mxu2 %v5562_v58 }
 0x4da   : > { %3943 = vmatpush.bf16.msrb.mxu3 %v5554_v14 }
 0x4dd   : > { %v3322_v16 = vpop.f32.mrf.mxu2  ;;  %v3371_v9 = vpop.f32.mrf.mxu3 }
 0x4de   : > { %v3411_v19 = vadd.f32 %v3322_v16, %v3161_v11  ;;  %v3412_v21 = vadd.f32 %v3371_v9, %v3162_v40  ;;  %v2860_v16 = vadd.f32 %v7615_v22, %v7447_v34  ;;  %v3166_v34 = vadd.f32 %v7521_v31, %v2909_v23  ;;  %v3584_v57 = vpop.f32.mrf.mxu0 }
 0x4df   : > { %v3633_v9 = vpop.f32.mrf.mxu1 }
 0x4e0   : > { %v3661_v62 = vadd.f32 %v3572_v33, %v3411_v19  ;;  %v3662_v49 = vadd.f32 %v3621_v26, %v3412_v21  ;;  %v2911_v33 = vadd.f32 %v7625_v17, %v7465_v42 }
 0x4e2   : > { %v3693_v63 = vmax.f32 %v3661_v62, %v3662_v49 }
 0x4e4   : > { %3710 = vst [vmem:[#allocation4] sm:$0xff] %v3693_v63  ;;  %v3165_v63 = vadd.f32 %v7519_v25, %v2860_v16  ;;  %v7734_v25 = vld [vmem:[%s8025_s4] ss:$0 sm:$0xff] }
 0x4e5   : > { %v3324_v53 = vpop.f32.mrf.mxu2  ;;  %v3373_v12 = vpop.f32.mrf.mxu3 }
 0x4e6   : > { %v3413_v18 = vadd.f32 %v3324_v53, %v3163_v41  ;;  %v3414_v6 = vadd.f32 %v3373_v12, %v3164_v37  ;;  %v2865_v41 = vadd.f32 %v7627_v15, %v7467_v50  ;;  %v2914_v37 = vadd.f32 %v7629_v13, %v7469_v39  ;;  %v3587_v16 = vpop.f32.mrf.mxu0 }
 0x4e7   : > { %v3636_v23 = vpop.f32.mrf.mxu1 }
 0x4e8   : > { %v3663_v19 = vadd.f32 %v3574_v5, %v3413_v18  ;;  %v3664_v21 = vadd.f32 %v3623_v59, %v3414_v6  ;;  %v2862_v59 = vadd.f32 %v7623_v27, %v7463_v29  ;;  %v3168_v29 = vadd.f32 %v7543_v47, %v2911_v33  ;;  %v5553_v47 = vld [vmem:[%s8026_s5 + $0x30] sm:$0xff] }
 0x4e9   : > { %v3169_v50 = vadd.f32 %v7567_v8, %v2865_v41  ;;  %v3170_v39 = vadd.f32 %v7569_v60, %v2914_v37  ;;  %3944 = vmatpush.bf16.msrb.mxu3 %v5553_v47  ;;  %v8155_v41 = vld [vmem:[#allocation20_spill] sm:$0xff]  ;;  %v8158_v47 = vld [vmem:[#allocation25_spill] sm:$0xff] }
 0x4ea   : > { %v3694_v30 = vmax.f32 %v3663_v19, %v3664_v21  ;;  %v3167_v49 = vadd.f32 %v7541_v46, %v2862_v59  ;;  %v5561_v46 = vld [vmem:[%s8026_s5 + $0x70] sm:$0xff]  ;;  %v2867_v19 = vadd.f32 %v7635_v51, %v7485_v45  ;;  %v2916_v21 = vadd.f32 %v7637_v35, %v7487_v0 }
 0x4eb   : > { %3883 = vmatpush.bf16.msrb.mxu2 %v5561_v46  ;;  %v2870_v0 = vadd.f32 %v7643_v7, %v7493_v32  ;;  %v2919_v35 = vadd.f32 %v7645_v28, %v7495_v55 }
 0x4ec   : > { %3711 = vst [vmem:[#allocation4 + $0x8] sm:$0xff] %v3694_v30  ;;  %v3171_v60 = vadd.f32 %v7575_v38, %v2867_v19  ;;  %v5559_v19 = vld [vmem:[%s8026_s5 + $0x60] sm:$0xff] }
 0x4ed   : > { %v3327_v44 = vpop.f32.mrf.mxu2  ;;  %v3376_v22 = vpop.f32.mrf.mxu3  ;;  %v3174_v32 = vadd.f32 %v7587_v48, %v2919_v35 }
 0x4ee   : > { %v3415_v52 = vadd.f32 %v3327_v44, %v3165_v63  ;;  %v3416_v5 = vadd.f32 %v3376_v22, %v3166_v34  ;;  %v3172_v44 = vadd.f32 %v7577_v3, %v2916_v21  ;;  %v5560_v3 = vld [vmem:[%s8026_s5 + $0x68] sm:$0xff]  ;;  %v5551_v21 = vld [vmem:[%s8026_s5 + $0x20] sm:$0xff] }
 0x4ef   : > { %v3638_v59 = vpop.f32.mrf.mxu1  ;;  %3884 = vmatpush.bf16.msrb.mxu2 %v5560_v3 }
 0x4f0   : > { %v3665_v2 = vadd.f32 %v3577_v36, %v3415_v52  ;;  %v3666_v26 = vadd.f32 %v3626_v4, %v3416_v5  ;;  %v3589_v5 = vpop.f32.mrf.mxu0 }
 0x4f2   : > { %v3695_v31 = vmax.f32 %v3665_v2, %v3666_v26  ;;  %v5552_v26 = vld [vmem:[%s8026_s5 + $0x28] sm:$0xff] }
 0x4f3   : > { %v3726_v11 = vld [vmem:[#allocation4] ss:$2 sm:$0xff]  ;;  %v3742_v40 = vld [vmem:[#allocation4 + $0x1] ss:$2 sm:$0xff]  ;;  %3945 = vmatpush.bf16.msrb.mxu3 %v5552_v26  ;;  %3885 = vmatpush.bf16.msrb.mxu2 %v5559_v19  ;;  %v8166_v26 = vld [vmem:[#allocation30_spill] sm:$0xff] }
 0x4f4   : > { %v3757_v62 = vmax.f32 %v3726_v11, %v3742_v40  ;;  %3712 = vst [vmem:[#allocation4 + $0x10] sm:$0xff] %v3695_v31  ;;  %v3173_v31 = vadd.f32 %v7585_v61, %v2870_v0  ;;  %v8153_v11 = vld [vmem:[#allocation36_spill] sm:$0xff] }
 0x4f5   : > { %v3329_v27 = vpop.f32.mrf.mxu2  ;;  %v3378_v42 = vpop.f32.mrf.mxu3  ;;  %v2921_v40 = vadd.f32 %v8153_v11, %v7517_v20  ;;  %v8156_v20 = vld [vmem:[#allocation24_spill] sm:$0xff] }
 0x4f6   : > { %v3769_v4 = vadd.f32 %v7734_v25, %v3757_v62  ;;  %v3417_v17 = vadd.f32 %v3329_v27, %v3167_v49  ;;  %v3418_v36 = vadd.f32 %v3378_v42, %v3168_v29 }
 0x4f7   : > { %v3641_v49 = vpop.f32.mrf.mxu1  ;;  %v3176_v37 = vadd.f32 %v8155_v41, %v2921_v40  ;;  %3946 = vmatpush.bf16.msrb.mxu3 %v5551_v21  ;;  %v8168_v40 = vld [vmem:[#allocation11_spill] sm:$0xff]  ;;  %v5557_v21 = vld [vmem:[%s8026_s5 + $0x50] sm:$0xff] }
 0x4f8   : > { %v3777_v53 = vmax.f32 %v3769_v4, 0.0  ;;  %v3667_v12 = vadd.f32 %v3579_v1, %v3417_v17  ;;  %v3668_v18 = vadd.f32 %v3628_v24, %v3418_v36  ;;  %v3592_v62 = vpop.f32.mrf.mxu0  ;;  %v8154_v17 = vld [vmem:[#allocation19_spill] sm:$0xff] }
 0x4f9   : > { %v5550_v41 = vld [vmem:[%s8026_s5 + $0x18] sm:$0xff] }
 0x4fa   : > { %3785 = vst [vmem:[#allocation5] sm:$0xff] %v3777_v53  ;;  %v3696_v6 = vmax.f32 %v3667_v12, %v3668_v18 }
 0x4fb   : > { %3947 = vmatpush.bf16.msrb.mxu3 %v5550_v41 }
 0x4fc   : > { %3713 = vst [vmem:[#allocation4 + $0x18] sm:$0xff] %v3696_v6  ;;  %v8157_v6 = vld [vmem:[#allocation39_spill] sm:$0xff] }
 0x4fd   : > { %v3332_v1 = vpop.f32.mrf.mxu2  ;;  %v3381_v15 = vpop.f32.mrf.mxu3  ;;  %v2875_v46 = vadd.f32 %v8157_v6, %v8156_v20 }
 0x4fe   : > { %v3419_v13 = vadd.f32 %v3332_v1, %v3169_v50  ;;  %v3420_v24 = vadd.f32 %v3381_v15, %v3170_v39 }
 0x500   : > { %v3669_v30 = vadd.f32 %v3582_v43, %v3419_v13  ;;  %v3670_v58 = vadd.f32 %v3631_v10, %v3420_v24  ;;  %v3594_v15 = vpop.f32.mrf.mxu0  ;;  %v3643_v13 = vpop.f32.mrf.mxu1 }
 0x502   : > { %v3697_v14 = vmax.f32 %v3669_v30, %v3670_v58  ;;  %v8160_v30 = vld [vmem:[#allocation28_spill] sm:$0xff] }
 0x503   : > { %v3728_v63 = vld [vmem:[#allocation4 + $0x10] ss:$2 sm:$0xff]  ;;  %v3744_v34 = vld [vmem:[#allocation4 + $0x11] ss:$2 sm:$0xff]  ;;  %v3177_v58 = vadd.f32 %v8160_v30, %v2875_v46 }
 0x504   : > { %v3758_v8 = vmax.f32 %v3728_v63, %v3744_v34  ;;  %3714 = vst [vmem:[#allocation4 + $0x20] sm:$0xff] %v3697_v14  ;;  %v8161_v14 = vld [vmem:[#allocation29_spill] sm:$0xff] }
 0x505   : > { %v3334_v22 = vpop.f32.mrf.mxu2  ;;  %v3383_v52 = vpop.f32.mrf.mxu3 }
 0x506   : > { %v3770_v45 = vadd.f32 %v7734_v25, %v3758_v8  ;;  %v3421_v51 = vadd.f32 %v3334_v22, %v3171_v60  ;;  %v3422_v33 = vadd.f32 %v3383_v52, %v3172_v44  ;;  %v8162_v22 = vld [vmem:[#allocation26_spill] sm:$0xff]  ;;  %v8163_v52 = vld [vmem:[#allocation43_spill] sm:$0xff] }
 0x508   : > { %v3778_v43 = vmax.f32 %v3770_v45, 0.0  ;;  %v3671_v10 = vadd.f32 %v3584_v57, %v3421_v51  ;;  %v3672_v2 = vadd.f32 %v3633_v9, %v3422_v33  ;;  %v2872_v9 = vadd.f32 %v7651_v54, %v7515_v56  ;;  %v8165_v45 = vld [vmem:[#allocation44_spill] sm:$0xff] }
 0x50a   : > { %3786 = vst [vmem:[#allocation5 + $0x8] sm:$0xff] %v3778_v43  ;;  %v3698_v38 = vmax.f32 %v3671_v10, %v3672_v2  ;;  %v3175_v36 = vadd.f32 %v8154_v17, %v2872_v9  ;;  %v3597_v2 = vpop.f32.mrf.mxu0 }
 0x50c   : > { %3715 = vst [vmem:[#allocation4 + $0x28] sm:$0xff] %v3698_v38  ;;  %v3646_v38 = vpop.f32.mrf.mxu1 }
 0x50d   : > { %v3337_v55 = vpop.f32.mrf.mxu2  ;;  %v3386_v28 = vpop.f32.mrf.mxu3 }
 0x50e   : > { %v3423_v7 = vadd.f32 %v3337_v55, %v3173_v31  ;;  %v3424_v57 = vadd.f32 %v3386_v28, %v3174_v32  ;;  %v8167_v32 = vld [vmem:[#allocation31_spill] sm:$0xff] }
 0x510   : > { %v3673_v29 = vadd.f32 %v3587_v16, %v3423_v7  ;;  %v3674_v27 = vadd.f32 %v3636_v23, %v3424_v57  ;;  %v8159_v16 = vld [vmem:[#allocation40_spill] sm:$0xff] }
 0x511   : > { %v2924_v23 = vadd.f32 %v8159_v16, %v8158_v47  ;;  %v8174_v16 = vld [vmem:[#allocation13_spill] sm:$0xff] }
 0x512   : > { %v3699_v42 = vmax.f32 %v3673_v29, %v3674_v27  ;;  %v8170_v29 = vld [vmem:[#allocation12_spill] sm:$0xff]  ;;  %v3599_v20 = vpop.f32.mrf.mxu0 }
 0x513   : > { %v3730_v61 = vld [vmem:[#allocation4 + $0x20] ss:$2 sm:$0xff]  ;;  %v3746_v4 = vld [vmem:[#allocation4 + $0x21] ss:$2 sm:$0xff]  ;;  %v3178_v63 = vadd.f32 %v8161_v14, %v2924_v23 }
 0x514   : > { %v3759_v48 = vmax.f32 %v3730_v61, %v3746_v4  ;;  %3716 = vst [vmem:[#allocation4 + $0x30] sm:$0xff] %v3699_v42  ;;  %v8171_v27 = vld [vmem:[#allocation48_spill] sm:$0xff]  ;;  %v3648_v6 = vpop.f32.mrf.mxu1  ;;  %v8175_v23 = vld [vmem:[#allocation49_spill] sm:$0xff] }
 0x515   : > { %v3339_v53 = vpop.f32.mrf.mxu2  ;;  %v3388_v12 = vpop.f32.mrf.mxu3  ;;  %v2929_v42 = vadd.f32 %v8171_v27, %v8170_v29 }
 0x516   : > { %v3771_v56 = vadd.f32 %v7734_v25, %v3759_v48  ;;  %v3425_v54 = vadd.f32 %v3339_v53, %v3175_v36  ;;  %v3426_v18 = vadd.f32 %v3388_v12, %v3176_v37  ;;  %v5558_v36 = vld [vmem:[%s8026_s5 + $0x58] sm:$0xff]  ;;  %v8172_v37 = vld [vmem:[#allocation32_spill] sm:$0xff]  ;;  %v8173_v12 = vld [vmem:[#allocation33_spill] sm:$0xff] }
 0x517   : > { %3886 = vmatpush.bf16.msrb.mxu2 %v5558_v36  ;;  %v8189_v36 = vld [vmem:[#allocation56_spill] sm:$0xff] }
 0x518   : > { %v3779_v50 = vmax.f32 %v3771_v56, 0.0  ;;  %v3675_v39 = vadd.f32 %v3589_v5, %v3425_v54  ;;  %v3676_v1 = vadd.f32 %v3638_v59, %v3426_v18  ;;  %v2877_v5 = vadd.f32 %v8163_v52, %v8162_v22  ;;  %v8164_v59 = vld [vmem:[#allocation10_spill] sm:$0xff] }
 0x519   : > { %v2926_v51 = vadd.f32 %v8165_v45, %v8164_v59  ;;  %v3182_v56 = vadd.f32 %v8173_v12, %v2929_v42  ;;  %v5556_v45 = vld [vmem:[%s8026_s5 + $0x48] sm:$0xff]  ;;  %v5569_v42 = vld [vmem:[%s8026_s5 + $0xb0] sm:$0xff] }
 0x51a   : > { %3787 = vst [vmem:[#allocation5 + $0x10] sm:$0xff] %v3779_v50  ;;  %v3700_v24 = vmax.f32 %v3675_v39, %v3676_v1  ;;  %v3179_v31 = vadd.f32 %v8166_v26, %v2877_v5  ;;  %v2882_v50 = vadd.f32 %v8175_v23, %v8174_v16  ;;  %v8176_v39 = vld [vmem:[#allocation14_spill] sm:$0xff] }
 0x51b   : > { %v3180_v55 = vadd.f32 %v8167_v32, %v2926_v51  ;;  %v8177_v1 = vld [vmem:[#allocation50_spill] sm:$0xff]  ;;  %3887 = vmatpush.bf16.msrb.mxu2 %v5557_v21  ;;  %v8180_v51 = vld [vmem:[#allocation15_spill] sm:$0xff]  ;;  %v8192_v21 = vld [vmem:[#allocation21_spill] sm:$0xff] }
 0x51c   : > { %3717 = vst [vmem:[#allocation4 + $0x38] sm:$0xff] %v3700_v24  ;;  %v8191_v23 = vld [vmem:[#allocation42_spill] sm:$0xff] }
 0x51d   : > { %v3342_v34 = vpop.f32.mrf.mxu2  ;;  %v3391_v8 = vpop.f32.mrf.mxu3 }
 0x51e   : > { %v3427_v60 = vadd.f32 %v3342_v34, %v3177_v58  ;;  %v3428_v44 = vadd.f32 %v3391_v8, %v3178_v63  ;;  %v8178_v63 = vld [vmem:[#allocation34_spill] sm:$0xff]  ;;  %v8179_v8 = vld [vmem:[#allocation35_spill] sm:$0xff] }
 0x51f   : > { %v3183_v34 = vadd.f32 %v8178_v63, %v2882_v50  ;;  %3888 = vmatpush.bf16.msrb.mxu2 %v5556_v45  ;;  %v5567_v63 = vld [vmem:[%s8026_s5 + $0xa0] sm:$0xff]  ;;  %v5566_v45 = vld [vmem:[%s8026_s5 + $0x98] sm:$0xff] }
 0x520   : > { %v3677_v33 = vadd.f32 %v3592_v62, %v3427_v60  ;;  %v3678_v0 = vadd.f32 %v3641_v49, %v3428_v44  ;;  %v8169_v62 = vld [vmem:[#allocation47_spill] sm:$0xff] }
 0x521   : > { %v2880_v49 = vadd.f32 %v8169_v62, %v8168_v40 }
 0x522   : > { %v3701_v35 = vmax.f32 %v3677_v33, %v3678_v0  ;;  %v8181_v33 = vld [vmem:[#allocation53_spill] sm:$0xff] }
 0x523   : > { %v3732_v43 = vld [vmem:[#allocation4 + $0x30] ss:$2 sm:$0xff]  ;;  %v3748_v10 = vld [vmem:[#allocation4 + $0x31] ss:$2 sm:$0xff]  ;;  %v3181_v53 = vadd.f32 %v8172_v37, %v2880_v49  ;;  %v2885_v0 = vadd.f32 %v8181_v33, %v8180_v51 }
 0x524   : > { %v3760_v3 = vmax.f32 %v3732_v43, %v3748_v10  ;;  %3718 = vst [vmem:[#allocation4 + $0x40] sm:$0xff] %v3701_v35  ;;  %v3602_v35 = vpop.f32.mrf.mxu0  ;;  %v3651_v43 = vpop.f32.mrf.mxu1  ;;  %v8182_v10 = vld [vmem:[#allocation16_spill] sm:$0xff]  ;;  %v5577_v51 = vld [vmem:[%s8026_s5 + $0xf0] sm:$0xff] }
 0x525   : > { %v3344_v28 = vpop.f32.mrf.mxu2  ;;  %v3393_v7 = vpop.f32.mrf.mxu3 }
 0x526   : > { %v3772_v57 = vadd.f32 %v7734_v25, %v3760_v3  ;;  %v3429_v9 = vadd.f32 %v3344_v28, %v3179_v31  ;;  %v3430_v11 = vadd.f32 %v3393_v7, %v3180_v55  ;;  %v5549_v55 = vld [vmem:[%s8026_s5 + $0x10] sm:$0xff]  ;;  %v5555_v28 = vld [vmem:[%s8026_s5 + $0x40] sm:$0xff]  ;;  %v5570_v7 = vld [vmem:[%s8026_s5 + $0xb8] sm:$0xff] }
 0x527   : > { %3948 = vmatpush.bf16.msrb.mxu3 %v5549_v55  ;;  %3889 = vmatpush.bf16.msrb.mxu2 %v5555_v28  ;;  %v5576_v55 = vld [vmem:[%s8026_s5 + $0xe8] sm:$0xff]  ;;  %v8198_v28 = vld [vmem:[#allocation23_spill] sm:$0xff] }
 0x528   : > { %v3780_v61 = vmax.f32 %v3772_v57, 0.0  ;;  %v3679_v4 = vadd.f32 %v3594_v15, %v3429_v9  ;;  %v3680_v48 = vadd.f32 %v3643_v13, %v3430_v11  ;;  %v2931_v15 = vadd.f32 %v8177_v1, %v8176_v39  ;;  %v8184_v57 = vld [vmem:[#allocation37_spill] sm:$0xff]  ;;  %v8185_v11 = vld [vmem:[#allocation38_spill] sm:$0xff] }
 0x529   : > { %v3185_v9 = vadd.f32 %v8184_v57, %v2885_v0  ;;  %v5568_v39 = vld [vmem:[%s8026_s5 + $0xa8] sm:$0xff] }
 0x52a   : > { %3788 = vst [vmem:[#allocation5 + $0x18] sm:$0xff] %v3780_v61  ;;  %v3702_v17 = vmax.f32 %v3679_v4, %v3680_v48  ;;  %v3184_v60 = vadd.f32 %v8179_v8, %v2931_v15  ;;  %v8186_v61 = vld [vmem:[#allocation17_spill] sm:$0xff]  ;;  %v8187_v4 = vld [vmem:[#allocation55_spill] sm:$0xff]  ;;  %v8195_v8 = vld [vmem:[#allocation58_spill] sm:$0xff] }
 0x52b   : > { %4025 = vmatpush.bf16.msra.mxu2 %v5570_v7  ;;  %v2887_v48 = vadd.f32 %v8187_v4, %v8186_v61  ;;  %v8199_v7 = vld [vmem:[#allocation59_spill] sm:$0xff] }
 0x52c   : > { %3719 = vst [vmem:[#allocation4 + $0x48] sm:$0xff] %v3702_v17  ;;  %v8188_v17 = vld [vmem:[#allocation18_spill] sm:$0xff]  ;;  %v3604_v12 = vpop.f32.mrf.mxu0  ;;  %v2892_v57 = vadd.f32 %v8199_v7, %v8198_v28 }
 0x52d   : > { %v3347_v54 = vpop.f32.mrf.mxu2  ;;  %v3396_v18 = vpop.f32.mrf.mxu3  ;;  %v2936_v41 = vadd.f32 %v8189_v36, %v8188_v17  ;;  %v8202_v17 = vld [vmem:[#allocation51_spill] sm:$0xff] }
 0x52e   : > { %v3431_v46 = vadd.f32 %v3347_v54, %v3181_v53  ;;  %v3432_v47 = vadd.f32 %v3396_v18, %v3182_v56  ;;  %v3653_v56 = vpop.f32.mrf.mxu1  ;;  %v3191_v36 = vadd.f32 %v8202_v17, %v2892_v57 }
 0x52f   : > { %4026 = vmatpush.bf16.msra.mxu2 %v5569_v42  ;;  %v3188_v50 = vadd.f32 %v8191_v23, %v2936_v41  ;;  %v5575_v42 = vld [vmem:[%s8026_s5 + $0xe0] sm:$0xff] }
 0x530   : > { %v3681_v13 = vadd.f32 %v3597_v2, %v3431_v46  ;;  %v3682_v24 = vadd.f32 %v3646_v38, %v3432_v47  ;;  %v8183_v2 = vld [vmem:[#allocation54_spill] sm:$0xff]  ;;  %v8190_v47 = vld [vmem:[#allocation41_spill] sm:$0xff]  ;;  %v8203_v41 = vld [vmem:[#allocation52_spill] sm:$0xff] }
 0x531   : > { %v2934_v38 = vadd.f32 %v8183_v2, %v8182_v10  ;;  %v3187_v16 = vadd.f32 %v8190_v47, %v2887_v48  ;;  %v8197_v10 = vld [vmem:[#allocation46_spill] sm:$0xff] }
 0x532   : > { %v3703_v19 = vmax.f32 %v3681_v13, %v3682_v24  ;;  %v4123_v28 = vld [vmem:[#allocation5 + $0x4] ss:$8 sm:$0xf] }
 0x533   : > { %v3734_v30 = vld [vmem:[#allocation4 + $0x40] ss:$2 sm:$0xff]  ;;  %v3750_v58 = vld [vmem:[#allocation4 + $0x41] ss:$2 sm:$0xff]  ;;  %v3186_v40 = vadd.f32 %v8185_v11, %v2934_v38  ;;  %4027 = vmatpush.bf16.msra.mxu2 %v5568_v39 }
 0x534   : > { %v3761_v14 = vmax.f32 %v3734_v30, %v3750_v58  ;;  %3720 = vst [vmem:[#allocation4 + $0x50] sm:$0xff] %v3703_v19  ;;  %v8193_v30 = vld [vmem:[#allocation57_spill] sm:$0xff]  ;;  %v3607_v33 = vpop.f32.mrf.mxu0  ;;  %v8201_v11 = vld [vmem:[#allocation60_spill] sm:$0xff] }
 0x535   : > { %v3349_v44 = vpop.f32.mrf.mxu2  ;;  %v3398_v22 = vpop.f32.mrf.mxu3  ;;  %v2890_v58 = vadd.f32 %v8193_v30, %v8192_v21 }
 0x536   : > { %v3773_v52 = vadd.f32 %v7734_v25, %v3761_v14  ;;  %v3433_v5 = vadd.f32 %v3349_v44, %v3183_v34  ;;  %v3434_v59 = vadd.f32 %v3398_v22, %v3184_v60  ;;  %v5547_v14 = vld [vmem:[%s8026_s5] sm:$0xff]  ;;  %v8194_v34 = vld [vmem:[#allocation22_spill] sm:$0xff]  ;;  %v3656_v0 = vpop.f32.mrf.mxu1 }
 0x537   : > { %v2939_v60 = vadd.f32 %v8195_v8, %v8194_v34  ;;  %4028 = vmatpush.bf16.msra.mxu2 %v5567_v63  ;;  %v3793_v63 = vld [vmem:[#allocation5] ss:$8 sm:$0xf] }
 0x538   : > { %v3781_v3 = vmax.f32 %v3773_v52, 0.0  ;;  %v3683_v26 = vadd.f32 %v3599_v20, %v3433_v5  ;;  %v3684_v31 = vadd.f32 %v3648_v6, %v3434_v59  ;;  %v5548_v6 = vld [vmem:[%s8026_s5 + $0x8] sm:$0xff]  ;;  %v5578_v5 = vld [vmem:[%s8026_s5 + $0xf8] sm:$0xff] }
 0x539   : > { %3949 = vmatpush.bf16.msrb.mxu3 %v5548_v6  ;;  %v3190_v2 = vadd.f32 %v8197_v10, %v2939_v60  ;;  %v5574_v6 = vld [vmem:[%s8026_s5 + $0xd8] sm:$0xff] }
 0x53a   : > { %3789 = vst [vmem:[#allocation5 + $0x20] sm:$0xff] %v3781_v3  ;;  %v3704_v32 = vmax.f32 %v3683_v26, %v3684_v31 }
 0x53b   : > { %4029 = vmatpush.bf16.msra.mxu2 %v5566_v45 }
 0x53c   : > { %3721 = vst [vmem:[#allocation4 + $0x58] sm:$0xff] %v3704_v32  ;;  %v5565_v32 = vld [vmem:[%s8026_s5 + $0x90] sm:$0xff] }
 0x53d   : > { %v3352_v62 = vpop.f32.mrf.mxu2  ;;  %v3401_v49 = vpop.f32.mrf.mxu3  ;;  %3950 = vmatpush.bf16.msrb.mxu3 %v5547_v14  ;;  %v3814_v14 = vld [vmem:[#allocation5 + $0x1] ss:$8 sm:$0xf] }
 0x53e   : > { %v3435_v29 = vadd.f32 %v3352_v62, %v3185_v9  ;;  %v3436_v27 = vadd.f32 %v3401_v49, %v3186_v40  ;;  %v8200_v9 = vld [vmem:[#allocation27_spill] sm:$0xff]  ;;  %v3658_v47 = vpop.f32.mrf.mxu1 }
 0x53f   : > { %v2941_v40 = vadd.f32 %v8201_v11, %v8200_v9  ;;  %4030 = vmatpush.bf16.msra.mxu2 %v5565_v32  ;;  %v5594_v9 = vld [vmem:[%s8028_s7 + $0x38] sm:$0xff]  ;;  %v5593_v11 = vld [vmem:[%s8028_s7 + $0x30] sm:$0xff] }
 0x540   : > { %v3685_v37 = vadd.f32 %v3602_v35, %v3435_v29  ;;  %v3686_v53 = vadd.f32 %v3651_v43, %v3436_v27  ;;  %v8196_v35 = vld [vmem:[#allocation45_spill] sm:$0xff] }
 0x541   : > { %4108 = vmatpush.bf16.msra.mxu3 %v5578_v5  ;;  %v3189_v43 = vadd.f32 %v8196_v35, %v2890_v58  ;;  %v5564_v27 = vld [vmem:[%s8026_s5 + $0x88] sm:$0xff] }
 0x542   : > { %v3705_v54 = vmax.f32 %v3685_v37, %v3686_v53  ;;  %v3192_v37 = vadd.f32 %v8203_v41, %v2941_v40  ;;  %v4040_v35 = vld [vmem:[#allocation5 + $0x3] ss:$8 sm:$0xf] }
 0x543   : > { %v3736_v18 = vld [vmem:[#allocation4 + $0x50] ss:$2 sm:$0xff]  ;;  %v3752_v20 = vld [vmem:[#allocation4 + $0x51] ss:$2 sm:$0xff]  ;;  %4031 = vmatpush.bf16.msra.mxu2 %v5564_v27  ;;  %v5592_v40 = vld [vmem:[%s8028_s7 + $0x28] sm:$0xff] }
 0x544   : > { %v3762_v46 = vmax.f32 %v3736_v18, %v3752_v20  ;;  %3722 = vst [vmem:[#allocation4 + $0x60] sm:$0xff] %v3705_v54  ;;  %v5563_v20 = vld [vmem:[%s8026_s5 + $0x80] sm:$0xff]  ;;  %v5601_v41 = vld [vmem:[%s8030_s9 + $0x30] sm:$0xff] }
 0x545   : > { %v3354_v1 = vpop.f32.mrf.mxu2  ;;  %v3403_v15 = vpop.f32.mrf.mxu3  ;;  %4109 = vmatpush.bf16.msra.mxu3 %v5577_v51 }
 0x546   : > { %v3774_v13 = vadd.f32 %v7734_v25, %v3762_v46  ;;  %v3437_v24 = vadd.f32 %v3354_v1, %v3187_v16  ;;  %v3438_v19 = vadd.f32 %v3403_v15, %v3188_v50  ;;  %v3609_v46 = vpop.f32.mrf.mxu0  ;;  %v5573_v1 = vld [vmem:[%s8026_s5 + $0xd0] sm:$0xff]  ;;  %v5572_v15 = vld [vmem:[%s8026_s5 + $0xc8] sm:$0xff] }
 0x547   : > { %4032 = vmatpush.bf16.msra.mxu2 %v5563_v20 }
 0x548   : > { %v3782_v44 = vmax.f32 %v3774_v13, 0.0  ;;  %v3687_v22 = vadd.f32 %v3604_v12, %v3437_v24  ;;  %v3688_v52 = vadd.f32 %v3653_v56, %v3438_v19  ;;  %v5571_v13 = vld [vmem:[%s8026_s5 + $0xc0] sm:$0xff] }
 0x549   : > { %4110 = vmatpush.bf16.msra.mxu3 %v5576_v55  ;;  %v5579_v55 = vld [vmem:[%s8026_s5 + $0x100] sm:$0xff] }
 0x54a   : > { %3790 = vst [vmem:[#allocation5 + $0x28] sm:$0xff] %v3782_v44  ;;  %v3706_v59 = vmax.f32 %v3687_v22, %v3688_v52  ;;  %v5586_v22 = vld [vmem:[%s8026_s5 + $0x138] sm:$0xff] }
 0x54c   : > { %3723 = vst [vmem:[#allocation4 + $0x68] sm:$0xff] %v3706_v59  ;;  %v5584_v59 = vld [vmem:[%s8026_s5 + $0x128] sm:$0xff] }
 0x54d   : > { %v3357_v38 = vpop.f32.mrf.mxu2  ;;  %v3406_v3 = vpop.f32.mrf.mxu3  ;;  %4111 = vmatpush.bf16.msra.mxu3 %v5575_v42 }
 0x54e   : > { %v3439_v26 = vadd.f32 %v3357_v38, %v3189_v43  ;;  %v3440_v31 = vadd.f32 %v3406_v3, %v3190_v2  ;;  %v5582_v2 = vld [vmem:[%s8026_s5 + $0x118] sm:$0xff] }
 0x550   : > { %v3689_v62 = vadd.f32 %v3607_v33, %v3439_v26  ;;  %v3690_v49 = vadd.f32 %v3656_v0, %v3440_v31  ;;  %v3957_v33 = vld [vmem:[#allocation5 + $0x2] ss:$8 sm:$0xf] }
 0x551   : > { %4112 = vmatpush.bf16.msra.mxu3 %v5574_v6  ;;  %v5583_v0 = vld [vmem:[%s8026_s5 + $0x120] sm:$0xff]  ;;  %v5581_v26 = vld [vmem:[%s8026_s5 + $0x110] sm:$0xff]  ;;  %v5580_v31 = vld [vmem:[%s8026_s5 + $0x108] sm:$0xff] }
 0x552   : > { %v3707_v29 = vmax.f32 %v3689_v62, %v3690_v49  ;;  %v5591_v62 = vld [vmem:[%s8028_s7 + $0x20] sm:$0xff]  ;;  %v5590_v49 = vld [vmem:[%s8028_s7 + $0x18] sm:$0xff] }
 0x553   : > { %v3738_v61 = vld [vmem:[#allocation4 + $0x60] ss:$2 sm:$0xff]  ;;  %v3754_v4 = vld [vmem:[#allocation4 + $0x61] ss:$2 sm:$0xff] }
 0x554   : > { %v3763_v48 = vmax.f32 %v3738_v61, %v3754_v4  ;;  %3724 = vst [vmem:[#allocation4 + $0x70] sm:$0xff] %v3707_v29  ;;  %v5589_v29 = vld [vmem:[%s8028_s7 + $0x10] sm:$0xff]  ;;  %v5588_v61 = vld [vmem:[%s8028_s7 + $0x8] sm:$0xff]  ;;  %v5587_v4 = vld [vmem:[%s8028_s7] sm:$0xff] }
 0x555   : > { %v3359_v53 = vpop.f32.mrf.mxu2  ;;  %v3408_v12 = vpop.f32.mrf.mxu3  ;;  %4113 = vmatpush.bf16.msra.mxu3 %v5573_v1 }
 0x556   : > { %v3775_v56 = vadd.f32 %v7734_v25, %v3763_v48  ;;  %v3441_v54 = vadd.f32 %v3359_v53, %v3191_v36  ;;  %v3442_v18 = vadd.f32 %v3408_v12, %v3192_v37  ;;  %v5602_v36 = vld [vmem:[%s8030_s9 + $0x38] sm:$0xff]  ;;  %v5600_v37 = vld [vmem:[%s8030_s9 + $0x28] sm:$0xff] }
 0x558   : > { %v3783_v16 = vmax.f32 %v3775_v56, 0.0  ;;  %v3691_v23 = vadd.f32 %v3609_v46, %v3441_v54  ;;  %v3692_v50 = vadd.f32 %v3658_v47, %v3442_v18  ;;  %v5599_v56 = vld [vmem:[%s8030_s9 + $0x20] sm:$0xff]  ;;  %v5598_v54 = vld [vmem:[%s8030_s9 + $0x18] sm:$0xff]  ;;  %v5597_v47 = vld [vmem:[%s8030_s9 + $0x10] sm:$0xff] }
 0x559   : > { %4114 = vmatpush.bf16.msra.mxu3 %v5572_v15 }
 0x55a   : > { %3791 = vst [vmem:[#allocation5 + $0x30] sm:$0xff] %v3783_v16  ;;  %v3708_v39 = vmax.f32 %v3691_v23, %v3692_v50  ;;  %v5645_v23 = vld [vmem:[%s8027_s6] ss:$0 sm:$0xff] }
 0x55c   : > { %3725 = vst [vmem:[#allocation4 + $0x78] sm:$0xf] %v3708_v39 }
 0x55d   : > { %4115 = vmatpush.bf16.msra.mxu3 %v5571_v13 }
 0x563   : > { %v3740_v24 = vld [vmem:[#allocation4 + $0x70] ss:$2 sm:$0xff]  ;;  %v3756_v19 = vld [vmem:[#allocation4 + $0x71] ss:$2 sm:$0xff] }
 0x564   : > { %v3764_v21 = vmax.f32 %v3740_v24, %v3756_v19  ;;  %v5596_v19 = vld [vmem:[%s8030_s9 + $0x8] sm:$0xff] }
 0x566   : > { %v3776_v30 = vadd.f32 %v7734_v25, %v3764_v21  ;;  %v5585_v25 = vld [vmem:[%s8026_s5 + $0x130] sm:$0xff]  ;;  %v5595_v21 = vld [vmem:[%s8030_s9] sm:$0xff] }
 0x568   : > { %v3784_v58 = vmax.f32 %v3776_v30, 0.0  ;;  %v5646_v30 = vld [vmem:[%s8029_s8] ss:$0 sm:$0xff] }
 0x56a   : > { %3792 = vst [vmem:[#allocation5 + $0x38] sm:$0xff] %v3784_v58 }
 0x571   : > { %v3815_v34 = vld [vmem:[#allocation5 + $0x1] ss:$8 sm:$0xf0]  ;;  %v3794_v8 = vld [vmem:[#allocation5] ss:$8 sm:$0xf0] }
 0x572   : > { %v3816_v60 = vor.u32 %v3815_v34, %v3814_v14  ;;  %v3795_v44 = vor.u32 %v3794_v8, %v3793_v63  ;;  %v3958_v45 = vld [vmem:[#allocation5 + $0x2] ss:$8 sm:$0xf0]  ;;  %v4041_v51 = vld [vmem:[#allocation5 + $0x3] ss:$8 sm:$0xf0] }
 0x573   : > { %v3959_v43 = vor.u32 %v3958_v45, %v3957_v33  ;;  %v4042_v10 = vor.u32 %v4041_v51, %v4040_v35  ;;  %v4124_v32 = vld [vmem:[#allocation5 + $0x4] ss:$8 sm:$0xf0] }
 0x574   : > { %v3817_v52 = vpack.c.bf16 %v3816_v60, %v3816_v60  ;;  %v3796_v5 = vpack.c.bf16 %v3795_v44, %v3795_v44  ;;  %v4125_v7 = vor.u32 %v4124_v32, %v4123_v28  ;;  %v5647_v60 = vld [vmem:[%s8031_s10] ss:$0 sm:$0xff] }
 0x575   : > { %v3960_v38 = vpack.c.bf16 %v3959_v43, %v3959_v43  ;;  %v4043_v3 = vpack.c.bf16 %v4042_v10, %v4042_v10 }
 0x576   : > { %3890 = vmatmul.bf16.vlgmr.msrb.gmra.mxu2 %v3817_v52  ;;  %3951 = vmatmul.bf16.vlgmr.msrb.gmra.mxu3 %v3796_v5  ;;  %v4126_v57 = vpack.c.bf16 %v4125_v7, %v4125_v7 }
 0x577   : > { %4191 = vmatpush.bf16.msrb.mxu2 %v5586_v22  ;;  %4280 = vmatpush.bf16.msrb.mxu3 %v5594_v9 }
 0x57b   : > { %4192 = vmatpush.bf16.msrb.mxu2 %v5585_v25  ;;  %4281 = vmatpush.bf16.msrb.mxu3 %v5593_v11 }
 0x57f   : > { %4193 = vmatpush.bf16.msrb.mxu2 %v5584_v59  ;;  %4282 = vmatpush.bf16.msrb.mxu3 %v5592_v40 }
 0x583   : > { %4194 = vmatpush.bf16.msrb.mxu2 %v5583_v0  ;;  %4283 = vmatpush.bf16.msrb.mxu3 %v5591_v62 }
 0x586   : > { %4033 = vmatmul.bf16.vlgmr.msra.gmra.mxu2 %v3960_v38  ;;  %4116 = vmatmul.bf16.vlgmr.msra.gmra.mxu3 %v4043_v3 }
 0x587   : > { %4195 = vmatpush.bf16.msrb.mxu2 %v5582_v2  ;;  %4284 = vmatpush.bf16.msrb.mxu3 %v5590_v49 }
 0x58b   : > { %4196 = vmatpush.bf16.msrb.mxu2 %v5581_v26  ;;  %4285 = vmatpush.bf16.msrb.mxu3 %v5589_v29 }
 0x58f   : > { %4197 = vmatpush.bf16.msrb.mxu2 %v5580_v31  ;;  %4286 = vmatpush.bf16.msrb.mxu3 %v5588_v61 }
 0x593   : > { %4198 = vmatpush.bf16.msrb.mxu2 %v5579_v55  ;;  %4287 = vmatpush.bf16.msrb.mxu3 %v5587_v4 }
 0x596   : > { %4199 = vmatmul.bf16.vlgmr.msrb.gmra.mxu2 %v4126_v57 }
 0x597   : > { %4363 = vmatpush.bf16.msra.mxu2 %v5602_v36 }
 0x59b   : > { %4364 = vmatpush.bf16.msra.mxu2 %v5601_v41 }
 0x59f   : > { %4365 = vmatpush.bf16.msra.mxu2 %v5600_v37 }
 0x5a3   : > { %4366 = vmatpush.bf16.msra.mxu2 %v5599_v56 }
 0x5a7   : > { %4367 = vmatpush.bf16.msra.mxu2 %v5598_v54 }
 0x5ab   : > { %4368 = vmatpush.bf16.msra.mxu2 %v5597_v47 }
 0x5af   : > { %4369 = vmatpush.bf16.msra.mxu2 %v5596_v19 }
 0x5b3   : > { %4370 = vmatpush.bf16.msra.mxu2 %v5595_v21 }
 0x5f9   : > { %v3891_v27 = vpop.f32.mrf.mxu2  ;;  %v3952_v42 = vpop.f32.mrf.mxu3 }
 0x5fa   : > { %v3953_v6 = vadd.f32 %v3952_v42, %v3891_v27 }
 0x601   : > { %v3893_v48 = vpop.f32.mrf.mxu2  ;;  %v3954_v17 = vpop.f32.mrf.mxu3 }
 0x609   : > { %v4034_v53 = vpop.f32.mrf.mxu2  ;;  %v4117_v12 = vpop.f32.mrf.mxu3 }
 0x60a   : > { %v4038_v46 = vadd.f32 %v4034_v53, %v3953_v6 }
 0x60c   : > { %v4121_v16 = vadd.f32 %v4117_v12, %v4038_v46 }
 0x611   : > { %v4036_v18 = vpop.f32.mrf.mxu2  ;;  %v4119_v20 = vpop.f32.mrf.mxu3 }
 0x619   : > { %v4200_v50 = vpop.f32.mrf.mxu2 }
 0x61a   : > { %v4204_v39 = vadd.f32 %v4200_v50, %v4121_v16 }
 0x61c   : > { %v4209_v1 = vadd.f32 %v5645_v23, %v4204_v39 }
 0x61e   : > { %v4210_v15 = vmax.f32 %v4209_v1, 0.0 }
 0x620   : > { %v4211_v13 = vpack.c.bf16 %v4210_v15, %v4210_v15 }
 0x621   : > { %v4202_v24 = vpop.f32.mrf.mxu2 }
 0x622   : > { %4288 = vmatmul.bf16.vlgmr.msrb.gmra.mxu3 %v4211_v13 }
 0x6a5   : > { %v4289_v58 = vpop.f32.mrf.mxu3 }
 0x6a6   : > { %v4290_v14 = vadd.f32 %v5646_v30, %v4289_v58 }
 0x6a8   : > { %v4293_v63 = vmax.f32 %v4290_v14, 0.0 }
 0x6aa   : > { %v4294_v34 = vpack.c.bf16 %v4293_v63, %v4293_v63 }
 0x6ac   : > { %4371 = vmatmul.bf16.vlgmr.msra.gmra.mxu2 %v4294_v34 }
 0x6ad   : > { %v4291_v8 = vpop.f32.mrf.mxu3 }
 0x72f   : > { %v4372_v44 = vpop.f32.mrf.mxu2 }
 0x730   : > { %v4373_v22 = vadd.f32 %v5647_v60, %v4372_v44 }
 0x732   : > { %4376 = vst [vmem:[%s380_s15] sm:$0xff] %v4373_v22 }
 0x733   : > { %5677 = shalt.err (!%p5674_p3)
}
 0x734   : > { %5603 = dma.vmem_to_hbm [thread:$0]  (%p5813_p5), %s4391_s16, 128, %s4393_s22, %s4378_s0  }
 0x737   : > { %v4374_v52 = vpop.f32.mrf.mxu2 }
 0x738 PF: > { %p5609_p4 = scmp.ge.s32.totalorder %s5712_s20, 2  ;;  %s4404_s26 = sand.u32 1, %s5700_s17  }
 0x739   : > { %s4405_s13 = scalar_lea.sflag [#allocation7], %s4404_s26 }
 0x73a   : > { %p5606_p7 = pnand %p5609_p4, %p5817_p6 }
 0x73c   : > { %p5607_p8 = pneg %p5606_p7 }
 0x73e   : > { %5695 = dma.done.wait (%p5607_p8), %s4405_s13, 128  }
 0x73f   : > { %5697 = vsyncadd (%p5607_p8), %s4405_s13, 4294967168  ;;  %s8204_s1 = sld [smem:[#allocation9_spill]]  ;;  %p21_p9 = scmp.ge.s32.totalorder %s5800_s23, 4  }
 0x740   : > { %s8205_s17 = smov %s5704_s18  ;;  %s8206_s18 = smov %s5708_s19 }
 0x741   : > { %s8208_s20 = smov %s5800_s23  ;;  %23 = sbr.rel (!%p21_p9) target bundleno = 6 (0x6), region = 149 }
 0x745   : > { %s8207_s19 = smov %s8204_s1 }
 0x746   :  { %4411 = vsyncpa [#allocation7], 1 }
 0x747   :  { %4413 = vsyncpa [#allocation7 + $0x1], 1 }

</bundles_post_ra>
